<compile_context>
chip_gen: v7x
topology: tpu7x:2x2x1
jax: 0.10.0
libtpu: 0.0.40
codegen_flags: <defaults>
</compile_context>

<pallas_src>
import functools

import jax
import jax.numpy as jnp
from jax import lax
from jax.experimental import pallas as pl
from jax.experimental.pallas import tpu as pltpu

F32 = jnp.float32
BF16 = jnp.bfloat16
_BN_EPS = 1e-5


def _fold_bn(gamma, beta, mean, var):
    scale = gamma / jnp.sqrt(var + _BN_EPS)
    shift = beta - mean * scale
    return scale, shift


def _largest_divisor_leq(n, m):
    for d in range(min(n, m), 0, -1):
        if n % d == 0:
            return d
    return n


# ---------------------------------------------------------------------------
# Kernel 1: stem = conv7x7/2 (im2col matmul, BN folded) + ReLU + maxpool3x3/2
# ---------------------------------------------------------------------------
def _stem_kernel(p_ref, w_ref, b_ref, o_ref, pad_ref):
    # p_ref: (1, Hc, Wc, K) bf16 patches; w_ref: (K, F) bf16; b_ref: (1, F) f32
    # o_ref: (1, Hp, Wp, F) bf16; pad_ref: VMEM (Hc+2, Wc+2, F) f32
    _, Hc, Wc, K = p_ref.shape
    Hp, Wp, Fo = o_ref.shape[1], o_ref.shape[2], o_ref.shape[3]

    p = p_ref[0].reshape(Hc * Wc, K)
    y = jnp.dot(p, w_ref[...], preferred_element_type=F32) + b_ref[...]
    y = jnp.maximum(y, 0.0).reshape(Hc, Wc, Fo)

    # maxpool 3x3 stride 2 pad 1: fill ONLY the 1-element border of the scratch
    # (-1e30 is a safe stand-in for -inf because y >= 0 after the ReLU).
    pad_ref[1:Hc + 1, 1:Wc + 1, :] = y
    pad_ref[0:1, :, :] = jnp.full((1, Wc + 2, Fo), -1e30, F32)
    pad_ref[Hc + 1:Hc + 2, :, :] = jnp.full((1, Wc + 2, Fo), -1e30, F32)
    pad_ref[:, 0:1, :] = jnp.full((Hc + 2, 1, Fo), -1e30, F32)
    pad_ref[:, Wc + 1:Wc + 2, :] = jnp.full((Hc + 2, 1, Fo), -1e30, F32)

    xp = pad_ref[...]
    ra = xp[0:2 * Hp].reshape(Hp, 2, Wc + 2, Fo)
    rb = xp[2:2 * Hp + 2].reshape(Hp, 2, Wc + 2, Fo)
    rmax = jnp.maximum(jnp.maximum(ra[:, 0], ra[:, 1]), rb[:, 0])     # (Hp, Wc+2, F)
    ca = rmax[:, 0:2 * Wp].reshape(Hp, Wp, 2, Fo)
    cb = rmax[:, 2:2 * Wp + 2].reshape(Hp, Wp, 2, Fo)
    out = jnp.maximum(jnp.maximum(ca[:, :, 0], ca[:, :, 1]), cb[:, :, 0])
    o_ref[...] = out.reshape(1, Hp, Wp, Fo).astype(o_ref.dtype)


def stem_forward(x_nhwc, sp):
    N, H, W, _ = x_nhwc.shape
    Fo = sp["w0"].shape[3]
    Hc = (H + 6 - 7) // 2 + 1
    Wc = (W + 6 - 7) // 2 + 1
    assert Hc % 2 == 0 and Wc % 2 == 0
    Hp, Wp = Hc // 2, Wc // 2

    # im2col for the 7x7/2 conv, emitted in bf16 (glue; halves the HBM stream).
    xp = jnp.pad(x_nhwc, ((0, 0), (3, 3), (3, 3), (0, 0)))
    cols = []
    for dh in range(7):
        for dw in range(7):
            cols.append(xp[:, dh:dh + 2 * Hc - 1:2, dw:dw + 2 * Wc - 1:2, :])
    patches = jnp.concatenate(cols, axis=-1).astype(BF16)            # (N, Hc, Wc, 147)
    K = patches.shape[-1]
    wf = sp["w0"].reshape(K, Fo)
    bf = sp["b0"].reshape(1, Fo).astype(F32)

    return pl.pallas_call(
        _stem_kernel,
        out_shape=jax.ShapeDtypeStruct((N, Hp, Wp, Fo), BF16),
        grid=(N,),
        in_specs=[
            pl.BlockSpec((1, Hc, Wc, K), lambda n: (n, 0, 0, 0)),
            pl.BlockSpec((K, Fo), lambda n: (0, 0)),
            pl.BlockSpec((1, Fo), lambda n: (0, 0)),
        ],
        out_specs=pl.BlockSpec((1, Hp, Wp, Fo), lambda n: (n, 0, 0, 0)),
        scratch_shapes=[pltpu.VMEM((Hc + 2, Wc + 2, Fo), F32)],
        compiler_params=pltpu.CompilerParams(
            dimension_semantics=("parallel",),
            vmem_limit_bytes=48 * 1024 * 1024),
    )(patches, wf, bf)


# ---------------------------------------------------------------------------
# Kernel 2: fused DenseLayer
#   BN1 -> ReLU -> conv1x1 (BN2 scale folded) -> +shift -> ReLU -> conv3x3 same
#   The nine 3x3 taps are one matmul (N = 9*g); accumulation is shifted VPU adds.
# ---------------------------------------------------------------------------
def _dense_layer_kernel(f_ref, s1_ref, b1_ref, w1_ref, b2_ref, w2_ref,
                        o_ref, tap_ref, *, win):
    # f_ref : (1, H, W, Cb) bf16   feature buffer (channel-blocked)
    # s1/b1 : (1, Cb) f32          folded BN1 (zero-padded to Cb)
    # w1    : (Cb, cmid) bf16      1x1 conv, BN2 scale folded, zero-padded rows
    # b2    : (1, cmid) f32        BN2 shift
    # w2    : (cmid, 9*g) bf16     3x3 taps flattened: tap-major, g-minor
    # o_ref : (1, th, W, g) bf16
    # tap   : VMEM (th+4, W+2, 9*g) f32   per-tap products incl. zero 3x3 halo
    H, W, Cb = f_ref.shape[1], f_ref.shape[2], f_ref.shape[3]
    th, g = o_ref.shape[1], o_ref.shape[3]
    t = pl.program_id(1)
    nt = pl.num_programs(1)
    row0 = t * th

    # `win` input rows cover the th output rows plus the 3x3 halo; the window
    # start is clamped to the image and the scratch destination offset (dst0)
    # compensates.  tap_ref row j holds feature row (row0 - 2 + j).
    start = jnp.clip(row0 - 1, 0, H - win)
    dst0 = start - row0 + 2

    # --- bottleneck on the whole window in one pass (BN1 math in f32) -------
    x = f_ref[0, pl.ds(start, win), :, :].astype(F32)                 # (win, W, Cb)
    a = jnp.maximum(x.reshape(win * W, Cb) * s1_ref[...] + b1_ref[...], 0.0)
    h = jnp.dot(a.astype(BF16), w1_ref[...], preferred_element_type=F32)
    h = jnp.maximum(h + b2_ref[...], 0.0)                             # (win*W, cmid)

    # --- all nine 3x3 taps in ONE MXU matmul (N = 9*g) ----------------------
    y = jnp.dot(h.astype(BF16), w2_ref[...], preferred_element_type=F32)

    # --- scatter into the halo-padded scratch (zero only the borders) -------
    zcol = jnp.zeros((th + 4, 1, 9 * g), F32)
    tap_ref[:, 0:1, :] = zcol                                         # W = -1 halo
    tap_ref[:, W + 1:W + 2, :] = zcol                                 # W = W  halo
    tap_ref[pl.ds(dst0, win), 1:W + 1, :] = y.reshape(win, W, 9 * g)

    zrow = jnp.zeros((1, W + 2, 9 * g), F32)

    @pl.when(t == 0)
    def _():
        tap_ref[1:2, :, :] = zrow                                     # feature row -1

    @pl.when(t == nt - 1)
    def _():
        tap_ref[th + 2:th + 3, :, :] = zrow                           # feature row H

    # --- shifted adds (VPU) over the 9 tap slabs -----------------------------
    acc = jnp.zeros((th, W, g), F32)
    for kh in range(3):
        for kw in range(3):
            tap = kh * 3 + kw
            acc = acc + tap_ref[1 + kh:1 + kh + th, kw:kw + W,
                                tap * g:(tap + 1) * g]
    o_ref[...] = acc.reshape(1, th, W, g).astype(o_ref.dtype)


def _dense_row_tile(H, row_tile_max):
    if H <= row_tile_max:
        return H
    # Need th <= H - 2 so the (th+2)-row window fits inside the image.
    return _largest_divisor_leq(H, min(row_tile_max, H - 2))


def dense_layer_forward(feats, lp, row_tile_max):
    """feats: (N, H, W, Ctot) bf16 buffer; layer consumes its first cin channels."""
    N, H, W, Ctot = feats.shape
    cin = lp["s1"].shape[0]
    cmid = lp["w1"].shape[1]
    g = lp["w2f"].shape[1] // 9
    th = _dense_row_tile(H, row_tile_max)
    nt = H // th
    win = th + 2 if nt > 1 else H

    # Channel block: only the channels this layer consumes (rounded up to the
    # 128-lane tile, capped at Ctot) are DMA'd, not the whole growing buffer.
    cb = Ctot if Ctot <= 128 else min(((cin + 127) // 128) * 128, Ctot)
    # Zero-pad folded BN1 / 1x1 weights to cb so no in-kernel channel slice.
    s1 = jnp.zeros((1, cb), F32).at[0, :cin].set(lp["s1"])
    b1 = jnp.zeros((1, cb), F32).at[0, :cin].set(lp["b1"])
    w1 = jnp.zeros((cb, cmid), BF16).at[:cin, :].set(lp["w1"])
    b2 = lp["b2"].reshape(1, -1)

    kern = functools.partial(_dense_layer_kernel, win=win)
    return pl.pallas_call(
        kern,
        out_shape=jax.ShapeDtypeStruct((N, H, W, g), BF16),
        grid=(N, nt),
        in_specs=[
            pl.BlockSpec((1, H, W, cb), lambda n, t: (n, 0, 0, 0)),
            pl.BlockSpec((1, cb), lambda n, t: (0, 0)),
            pl.BlockSpec((1, cb), lambda n, t: (0, 0)),
            pl.BlockSpec((cb, cmid), lambda n, t: (0, 0)),
            pl.BlockSpec((1, cmid), lambda n, t: (0, 0)),
            pl.BlockSpec((cmid, 9 * g), lambda n, t: (0, 0)),
        ],
        out_specs=pl.BlockSpec((1, th, W, g), lambda n, t: (n, t, 0, 0)),
        scratch_shapes=[pltpu.VMEM((th + 4, W + 2, 9 * g), F32)],
        compiler_params=pltpu.CompilerParams(
            # Row tiles produce disjoint output blocks -> both axes parallel
            # (lets both v7x TensorCores work even at batch 1-2).
            dimension_semantics=("parallel", "parallel"),
            vmem_limit_bytes=48 * 1024 * 1024),   # < v7x's 64 MiB physical VMEM
    )(feats, s1, b1, w1, b2, lp["w2f"])


def dense_block_forward(x_nhwc, layers, row_tile_max):
    """DenseBlock: features accumulate in one preallocated bf16 buffer."""
    N, H, W, C0 = x_nhwc.shape
    g = layers[0]["w2f"].shape[1] // 9
    Ctot = C0 + len(layers) * g
    feats = jnp.zeros((N, H, W, Ctot), BF16)
    feats = lax.dynamic_update_slice(feats, x_nhwc.astype(BF16), (0, 0, 0, 0))
    coff = C0
    for lp in layers:
        new = dense_layer_forward(feats, lp, row_tile_max)            # (N, H, W, g)
        # In-place under jit: only the g new channels are written back to HBM.
        feats = lax.dynamic_update_slice(feats, new, (0, 0, 0, coff))
        coff += g
    return feats


# ---------------------------------------------------------------------------
# Kernel 3: Transition = BN -> ReLU -> AvgPool(2,2) -> conv1x1, row-tiled
#           (pool and 1x1 conv commute; pooling first quarters the matmul)
# ---------------------------------------------------------------------------
def _transition_kernel(x_ref, s_ref, b_ref, w_ref, o_ref):
    _, hh, W, Cin = x_ref.shape
    tho, Wo = hh // 2, W // 2
    Cout = o_ref.shape[3]

    a = jnp.maximum(x_ref[0].astype(F32) * s_ref[...] + b_ref[...], 0.0)
    r = a.reshape(tho, 2, W, Cin)
    rs = r[:, 0] + r[:, 1]
    c = rs.reshape(tho, Wo, 2, Cin)
    pooled = (c[:, :, 0] + c[:, :, 1]) * 0.25                          # AvgPool2d(2,2)
    y = jnp.dot(pooled.reshape(tho * Wo, Cin).astype(BF16), w_ref[...],
                preferred_element_type=F32)
    o_ref[...] = y.reshape(1, tho, Wo, Cout).astype(o_ref.dtype)


def transition_forward(x_nhwc, tp, row_tile_max):
    N, H, W, Cin = x_nhwc.shape
    Cout = tp["w"].shape[1]
    Ho, Wo = H // 2, W // 2
    tho = _largest_divisor_leq(Ho, row_tile_max)
    nho = Ho // tho
    return pl.pallas_call(
        _transition_kernel,
        out_shape=jax.ShapeDtypeStruct((N, Ho, Wo, Cout), BF16),
        grid=(N, nho),
        in_specs=[
            pl.BlockSpec((1, 2 * tho, W, Cin), lambda n, t: (n, t, 0, 0)),
            pl.BlockSpec((1, Cin), lambda n, t: (0, 0)),
            pl.BlockSpec((1, Cin), lambda n, t: (0, 0)),
            pl.BlockSpec((Cin, Cout), lambda n, t: (0, 0)),
        ],
        out_specs=pl.BlockSpec((1, tho, Wo, Cout), lambda n, t: (n, t, 0, 0)),
        compiler_params=pltpu.CompilerParams(
            dimension_semantics=("parallel", "parallel")),
    )(x_nhwc, tp["s"].reshape(1, -1), tp["b"].reshape(1, -1), tp["w"])


# ---------------------------------------------------------------------------
# Kernel 4: head = ReLU + adaptive_avg_pool2d(1,1) + flatten
# ---------------------------------------------------------------------------
def _head_kernel(x_ref, o_ref):
    _, H, W, C = x_ref.shape
    x = jnp.maximum(x_ref[0].astype(F32), 0.0).reshape(H * W, C)
    o_ref[...] = (jnp.sum(x, axis=0, keepdims=True) * (1.0 / (H * W))).reshape(1, 1, C)


def head_forward(x_nhwc):
    N, H, W, C = x_nhwc.shape
    out = pl.pallas_call(
        _head_kernel,
        out_shape=jax.ShapeDtypeStruct((N, 1, C), F32),
        grid=(N,),
        in_specs=[pl.BlockSpec((1, H, W, C), lambda n: (n, 0, 0, 0))],
        out_specs=pl.BlockSpec((1, 1, C), lambda n: (n, 0, 0)),
        compiler_params=pltpu.CompilerParams(dimension_semantics=("parallel",)),
    )(x_nhwc)
    return out.reshape(N, C)


# ---------------------------------------------------------------------------
# Full network forward (fusion_maps=None branch of DownsampleDenseNet.forward)
# ---------------------------------------------------------------------------
def _encode_size_nchw(t):
    return '-'.join(str(int(s)) for s in t.shape[1:])


def downsample_densenet_forward(x_nchw, params, row_tile_max=8):
    x = jnp.transpose(x_nchw, (0, 2, 3, 1)).astype(F32)               # NCHW -> NHWC
    outputs = {}

    feats = stem_forward(x, params["stem"])                           # conv0/bn0/relu0/pool0
    f_nchw = jnp.transpose(feats, (0, 3, 1, 2)).astype(F32)
    outputs[_encode_size_nchw(f_nchw)] = f_nchw

    for blk in params["blocks"]:
        if isinstance(blk, list):                                     # DenseBlock
            feats = dense_block_forward(feats, blk, row_tile_max)
        else:                                                         # Transition
            feats = transition_forward(feats, blk, row_tile_max)
        f_nchw = jnp.transpose(feats, (0, 3, 1, 2)).astype(F32)
        outputs[_encode_size_nchw(f_nchw)] = f_nchw

    out = head_forward(feats)                                         # relu + gap + flatten
    outputs[_encode_size_nchw(out)] = out
    return outputs, out


# ---------------------------------------------------------------------------
# Synthetic, deterministic parameters (eval-mode BN folded; matmul weights bf16)
# ---------------------------------------------------------------------------
def init_params(key, *, growth_rate, block_config, num_init_features, bn_size):
    keys = iter(jax.random.split(key, 1024))

    def nk():
        return next(keys)

    def bn_params(c):
        g = jax.random.uniform(nk(), (c,), minval=0.5, maxval=1.5)
        b = 0.1 * jax.random.normal(nk(), (c,))
        m = 0.1 * jax.random.normal(nk(), (c,))
        v = jax.random.uniform(nk(), (c,), minval=0.5, maxval=1.5)
        return _fold_bn(g, b, m, v)

    F0 = num_init_features
    w0 = jax.random.normal(nk(), (7, 7, 3, F0)) * (1.0 / jnp.sqrt(7 * 7 * 3))
    s0, t0 = bn_params(F0)
    stem = dict(w0=(w0 * s0).astype(BF16), b0=t0.astype(F32))         # BN0 folded into conv0

    blocks = []
    c = F0
    for bi, num_layers in enumerate(block_config):
        layers = []
        for i in range(num_layers):
            cin = c + i * growth_rate
            cmid = bn_size * growth_rate
            s1, b1 = bn_params(cin)
            w1 = jax.random.normal(nk(), (cin, cmid)) * (1.0 / jnp.sqrt(cin))
            s2, b2 = bn_params(cmid)
            w2 = jax.random.normal(nk(), (3, 3, cmid, growth_rate)) * (1.0 / jnp.sqrt(9 * cmid))
            w2f = jnp.transpose(w2, (2, 0, 1, 3)).reshape(cmid, 9 * growth_rate)
            layers.append(dict(
                s1=s1.astype(F32), b1=b1.astype(F32),
                w1=(w1 * s2[None, :]).astype(BF16),                   # BN2 scale folded
                b2=b2.astype(F32),
                w2=w2.astype(BF16),                                   # HWIO (for reference)
                w2f=w2f.astype(BF16)))                                # (cmid, 9*g) for kernel
        blocks.append(layers)
        c = c + num_layers * growth_rate
        if bi != len(block_config) - 1:
            st, bt = bn_params(c)
            wt = jax.random.normal(nk(), (c, c // 2)) * (1.0 / jnp.sqrt(c))
            blocks.append(dict(s=st.astype(F32), b=bt.astype(F32), w=wt.astype(BF16)))
            c = c // 2
    return dict(stem=stem, blocks=blocks)


# ---------------------------------------------------------------------------
# Pure-JAX reference (XLA convs, same bf16 quantization points) for checking
# ---------------------------------------------------------------------------
def _q(a):
    return a.astype(BF16).astype(F32)


def _ref_forward(x_nchw, params):
    dn = ("NHWC", "HWIO", "NHWC")
    HI = lax.Precision.HIGHEST
    x = jnp.transpose(x_nchw, (0, 2, 3, 1)).astype(F32)

    sp = params["stem"]
    y = lax.conv_general_dilated(_q(x), sp["w0"].astype(F32), (2, 2), [(3, 3), (3, 3)],
                                 dimension_numbers=dn, precision=HI) + sp["b0"]
    y = jnp.maximum(y, 0.0)
    feats = lax.reduce_window(y, -jnp.inf, lax.max, (1, 3, 3, 1), (1, 2, 2, 1),
                              [(0, 0), (1, 1), (1, 1), (0, 0)])
    feats = _q(feats)                                                 # stem output stored bf16

    for blk in params["blocks"]:
        if isinstance(blk, list):
            fl = [feats]
            for lp in blk:
                cat = jnp.concatenate(fl, axis=-1)
                a = jnp.maximum(cat * lp["s1"] + lp["b1"], 0.0)
                w1 = lp["w1"].astype(F32)
                h = lax.conv_general_dilated(_q(a), w1.reshape(1, 1, *w1.shape), (1, 1),
                                             "VALID", dimension_numbers=dn,
                                             precision=HI) + lp["b2"]
                h = jnp.maximum(h, 0.0)
                new = lax.conv_general_dilated(_q(h), lp["w2"].astype(F32), (1, 1),
                                               [(1, 1), (1, 1)], dimension_numbers=dn,
                                               precision=HI)
                fl.append(_q(new))                                    # growth stored bf16
            feats = jnp.concatenate(fl, axis=-1)
        else:
            a = jnp.maximum(feats * blk["s"] + blk["b"], 0.0)
            # AvgPool(2,2) and the 1x1 conv commute (both linear over pixels);
            # pool first to mirror the fused kernel's quantization point.
            pooled = lax.reduce_window(a, 0.0, lax.add, (1, 2, 2, 1), (1, 2, 2, 1),
                                       "VALID") * 0.25
            w = blk["w"].astype(F32)
            feats = _q(lax.conv_general_dilated(_q(pooled), w.reshape(1, 1, *w.shape),
                                                (1, 1), "VALID", dimension_numbers=dn,
                                                precision=HI))        # transition out bf16
    out = jnp.maximum(feats, 0.0).mean(axis=(1, 2))
    return jnp.transpose(feats, (0, 3, 1, 2)), out


if __name__ == "__main__":
    # Small config consistent with the module: batch=2, 3-channel 32x32 input,
    # growth_rate=8, block_config=(2, 2), num_init_features=16, bn_size=2, drop_rate=0.
    N, H, W = 2, 32, 32
    growth_rate, block_config, num_init_features, bn_size = 8, (2, 2), 16, 2

    key = jax.random.PRNGKey(0)
    kx, kp = jax.random.split(key)
    x = jax.random.normal(kx, (N, 3, H, W), dtype=F32)
    params = init_params(kp, growth_rate=growth_rate, block_config=block_config,
                         num_init_features=num_init_features, bn_size=bn_size)

    fwd = jax.jit(downsample_densenet_forward, static_argnames=("row_tile_max",))

    # Default row tile (nt == 1 at these toy sizes) ...
    outputs, out = fwd(x, params, row_tile_max=8)
    out = jax.block_until_ready(out)
    # ... and a tiny row tile to exercise the multi-tile halo path (nt > 1).
    outputs2, out2 = fwd(x, params, row_tile_max=2)
    out2 = jax.block_until_ready(out2)

    # Expected final channel count / spatial size.
    c_final, s_final = num_init_features, H // 4
    for i, nl in enumerate(block_config):
        c_final += nl * growth_rate
        if i != len(block_config) - 1:
            c_final //= 2
            s_final //= 2
    assert out.shape == (N, c_final), out.shape
    last_key = f"{c_final}-{s_final}-{s_final}"
    assert last_key in outputs, sorted(outputs.keys())

    ref_feats, ref_out = _ref_forward(x, params)
    ref_out = jax.block_until_ready(ref_out)

    df = float(jnp.max(jnp.abs(outputs[last_key] - ref_feats)))
    do = float(jnp.max(jnp.abs(out - ref_out)))
    df2 = float(jnp.max(jnp.abs(outputs2[last_key] - ref_feats)))
    do2 = float(jnp.max(jnp.abs(out2 - ref_out)))
    assert jnp.allclose(outputs[last_key], ref_feats, rtol=1e-2, atol=1e-2), df
    assert jnp.allclose(out, ref_out, rtol=1e-2, atol=1e-2), do
    assert jnp.allclose(outputs2[last_key], ref_feats, rtol=1e-2, atol=1e-2), df2
    assert jnp.allclose(out2, ref_out, rtol=1e-2, atol=1e-2), do2

    print("KERNEL_OK")
</pallas_src>

<mosaic_0001>
module attributes {stable_mosaic.version = 11 : i64} {
  func.func @_stem_kernel(%arg0: i32, %arg1: memref<1x16x16x147xbf16, #tpu.memory_space<vmem>>, %arg2: memref<147x16xbf16, #tpu.memory_space<vmem>>, %arg3: memref<1x16xf32, #tpu.memory_space<vmem>>, %arg4: memref<1x8x8x16xbf16, #tpu.memory_space<vmem>>, %arg5: memref<18x18x16xf32, #tpu.memory_space<vmem>>) attributes {dimension_semantics = [#tpu.dimension_semantics<parallel>], iteration_bounds = array<i64: 2>, scalar_prefetch = 0 : i64, scratch_operands = 1 : i64, tpu.core_type = #tpu.core_type<tc>, window_params = [{transform_indices = @transform_0, window_bounds = array<i64: 1, 16, 16, 147>}, {pipeline_mode = #tpu.pipeline_mode<synchronous>, transform_indices = @transform_1, window_bounds = array<i64: 147, 16>}, {pipeline_mode = #tpu.pipeline_mode<synchronous>, transform_indices = @transform_2, window_bounds = array<i64: 1, 16>}, {transform_indices = @transform_3, window_bounds = array<i64: 1, 8, 8, 16>}]} {
    %c0 = arith.constant 0 : index
    %c0_0 = arith.constant 0 : index
    %c0_1 = arith.constant 0 : index
    %c0_2 = arith.constant 0 : index
    %0 = vector.load %arg1[%c0, %c0_0, %c0_1, %c0_2] : memref<1x16x16x147xbf16, #tpu.memory_space<vmem>>, vector<1x16x16x147xbf16>
    %1 = vector.shape_cast %0 : vector<1x16x16x147xbf16> to vector<16x16x147xbf16>
    %2 = vector.shape_cast %1 : vector<16x16x147xbf16> to vector<256x147xbf16>
    %c0_3 = arith.constant 0 : index
    %c0_4 = arith.constant 0 : index
    %3 = vector.load %arg2[%c0_3, %c0_4] : memref<147x16xbf16, #tpu.memory_space<vmem>>, vector<147x16xbf16>
    %cst = arith.constant dense<0.000000e+00> : vector<256x16xf32>
    %4 = tpu.matmul %2, %3, %cst {dimension_numbers = #tpu.dot_dimension_numbers<[1], [0], [0], [1], [0, 0, 1, 1], [], []>} : vector<256x147xbf16>, vector<147x16xbf16>, vector<256x16xf32> -> vector<256x16xf32>
    %c0_5 = arith.constant 0 : index
    %c0_6 = arith.constant 0 : index
    %5 = vector.load %arg3[%c0_5, %c0_6] : memref<1x16xf32, #tpu.memory_space<vmem>>, vector<1x16xf32>
    %6 = vector.broadcast %5 : vector<1x16xf32> to vector<256x16xf32>
    %7 = arith.addf %4, %6 : vector<256x16xf32>
    %cst_7 = arith.constant 0.000000e+00 : f32
    %8 = vector.broadcast %cst_7 : f32 to vector<256x16xf32>
    %9 = arith.maximumf %7, %8 : vector<256x16xf32>
    %10 = vector.shape_cast %9 : vector<256x16xf32> to vector<16x16x16xf32>
    %c1 = arith.constant 1 : index
    %c1_8 = arith.constant 1 : index
    %c0_9 = arith.constant 0 : index
    %11 = vector.load %arg5[%c1, %c1_8, %c0_9] : memref<18x18x16xf32, #tpu.memory_space<vmem>>, vector<16x16x16xf32>
    tpu.vector_store %arg5[%c1, %c1_8, %c0_9], %10 {strides = array<i32>} : memref<18x18x16xf32, #tpu.memory_space<vmem>>, vector<16x16x16xf32>,
    %cst_10 = arith.constant -1.000000e+30 : f32
    %12 = vector.broadcast %cst_10 : f32 to vector<1x18x16xf32>
    %c0_11 = arith.constant 0 : index
    %c0_12 = arith.constant 0 : index
    %c0_13 = arith.constant 0 : index
    %13 = vector.load %arg5[%c0_11, %c0_12, %c0_13] : memref<18x18x16xf32, #tpu.memory_space<vmem>>, vector<1x18x16xf32>
    tpu.vector_store %arg5[%c0_11, %c0_12, %c0_13], %12 {strides = array<i32>} : memref<18x18x16xf32, #tpu.memory_space<vmem>>, vector<1x18x16xf32>,
    %cst_14 = arith.constant -1.000000e+30 : f32
    %14 = vector.broadcast %cst_14 : f32 to vector<1x18x16xf32>
    %c17 = arith.constant 17 : index
    %c0_15 = arith.constant 0 : index
    %c0_16 = arith.constant 0 : index
    %15 = vector.load %arg5[%c17, %c0_15, %c0_16] : memref<18x18x16xf32, #tpu.memory_space<vmem>>, vector<1x18x16xf32>
    tpu.vector_store %arg5[%c17, %c0_15, %c0_16], %14 {strides = array<i32>} : memref<18x18x16xf32, #tpu.memory_space<vmem>>, vector<1x18x16xf32>,
    %cst_17 = arith.constant -1.000000e+30 : f32
    %16 = vector.broadcast %cst_17 : f32 to vector<18x1x16xf32>
    %c0_18 = arith.constant 0 : index
    %c0_19 = arith.constant 0 : index
    %c0_20 = arith.constant 0 : index
    %17 = vector.load %arg5[%c0_18, %c0_19, %c0_20] : memref<18x18x16xf32, #tpu.memory_space<vmem>>, vector<18x1x16xf32>
    tpu.vector_store %arg5[%c0_18, %c0_19, %c0_20], %16 {strides = array<i32>} : memref<18x18x16xf32, #tpu.memory_space<vmem>>, vector<18x1x16xf32>,
    %cst_21 = arith.constant -1.000000e+30 : f32
    %18 = vector.broadcast %cst_21 : f32 to vector<18x1x16xf32>
    %c0_22 = arith.constant 0 : index
    %c17_23 = arith.constant 17 : index
    %c0_24 = arith.constant 0 : index
    %19 = vector.load %arg5[%c0_22, %c17_23, %c0_24] : memref<18x18x16xf32, #tpu.memory_space<vmem>>, vector<18x1x16xf32>
    tpu.vector_store %arg5[%c0_22, %c17_23, %c0_24], %18 {strides = array<i32>} : memref<18x18x16xf32, #tpu.memory_space<vmem>>, vector<18x1x16xf32>,
    %c0_25 = arith.constant 0 : index
    %c0_26 = arith.constant 0 : index
    %c0_27 = arith.constant 0 : index
    %20 = vector.load %arg5[%c0_25, %c0_26, %c0_27] : memref<18x18x16xf32, #tpu.memory_space<vmem>>, vector<18x18x16xf32>
    %21 = vector.extract_strided_slice %20 {offsets = [0, 0, 0], sizes = [16, 18, 16], strides = [1, 1, 1]} : vector<18x18x16xf32> to vector<16x18x16xf32>
    %22 = vector.shape_cast %21 : vector<16x18x16xf32> to vector<8x2x18x16xf32>
    %23 = vector.extract_strided_slice %20 {offsets = [2, 0, 0], sizes = [16, 18, 16], strides = [1, 1, 1]} : vector<18x18x16xf32> to vector<16x18x16xf32>
    %24 = vector.shape_cast %23 : vector<16x18x16xf32> to vector<8x2x18x16xf32>
    %25 = vector.extract_strided_slice %22 {offsets = [0, 0, 0, 0], sizes = [8, 1, 18, 16], strides = [1, 1, 1, 1]} : vector<8x2x18x16xf32> to vector<8x1x18x16xf32>
    %26 = vector.shape_cast %25 : vector<8x1x18x16xf32> to vector<8x18x16xf32>
    %27 = vector.extract_strided_slice %22 {offsets = [0, 1, 0, 0], sizes = [8, 1, 18, 16], strides = [1, 1, 1, 1]} : vector<8x2x18x16xf32> to vector<8x1x18x16xf32>
    %28 = vector.shape_cast %27 : vector<8x1x18x16xf32> to vector<8x18x16xf32>
    %29 = arith.maximumf %26, %28 : vector<8x18x16xf32>
    %30 = vector.extract_strided_slice %24 {offsets = [0, 0, 0, 0], sizes = [8, 1, 18, 16], strides = [1, 1, 1, 1]} : vector<8x2x18x16xf32> to vector<8x1x18x16xf32>
    %31 = vector.shape_cast %30 : vector<8x1x18x16xf32> to vector<8x18x16xf32>
    %32 = arith.maximumf %29, %31 : vector<8x18x16xf32>
    %33 = vector.extract_strided_slice %32 {offsets = [0, 0, 0], sizes = [8, 16, 16], strides = [1, 1, 1]} : vector<8x18x16xf32> to vector<8x16x16xf32>
    %34 = vector.shape_cast %33 : vector<8x16x16xf32> to vector<8x8x2x16xf32>
    %35 = vector.extract_strided_slice %32 {offsets = [0, 2, 0], sizes = [8, 16, 16], strides = [1, 1, 1]} : vector<8x18x16xf32> to vector<8x16x16xf32>
    %36 = vector.shape_cast %35 : vector<8x16x16xf32> to vector<8x8x2x16xf32>
    %37 = vector.extract_strided_slice %34 {offsets = [0, 0, 0, 0], sizes = [8, 8, 1, 16], strides = [1, 1, 1, 1]} : vector<8x8x2x16xf32> to vector<8x8x1x16xf32>
    %38 = vector.shape_cast %37 : vector<8x8x1x16xf32> to vector<8x8x16xf32>
    %39 = vector.extract_strided_slice %34 {offsets = [0, 0, 1, 0], sizes = [8, 8, 1, 16], strides = [1, 1, 1, 1]} : vector<8x8x2x16xf32> to vector<8x8x1x16xf32>
    %40 = vector.shape_cast %39 : vector<8x8x1x16xf32> to vector<8x8x16xf32>
    %41 = arith.maximumf %38, %40 : vector<8x8x16xf32>
    %42 = vector.extract_strided_slice %36 {offsets = [0, 0, 0, 0], sizes = [8, 8, 1, 16], strides = [1, 1, 1, 1]} : vector<8x8x2x16xf32> to vector<8x8x1x16xf32>
    %43 = vector.shape_cast %42 : vector<8x8x1x16xf32> to vector<8x8x16xf32>
    %44 = arith.maximumf %41, %43 : vector<8x8x16xf32>
    %45 = vector.shape_cast %44 : vector<8x8x16xf32> to vector<1x8x8x16xf32>
    %46 = arith.truncf %45 : vector<1x8x8x16xf32> to vector<1x8x8x16xbf16>
    %c0_28 = arith.constant 0 : index
    %c0_29 = arith.constant 0 : index
    %c0_30 = arith.constant 0 : index
    %c0_31 = arith.constant 0 : index
    %47 = vector.load %arg4[%c0_28, %c0_29, %c0_30, %c0_31] : memref<1x8x8x16xbf16, #tpu.memory_space<vmem>>, vector<1x8x8x16xbf16>
    tpu.vector_store %arg4[%c0_28, %c0_29, %c0_30, %c0_31], %46 {strides = array<i32>} : memref<1x8x8x16xbf16, #tpu.memory_space<vmem>>, vector<1x8x8x16xbf16>,
    return
  }
  func.func @transform_0(%arg0: i32) -> (i32, i32, i32, i32) {
    %c0_i32 = arith.constant 0 : i32
    %c0_i32_0 = arith.constant 0 : i32
    %c0_i32_1 = arith.constant 0 : i32
    %c0_i32_2 = arith.constant 0 : i32
    return %arg0, %c0_i32, %c0_i32_0, %c0_i32_1 : i32, i32, i32, i32
  }
  func.func @transform_1(%arg0: i32) -> (i32, i32) {
    %c0_i32 = arith.constant 0 : i32
    %c0_i32_0 = arith.constant 0 : i32
    %c0_i32_1 = arith.constant 0 : i32
    return %c0_i32, %c0_i32_0 : i32, i32
  }
  func.func @transform_2(%arg0: i32) -> (i32, i32) {
    %c0_i32 = arith.constant 0 : i32
    %c0_i32_0 = arith.constant 0 : i32
    %c0_i32_1 = arith.constant 0 : i32
    return %c0_i32, %c0_i32_0 : i32, i32
  }
  func.func @transform_3(%arg0: i32) -> (i32, i32, i32, i32) {
    %c0_i32 = arith.constant 0 : i32
    %c0_i32_0 = arith.constant 0 : i32
    %c0_i32_1 = arith.constant 0 : i32
    %c0_i32_2 = arith.constant 0 : i32
    return %arg0, %c0_i32, %c0_i32_0, %c0_i32_1 : i32, i32, i32, i32
  }
}

module attributes {stable_mosaic.version = 11 : i64} {
  func.func @_transition_kernel(%arg0: i32, %arg1: i32, %arg2: memref<1x8x8x32xbf16, #tpu.memory_space<vmem>>, %arg3: memref<1x32xf32, #tpu.memory_space<vmem>>, %arg4: memref<1x32xf32, #tpu.memory_space<vmem>>, %arg5: memref<32x16xbf16, #tpu.memory_space<vmem>>, %arg6: memref<1x4x4x16xbf16, #tpu.memory_space<vmem>>) attributes {dimension_semantics = [#tpu.dimension_semantics<parallel>, #tpu.dimension_semantics<parallel>], iteration_bounds = array<i64: 2, 1>, scalar_prefetch = 0 : i64, scratch_operands = 0 : i64, tpu.core_type = #tpu.core_type<tc>, window_params = [{transform_indices = @transform_0, window_bounds = array<i64: 1, 8, 8, 32>}, {pipeline_mode = #tpu.pipeline_mode<synchronous>, transform_indices = @transform_1, window_bounds = array<i64: 1, 32>}, {pipeline_mode = #tpu.pipeline_mode<synchronous>, transform_indices = @transform_2, window_bounds = array<i64: 1, 32>}, {pipeline_mode = #tpu.pipeline_mode<synchronous>, transform_indices = @transform_3, window_bounds = array<i64: 32, 16>}, {transform_indices = @transform_4, window_bounds = array<i64: 1, 4, 4, 16>}]} {
    %c0 = arith.constant 0 : index
    %c0_0 = arith.constant 0 : index
    %c0_1 = arith.constant 0 : index
    %c0_2 = arith.constant 0 : index
    %0 = vector.load %arg2[%c0, %c0_0, %c0_1, %c0_2] : memref<1x8x8x32xbf16, #tpu.memory_space<vmem>>, vector<1x8x8x32xbf16>
    %1 = vector.shape_cast %0 : vector<1x8x8x32xbf16> to vector<8x8x32xbf16>
    %2 = arith.extf %1 : vector<8x8x32xbf16> to vector<8x8x32xf32>
    %c0_3 = arith.constant 0 : index
    %c0_4 = arith.constant 0 : index
    %3 = vector.load %arg3[%c0_3, %c0_4] : memref<1x32xf32, #tpu.memory_space<vmem>>, vector<1x32xf32>
    %4 = vector.shape_cast %3 : vector<1x32xf32> to vector<1x1x32xf32>
    %5 = vector.broadcast %4 : vector<1x1x32xf32> to vector<8x8x32xf32>
    %6 = arith.mulf %2, %5 : vector<8x8x32xf32>
    %c0_5 = arith.constant 0 : index
    %c0_6 = arith.constant 0 : index
    %7 = vector.load %arg4[%c0_5, %c0_6] : memref<1x32xf32, #tpu.memory_space<vmem>>, vector<1x32xf32>
    %8 = vector.shape_cast %7 : vector<1x32xf32> to vector<1x1x32xf32>
    %9 = vector.broadcast %8 : vector<1x1x32xf32> to vector<8x8x32xf32>
    %10 = arith.addf %6, %9 : vector<8x8x32xf32>
    %cst = arith.constant 0.000000e+00 : f32
    %11 = vector.broadcast %cst : f32 to vector<8x8x32xf32>
    %12 = arith.maximumf %10, %11 : vector<8x8x32xf32>
    %13 = vector.shape_cast %12 : vector<8x8x32xf32> to vector<4x2x8x32xf32>
    %14 = vector.extract_strided_slice %13 {offsets = [0, 0, 0, 0], sizes = [4, 1, 8, 32], strides = [1, 1, 1, 1]} : vector<4x2x8x32xf32> to vector<4x1x8x32xf32>
    %15 = vector.shape_cast %14 : vector<4x1x8x32xf32> to vector<4x8x32xf32>
    %16 = vector.extract_strided_slice %13 {offsets = [0, 1, 0, 0], sizes = [4, 1, 8, 32], strides = [1, 1, 1, 1]} : vector<4x2x8x32xf32> to vector<4x1x8x32xf32>
    %17 = vector.shape_cast %16 : vector<4x1x8x32xf32> to vector<4x8x32xf32>
    %18 = arith.addf %15, %17 : vector<4x8x32xf32>
    %19 = vector.shape_cast %18 : vector<4x8x32xf32> to vector<4x4x2x32xf32>
    %20 = vector.extract_strided_slice %19 {offsets = [0, 0, 0, 0], sizes = [4, 4, 1, 32], strides = [1, 1, 1, 1]} : vector<4x4x2x32xf32> to vector<4x4x1x32xf32>
    %21 = vector.shape_cast %20 : vector<4x4x1x32xf32> to vector<4x4x32xf32>
    %22 = vector.extract_strided_slice %19 {offsets = [0, 0, 1, 0], sizes = [4, 4, 1, 32], strides = [1, 1, 1, 1]} : vector<4x4x2x32xf32> to vector<4x4x1x32xf32>
    %23 = vector.shape_cast %22 : vector<4x4x1x32xf32> to vector<4x4x32xf32>
    %24 = arith.addf %21, %23 : vector<4x4x32xf32>
    %cst_7 = arith.constant 2.500000e-01 : f32
    %25 = vector.broadcast %cst_7 : f32 to vector<4x4x32xf32>
    %26 = arith.mulf %24, %25 : vector<4x4x32xf32>
    %27 = vector.shape_cast %26 : vector<4x4x32xf32> to vector<16x32xf32>
    %28 = arith.truncf %27 : vector<16x32xf32> to vector<16x32xbf16>
    %c0_8 = arith.constant 0 : index
    %c0_9 = arith.constant 0 : index
    %29 = vector.load %arg5[%c0_8, %c0_9] : memref<32x16xbf16, #tpu.memory_space<vmem>>, vector<32x16xbf16>
    %cst_10 = arith.constant dense<0.000000e+00> : vector<16x16xf32>
    %30 = tpu.matmul %28, %29, %cst_10 {dimension_numbers = #tpu.dot_dimension_numbers<[1], [0], [0], [1], [0, 0, 1, 1], [], []>} : vector<16x32xbf16>, vector<32x16xbf16>, vector<16x16xf32> -> vector<16x16xf32>
    %31 = vector.shape_cast %30 : vector<16x16xf32> to vector<1x4x4x16xf32>
    %32 = arith.truncf %31 : vector<1x4x4x16xf32> to vector<1x4x4x16xbf16>
    %c0_11 = arith.constant 0 : index
    %c0_12 = arith.constant 0 : index
    %c0_13 = arith.constant 0 : index
    %c0_14 = arith.constant 0 : index
    %33 = vector.load %arg6[%c0_11, %c0_12, %c0_13, %c0_14] : memref<1x4x4x16xbf16, #tpu.memory_space<vmem>>, vector<1x4x4x16xbf16>
    tpu.vector_store %arg6[%c0_11, %c0_12, %c0_13, %c0_14], %32 {strides = array<i32>} : memref<1x4x4x16xbf16, #tpu.memory_space<vmem>>, vector<1x4x4x16xbf16>,
    return
  }
  func.func @transform_0(%arg0: i32, %arg1: i32) -> (i32, i32, i32, i32) {
    %c0_i32 = arith.constant 0 : i32
    %c0_i32_0 = arith.constant 0 : i32
    %c0_i32_1 = arith.constant 0 : i32
    return %arg0, %arg1, %c0_i32, %c0_i32_0 : i32, i32, i32, i32
  }
  func.func @transform_1(%arg0: i32, %arg1: i32) -> (i32, i32) {
    %c0_i32 = arith.constant 0 : i32
    %c0_i32_0 = arith.constant 0 : i32
    %c0_i32_1 = arith.constant 0 : i32
    return %c0_i32, %c0_i32_0 : i32, i32
  }
  func.func @transform_2(%arg0: i32, %arg1: i32) -> (i32, i32) {
    %c0_i32 = arith.constant 0 : i32
    %c0_i32_0 = arith.constant 0 : i32
    %c0_i32_1 = arith.constant 0 : i32
    return %c0_i32, %c0_i32_0 : i32, i32
  }
  func.func @transform_3(%arg0: i32, %arg1: i32) -> (i32, i32) {
    %c0_i32 = arith.constant 0 : i32
    %c0_i32_0 = arith.constant 0 : i32
    %c0_i32_1 = arith.constant 0 : i32
    return %c0_i32, %c0_i32_0 : i32, i32
  }
  func.func @transform_4(%arg0: i32, %arg1: i32) -> (i32, i32, i32, i32) {
    %c0_i32 = arith.constant 0 : i32
    %c0_i32_0 = arith.constant 0 : i32
    %c0_i32_1 = arith.constant 0 : i32
    return %arg0, %arg1, %c0_i32, %c0_i32_0 : i32, i32, i32, i32
  }
}

module attributes {stable_mosaic.version = 11 : i64} {
  func.func @_dense_layer_kernel(%arg0: i32, %arg1: i32, %arg2: memref<1x8x8x32xbf16, #tpu.memory_space<vmem>>, %arg3: memref<1x32xf32, #tpu.memory_space<vmem>>, %arg4: memref<1x32xf32, #tpu.memory_space<vmem>>, %arg5: memref<32x16xbf16, #tpu.memory_space<vmem>>, %arg6: memref<1x16xf32, #tpu.memory_space<vmem>>, %arg7: memref<16x72xbf16, #tpu.memory_space<vmem>>, %arg8: memref<1x8x8x8xbf16, #tpu.memory_space<vmem>>, %arg9: memref<12x10x72xf32, #tpu.memory_space<vmem>>) attributes {dimension_semantics = [#tpu.dimension_semantics<parallel>, #tpu.dimension_semantics<parallel>], iteration_bounds = array<i64: 2, 1>, scalar_prefetch = 0 : i64, scratch_operands = 1 : i64, tpu.core_type = #tpu.core_type<tc>, window_params = [{transform_indices = @transform_0, window_bounds = array<i64: 1, 8, 8, 32>}, {pipeline_mode = #tpu.pipeline_mode<synchronous>, transform_indices = @transform_1, window_bounds = array<i64: 1, 32>}, {pipeline_mode = #tpu.pipeline_mode<synchronous>, transform_indices = @transform_2, window_bounds = array<i64: 1, 32>}, {pipeline_mode = #tpu.pipeline_mode<synchronous>, transform_indices = @transform_3, window_bounds = array<i64: 32, 16>}, {pipeline_mode = #tpu.pipeline_mode<synchronous>, transform_indices = @transform_4, window_bounds = array<i64: 1, 16>}, {pipeline_mode = #tpu.pipeline_mode<synchronous>, transform_indices = @transform_5, window_bounds = array<i64: 16, 72>}, {transform_indices = @transform_6, window_bounds = array<i64: 1, 8, 8, 8>}]} {
    %c8_i32 = arith.constant 8 : i32
    %0 = arith.muli %arg1, %c8_i32 : i32
    %c1_i32 = arith.constant 1 : i32
    %1 = arith.subi %0, %c1_i32 : i32
    %c0_i32 = arith.constant 0 : i32
    %c0_i32_0 = arith.constant 0 : i32
    %2 = arith.maxsi %c0_i32, %1 : i32
    %3 = arith.minsi %c0_i32_0, %2 : i32
    %4 = arith.subi %3, %0 : i32
    %c2_i32 = arith.constant 2 : i32
    %5 = arith.addi %4, %c2_i32 : i32
    %c0 = arith.constant 0 : index
    %6 = arith.index_cast %3 : i32 to index
    %c0_1 = arith.constant 0 : index
    %c0_2 = arith.constant 0 : index
    %7 = vector.load %arg2[%c0, %6, %c0_1, %c0_2] : memref<1x8x8x32xbf16, #tpu.memory_space<vmem>>, vector<1x8x8x32xbf16>
    %8 = vector.shape_cast %7 : vector<1x8x8x32xbf16> to vector<8x8x32xbf16>
    %9 = arith.extf %8 : vector<8x8x32xbf16> to vector<8x8x32xf32>
    %10 = vector.shape_cast %9 : vector<8x8x32xf32> to vector<64x32xf32>
    %c0_3 = arith.constant 0 : index
    %c0_4 = arith.constant 0 : index
    %11 = vector.load %arg3[%c0_3, %c0_4] : memref<1x32xf32, #tpu.memory_space<vmem>>, vector<1x32xf32>
    %12 = vector.broadcast %11 : vector<1x32xf32> to vector<64x32xf32>
    %13 = arith.mulf %10, %12 : vector<64x32xf32>
    %c0_5 = arith.constant 0 : index
    %c0_6 = arith.constant 0 : index
    %14 = vector.load %arg4[%c0_5, %c0_6] : memref<1x32xf32, #tpu.memory_space<vmem>>, vector<1x32xf32>
    %15 = vector.broadcast %14 : vector<1x32xf32> to vector<64x32xf32>
    %16 = arith.addf %13, %15 : vector<64x32xf32>
    %cst = arith.constant 0.000000e+00 : f32
    %17 = vector.broadcast %cst : f32 to vector<64x32xf32>
    %18 = arith.maximumf %16, %17 : vector<64x32xf32>
    %19 = arith.truncf %18 : vector<64x32xf32> to vector<64x32xbf16>
    %c0_7 = arith.constant 0 : index
    %c0_8 = arith.constant 0 : index
    %20 = vector.load %arg5[%c0_7, %c0_8] : memref<32x16xbf16, #tpu.memory_space<vmem>>, vector<32x16xbf16>
    %cst_9 = arith.constant dense<0.000000e+00> : vector<64x16xf32>
    %21 = tpu.matmul %19, %20, %cst_9 {dimension_numbers = #tpu.dot_dimension_numbers<[1], [0], [0], [1], [0, 0, 1, 1], [], []>} : vector<64x32xbf16>, vector<32x16xbf16>, vector<64x16xf32> -> vector<64x16xf32>
    %c0_10 = arith.constant 0 : index
    %c0_11 = arith.constant 0 : index
    %22 = vector.load %arg6[%c0_10, %c0_11] : memref<1x16xf32, #tpu.memory_space<vmem>>, vector<1x16xf32>
    %23 = vector.broadcast %22 : vector<1x16xf32> to vector<64x16xf32>
    %24 = arith.addf %21, %23 : vector<64x16xf32>
    %cst_12 = arith.constant 0.000000e+00 : f32
    %25 = vector.broadcast %cst_12 : f32 to vector<64x16xf32>
    %26 = arith.maximumf %24, %25 : vector<64x16xf32>
    %27 = arith.truncf %26 : vector<64x16xf32> to vector<64x16xbf16>
    %c0_13 = arith.constant 0 : index
    %c0_14 = arith.constant 0 : index
    %28 = vector.load %arg7[%c0_13, %c0_14] : memref<16x72xbf16, #tpu.memory_space<vmem>>, vector<16x72xbf16>
    %cst_15 = arith.constant dense<0.000000e+00> : vector<64x72xf32>
    %29 = tpu.matmul %27, %28, %cst_15 {dimension_numbers = #tpu.dot_dimension_numbers<[1], [0], [0], [1], [0, 0, 1, 1], [], []>} : vector<64x16xbf16>, vector<16x72xbf16>, vector<64x72xf32> -> vector<64x72xf32>
    %cst_16 = arith.constant 0.000000e+00 : f32
    %30 = vector.broadcast %cst_16 : f32 to vector<12x1x72xf32>
    %c0_17 = arith.constant 0 : index
    %c0_18 = arith.constant 0 : index
    %c0_19 = arith.constant 0 : index
    %31 = vector.load %arg9[%c0_17, %c0_18, %c0_19] : memref<12x10x72xf32, #tpu.memory_space<vmem>>, vector<12x1x72xf32>
    tpu.vector_store %arg9[%c0_17, %c0_18, %c0_19], %30 {strides = array<i32>} : memref<12x10x72xf32, #tpu.memory_space<vmem>>, vector<12x1x72xf32>,
    %c0_20 = arith.constant 0 : index
    %c9 = arith.constant 9 : index
    %c0_21 = arith.constant 0 : index
    %32 = vector.load %arg9[%c0_20, %c9, %c0_21] : memref<12x10x72xf32, #tpu.memory_space<vmem>>, vector<12x1x72xf32>
    tpu.vector_store %arg9[%c0_20, %c9, %c0_21], %30 {strides = array<i32>} : memref<12x10x72xf32, #tpu.memory_space<vmem>>, vector<12x1x72xf32>,
    %33 = vector.shape_cast %29 : vector<64x72xf32> to vector<8x8x72xf32>
    %34 = arith.index_cast %5 : i32 to index
    %c1 = arith.constant 1 : index
    %c0_22 = arith.constant 0 : index
    %35 = vector.load %arg9[%34, %c1, %c0_22] : memref<12x10x72xf32, #tpu.memory_space<vmem>>, vector<8x8x72xf32>
    tpu.vector_store %arg9[%34, %c1, %c0_22], %33 {strides = array<i32>} : memref<12x10x72xf32, #tpu.memory_space<vmem>>, vector<8x8x72xf32>,
    %cst_23 = arith.constant 0.000000e+00 : f32
    %36 = vector.broadcast %cst_23 : f32 to vector<1x10x72xf32>
    %c0_i32_24 = arith.constant 0 : i32
    %37 = arith.cmpi eq, %arg1, %c0_i32_24 : i32
    %38 = arith.extui %37 : i1 to i32
    %c0_i32_25 = arith.constant 0 : i32
    %39 = arith.cmpi ne, %38, %c0_i32_25 : i32
    scf.if %39 {
      %c1_50 = arith.constant 1 : index
      %c0_51 = arith.constant 0 : index
      %c0_52 = arith.constant 0 : index
      %65 = vector.load %arg9[%c1_50, %c0_51, %c0_52] : memref<12x10x72xf32, #tpu.memory_space<vmem>>, vector<1x10x72xf32>
      tpu.vector_store %arg9[%c1_50, %c0_51, %c0_52], %36 {strides = array<i32>} : memref<12x10x72xf32, #tpu.memory_space<vmem>>, vector<1x10x72xf32>,
    } else {
    }
    %c0_i32_26 = arith.constant 0 : i32
    %40 = arith.cmpi eq, %arg1, %c0_i32_26 : i32
    %41 = arith.extui %40 : i1 to i32
    %c0_i32_27 = arith.constant 0 : i32
    %42 = arith.cmpi ne, %41, %c0_i32_27 : i32
    scf.if %42 {
      %c10 = arith.constant 10 : index
      %c0_50 = arith.constant 0 : index
      %c0_51 = arith.constant 0 : index
      %65 = vector.load %arg9[%c10, %c0_50, %c0_51] : memref<12x10x72xf32, #tpu.memory_space<vmem>>, vector<1x10x72xf32>
      tpu.vector_store %arg9[%c10, %c0_50, %c0_51], %36 {strides = array<i32>} : memref<12x10x72xf32, #tpu.memory_space<vmem>>, vector<1x10x72xf32>,
    } else {
    }
    %cst_28 = arith.constant 0.000000e+00 : f32
    %43 = vector.broadcast %cst_28 : f32 to vector<8x8x8xf32>
    %c1_29 = arith.constant 1 : index
    %c0_30 = arith.constant 0 : index
    %c0_31 = arith.constant 0 : index
    %44 = vector.load %arg9[%c1_29, %c0_30, %c0_31] : memref<12x10x72xf32, #tpu.memory_space<vmem>>, vector<8x8x8xf32>
    %45 = arith.addf %43, %44 : vector<8x8x8xf32>
    %c1_32 = arith.constant 1 : index
    %c1_33 = arith.constant 1 : index
    %c8 = arith.constant 8 : index
    %46 = vector.load %arg9[%c1_32, %c1_33, %c8] : memref<12x10x72xf32, #tpu.memory_space<vmem>>, vector<8x8x8xf32>
    %47 = arith.addf %45, %46 : vector<8x8x8xf32>
    %c1_34 = arith.constant 1 : index
    %c2 = arith.constant 2 : index
    %c16 = arith.constant 16 : index
    %48 = vector.load %arg9[%c1_34, %c2, %c16] : memref<12x10x72xf32, #tpu.memory_space<vmem>>, vector<8x8x8xf32>
    %49 = arith.addf %47, %48 : vector<8x8x8xf32>
    %c2_35 = arith.constant 2 : index
    %c0_36 = arith.constant 0 : index
    %c24 = arith.constant 24 : index
    %50 = vector.load %arg9[%c2_35, %c0_36, %c24] : memref<12x10x72xf32, #tpu.memory_space<vmem>>, vector<8x8x8xf32>
    %51 = arith.addf %49, %50 : vector<8x8x8xf32>
    %c2_37 = arith.constant 2 : index
    %c1_38 = arith.constant 1 : index
    %c32 = arith.constant 32 : index
    %52 = vector.load %arg9[%c2_37, %c1_38, %c32] : memref<12x10x72xf32, #tpu.memory_space<vmem>>, vector<8x8x8xf32>
    %53 = arith.addf %51, %52 : vector<8x8x8xf32>
    %c2_39 = arith.constant 2 : index
    %c2_40 = arith.constant 2 : index
    %c40 = arith.constant 40 : index
    %54 = vector.load %arg9[%c2_39, %c2_40, %c40] : memref<12x10x72xf32, #tpu.memory_space<vmem>>, vector<8x8x8xf32>
    %55 = arith.addf %53, %54 : vector<8x8x8xf32>
    %c3 = arith.constant 3 : index
    %c0_41 = arith.constant 0 : index
    %c48 = arith.constant 48 : index
    %56 = vector.load %arg9[%c3, %c0_41, %c48] : memref<12x10x72xf32, #tpu.memory_space<vmem>>, vector<8x8x8xf32>
    %57 = arith.addf %55, %56 : vector<8x8x8xf32>
    %c3_42 = arith.constant 3 : index
    %c1_43 = arith.constant 1 : index
    %c56 = arith.constant 56 : index
    %58 = vector.load %arg9[%c3_42, %c1_43, %c56] : memref<12x10x72xf32, #tpu.memory_space<vmem>>, vector<8x8x8xf32>
    %59 = arith.addf %57, %58 : vector<8x8x8xf32>
    %c3_44 = arith.constant 3 : index
    %c2_45 = arith.constant 2 : index
    %c64 = arith.constant 64 : index
    %60 = vector.load %arg9[%c3_44, %c2_45, %c64] : memref<12x10x72xf32, #tpu.memory_space<vmem>>, vector<8x8x8xf32>
    %61 = arith.addf %59, %60 : vector<8x8x8xf32>
    %62 = vector.shape_cast %61 : vector<8x8x8xf32> to vector<1x8x8x8xf32>
    %63 = arith.truncf %62 : vector<1x8x8x8xf32> to vector<1x8x8x8xbf16>
    %c0_46 = arith.constant 0 : index
    %c0_47 = arith.constant 0 : index
    %c0_48 = arith.constant 0 : index
    %c0_49 = arith.constant 0 : index
    %64 = vector.load %arg8[%c0_46, %c0_47, %c0_48, %c0_49] : memref<1x8x8x8xbf16, #tpu.memory_space<vmem>>, vector<1x8x8x8xbf16>
    tpu.vector_store %arg8[%c0_46, %c0_47, %c0_48, %c0_49], %63 {strides = array<i32>} : memref<1x8x8x8xbf16, #tpu.memory_space<vmem>>, vector<1x8x8x8xbf16>,
    return
  }
  func.func @transform_0(%arg0: i32, %arg1: i32) -> (i32, i32, i32, i32) {
    %c0_i32 = arith.constant 0 : i32
    %c0_i32_0 = arith.constant 0 : i32
    %c0_i32_1 = arith.constant 0 : i32
    %c0_i32_2 = arith.constant 0 : i32
    return %arg0, %c0_i32, %c0_i32_0, %c0_i32_1 : i32, i32, i32, i32
  }
  func.func @transform_1(%arg0: i32, %arg1: i32) -> (i32, i32) {
    %c0_i32 = arith.constant 0 : i32
    %c0_i32_0 = arith.constant 0 : i32
    %c0_i32_1 = arith.constant 0 : i32
    return %c0_i32, %c0_i32_0 : i32, i32
  }
  func.func @transform_2(%arg0: i32, %arg1: i32) -> (i32, i32) {
    %c0_i32 = arith.constant 0 : i32
    %c0_i32_0 = arith.constant 0 : i32
    %c0_i32_1 = arith.constant 0 : i32
    return %c0_i32, %c0_i32_0 : i32, i32
  }
  func.func @transform_3(%arg0: i32, %arg1: i32) -> (i32, i32) {
    %c0_i32 = arith.constant 0 : i32
    %c0_i32_0 = arith.constant 0 : i32
    %c0_i32_1 = arith.constant 0 : i32
    return %c0_i32, %c0_i32_0 : i32, i32
  }
  func.func @transform_4(%arg0: i32, %arg1: i32) -> (i32, i32) {
    %c0_i32 = arith.constant 0 : i32
    %c0_i32_0 = arith.constant 0 : i32
    %c0_i32_1 = arith.constant 0 : i32
    return %c0_i32, %c0_i32_0 : i32, i32
  }
  func.func @transform_5(%arg0: i32, %arg1: i32) -> (i32, i32) {
    %c0_i32 = arith.constant 0 : i32
    %c0_i32_0 = arith.constant 0 : i32
    %c0_i32_1 = arith.constant 0 : i32
    return %c0_i32, %c0_i32_0 : i32, i32
  }
  func.func @transform_6(%arg0: i32, %arg1: i32) -> (i32, i32, i32, i32) {
    %c0_i32 = arith.constant 0 : i32
    %c0_i32_0 = arith.constant 0 : i32
    %c0_i32_1 = arith.constant 0 : i32
    return %arg0, %arg1, %c0_i32, %c0_i32_0 : i32, i32, i32, i32
  }
}

module attributes {stable_mosaic.version = 11 : i64} {
  func.func @_dense_layer_kernel(%arg0: i32, %arg1: i32, %arg2: memref<1x4x4x32xbf16, #tpu.memory_space<vmem>>, %arg3: memref<1x32xf32, #tpu.memory_space<vmem>>, %arg4: memref<1x32xf32, #tpu.memory_space<vmem>>, %arg5: memref<32x16xbf16, #tpu.memory_space<vmem>>, %arg6: memref<1x16xf32, #tpu.memory_space<vmem>>, %arg7: memref<16x72xbf16, #tpu.memory_space<vmem>>, %arg8: memref<1x4x4x8xbf16, #tpu.memory_space<vmem>>, %arg9: memref<8x6x72xf32, #tpu.memory_space<vmem>>) attributes {dimension_semantics = [#tpu.dimension_semantics<parallel>, #tpu.dimension_semantics<parallel>], iteration_bounds = array<i64: 2, 1>, scalar_prefetch = 0 : i64, scratch_operands = 1 : i64, tpu.core_type = #tpu.core_type<tc>, window_params = [{transform_indices = @transform_0, window_bounds = array<i64: 1, 4, 4, 32>}, {pipeline_mode = #tpu.pipeline_mode<synchronous>, transform_indices = @transform_1, window_bounds = array<i64: 1, 32>}, {pipeline_mode = #tpu.pipeline_mode<synchronous>, transform_indices = @transform_2, window_bounds = array<i64: 1, 32>}, {pipeline_mode = #tpu.pipeline_mode<synchronous>, transform_indices = @transform_3, window_bounds = array<i64: 32, 16>}, {pipeline_mode = #tpu.pipeline_mode<synchronous>, transform_indices = @transform_4, window_bounds = array<i64: 1, 16>}, {pipeline_mode = #tpu.pipeline_mode<synchronous>, transform_indices = @transform_5, window_bounds = array<i64: 16, 72>}, {transform_indices = @transform_6, window_bounds = array<i64: 1, 4, 4, 8>}]} {
    %c4_i32 = arith.constant 4 : i32
    %0 = arith.muli %arg1, %c4_i32 : i32
    %c1_i32 = arith.constant 1 : i32
    %1 = arith.subi %0, %c1_i32 : i32
    %c0_i32 = arith.constant 0 : i32
    %c0_i32_0 = arith.constant 0 : i32
    %2 = arith.maxsi %c0_i32, %1 : i32
    %3 = arith.minsi %c0_i32_0, %2 : i32
    %4 = arith.subi %3, %0 : i32
    %c2_i32 = arith.constant 2 : i32
    %5 = arith.addi %4, %c2_i32 : i32
    %c0 = arith.constant 0 : index
    %6 = arith.index_cast %3 : i32 to index
    %c0_1 = arith.constant 0 : index
    %c0_2 = arith.constant 0 : index
    %7 = vector.load %arg2[%c0, %6, %c0_1, %c0_2] : memref<1x4x4x32xbf16, #tpu.memory_space<vmem>>, vector<1x4x4x32xbf16>
    %8 = vector.shape_cast %7 : vector<1x4x4x32xbf16> to vector<4x4x32xbf16>
    %9 = arith.extf %8 : vector<4x4x32xbf16> to vector<4x4x32xf32>
    %10 = vector.shape_cast %9 : vector<4x4x32xf32> to vector<16x32xf32>
    %c0_3 = arith.constant 0 : index
    %c0_4 = arith.constant 0 : index
    %11 = vector.load %arg3[%c0_3, %c0_4] : memref<1x32xf32, #tpu.memory_space<vmem>>, vector<1x32xf32>
    %12 = vector.broadcast %11 : vector<1x32xf32> to vector<16x32xf32>
    %13 = arith.mulf %10, %12 : vector<16x32xf32>
    %c0_5 = arith.constant 0 : index
    %c0_6 = arith.constant 0 : index
    %14 = vector.load %arg4[%c0_5, %c0_6] : memref<1x32xf32, #tpu.memory_space<vmem>>, vector<1x32xf32>
    %15 = vector.broadcast %14 : vector<1x32xf32> to vector<16x32xf32>
    %16 = arith.addf %13, %15 : vector<16x32xf32>
    %cst = arith.constant 0.000000e+00 : f32
    %17 = vector.broadcast %cst : f32 to vector<16x32xf32>
    %18 = arith.maximumf %16, %17 : vector<16x32xf32>
    %19 = arith.truncf %18 : vector<16x32xf32> to vector<16x32xbf16>
    %c0_7 = arith.constant 0 : index
    %c0_8 = arith.constant 0 : index
    %20 = vector.load %arg5[%c0_7, %c0_8] : memref<32x16xbf16, #tpu.memory_space<vmem>>, vector<32x16xbf16>
    %cst_9 = arith.constant dense<0.000000e+00> : vector<16x16xf32>
    %21 = tpu.matmul %19, %20, %cst_9 {dimension_numbers = #tpu.dot_dimension_numbers<[1], [0], [0], [1], [0, 0, 1, 1], [], []>} : vector<16x32xbf16>, vector<32x16xbf16>, vector<16x16xf32> -> vector<16x16xf32>
    %c0_10 = arith.constant 0 : index
    %c0_11 = arith.constant 0 : index
    %22 = vector.load %arg6[%c0_10, %c0_11] : memref<1x16xf32, #tpu.memory_space<vmem>>, vector<1x16xf32>
    %23 = vector.broadcast %22 : vector<1x16xf32> to vector<16x16xf32>
    %24 = arith.addf %21, %23 : vector<16x16xf32>
    %cst_12 = arith.constant 0.000000e+00 : f32
    %25 = vector.broadcast %cst_12 : f32 to vector<16x16xf32>
    %26 = arith.maximumf %24, %25 : vector<16x16xf32>
    %27 = arith.truncf %26 : vector<16x16xf32> to vector<16x16xbf16>
    %c0_13 = arith.constant 0 : index
    %c0_14 = arith.constant 0 : index
    %28 = vector.load %arg7[%c0_13, %c0_14] : memref<16x72xbf16, #tpu.memory_space<vmem>>, vector<16x72xbf16>
    %cst_15 = arith.constant dense<0.000000e+00> : vector<16x72xf32>
    %29 = tpu.matmul %27, %28, %cst_15 {dimension_numbers = #tpu.dot_dimension_numbers<[1], [0], [0], [1], [0, 0, 1, 1], [], []>} : vector<16x16xbf16>, vector<16x72xbf16>, vector<16x72xf32> -> vector<16x72xf32>
    %cst_16 = arith.constant 0.000000e+00 : f32
    %30 = vector.broadcast %cst_16 : f32 to vector<8x1x72xf32>
    %c0_17 = arith.constant 0 : index
    %c0_18 = arith.constant 0 : index
    %c0_19 = arith.constant 0 : index
    %31 = vector.load %arg9[%c0_17, %c0_18, %c0_19] : memref<8x6x72xf32, #tpu.memory_space<vmem>>, vector<8x1x72xf32>
    tpu.vector_store %arg9[%c0_17, %c0_18, %c0_19], %30 {strides = array<i32>} : memref<8x6x72xf32, #tpu.memory_space<vmem>>, vector<8x1x72xf32>,
    %c0_20 = arith.constant 0 : index
    %c5 = arith.constant 5 : index
    %c0_21 = arith.constant 0 : index
    %32 = vector.load %arg9[%c0_20, %c5, %c0_21] : memref<8x6x72xf32, #tpu.memory_space<vmem>>, vector<8x1x72xf32>
    tpu.vector_store %arg9[%c0_20, %c5, %c0_21], %30 {strides = array<i32>} : memref<8x6x72xf32, #tpu.memory_space<vmem>>, vector<8x1x72xf32>,
    %33 = vector.shape_cast %29 : vector<16x72xf32> to vector<4x4x72xf32>
    %34 = arith.index_cast %5 : i32 to index
    %c1 = arith.constant 1 : index
    %c0_22 = arith.constant 0 : index
    %35 = vector.load %arg9[%34, %c1, %c0_22] : memref<8x6x72xf32, #tpu.memory_space<vmem>>, vector<4x4x72xf32>
    tpu.vector_store %arg9[%34, %c1, %c0_22], %33 {strides = array<i32>} : memref<8x6x72xf32, #tpu.memory_space<vmem>>, vector<4x4x72xf32>,
    %cst_23 = arith.constant 0.000000e+00 : f32
    %36 = vector.broadcast %cst_23 : f32 to vector<1x6x72xf32>
    %c0_i32_24 = arith.constant 0 : i32
    %37 = arith.cmpi eq, %arg1, %c0_i32_24 : i32
    %38 = arith.extui %37 : i1 to i32
    %c0_i32_25 = arith.constant 0 : i32
    %39 = arith.cmpi ne, %38, %c0_i32_25 : i32
    scf.if %39 {
      %c1_50 = arith.constant 1 : index
      %c0_51 = arith.constant 0 : index
      %c0_52 = arith.constant 0 : index
      %65 = vector.load %arg9[%c1_50, %c0_51, %c0_52] : memref<8x6x72xf32, #tpu.memory_space<vmem>>, vector<1x6x72xf32>
      tpu.vector_store %arg9[%c1_50, %c0_51, %c0_52], %36 {strides = array<i32>} : memref<8x6x72xf32, #tpu.memory_space<vmem>>, vector<1x6x72xf32>,
    } else {
    }
    %c0_i32_26 = arith.constant 0 : i32
    %40 = arith.cmpi eq, %arg1, %c0_i32_26 : i32
    %41 = arith.extui %40 : i1 to i32
    %c0_i32_27 = arith.constant 0 : i32
    %42 = arith.cmpi ne, %41, %c0_i32_27 : i32
    scf.if %42 {
      %c6 = arith.constant 6 : index
      %c0_50 = arith.constant 0 : index
      %c0_51 = arith.constant 0 : index
      %65 = vector.load %arg9[%c6, %c0_50, %c0_51] : memref<8x6x72xf32, #tpu.memory_space<vmem>>, vector<1x6x72xf32>
      tpu.vector_store %arg9[%c6, %c0_50, %c0_51], %36 {strides = array<i32>} : memref<8x6x72xf32, #tpu.memory_space<vmem>>, vector<1x6x72xf32>,
    } else {
    }
    %cst_28 = arith.constant 0.000000e+00 : f32
    %43 = vector.broadcast %cst_28 : f32 to vector<4x4x8xf32>
    %c1_29 = arith.constant 1 : index
    %c0_30 = arith.constant 0 : index
    %c0_31 = arith.constant 0 : index
    %44 = vector.load %arg9[%c1_29, %c0_30, %c0_31] : memref<8x6x72xf32, #tpu.memory_space<vmem>>, vector<4x4x8xf32>
    %45 = arith.addf %43, %44 : vector<4x4x8xf32>
    %c1_32 = arith.constant 1 : index
    %c1_33 = arith.constant 1 : index
    %c8 = arith.constant 8 : index
    %46 = vector.load %arg9[%c1_32, %c1_33, %c8] : memref<8x6x72xf32, #tpu.memory_space<vmem>>, vector<4x4x8xf32>
    %47 = arith.addf %45, %46 : vector<4x4x8xf32>
    %c1_34 = arith.constant 1 : index
    %c2 = arith.constant 2 : index
    %c16 = arith.constant 16 : index
    %48 = vector.load %arg9[%c1_34, %c2, %c16] : memref<8x6x72xf32, #tpu.memory_space<vmem>>, vector<4x4x8xf32>
    %49 = arith.addf %47, %48 : vector<4x4x8xf32>
    %c2_35 = arith.constant 2 : index
    %c0_36 = arith.constant 0 : index
    %c24 = arith.constant 24 : index
    %50 = vector.load %arg9[%c2_35, %c0_36, %c24] : memref<8x6x72xf32, #tpu.memory_space<vmem>>, vector<4x4x8xf32>
    %51 = arith.addf %49, %50 : vector<4x4x8xf32>
    %c2_37 = arith.constant 2 : index
    %c1_38 = arith.constant 1 : index
    %c32 = arith.constant 32 : index
    %52 = vector.load %arg9[%c2_37, %c1_38, %c32] : memref<8x6x72xf32, #tpu.memory_space<vmem>>, vector<4x4x8xf32>
    %53 = arith.addf %51, %52 : vector<4x4x8xf32>
    %c2_39 = arith.constant 2 : index
    %c2_40 = arith.constant 2 : index
    %c40 = arith.constant 40 : index
    %54 = vector.load %arg9[%c2_39, %c2_40, %c40] : memref<8x6x72xf32, #tpu.memory_space<vmem>>, vector<4x4x8xf32>
    %55 = arith.addf %53, %54 : vector<4x4x8xf32>
    %c3 = arith.constant 3 : index
    %c0_41 = arith.constant 0 : index
    %c48 = arith.constant 48 : index
    %56 = vector.load %arg9[%c3, %c0_41, %c48] : memref<8x6x72xf32, #tpu.memory_space<vmem>>, vector<4x4x8xf32>
    %57 = arith.addf %55, %56 : vector<4x4x8xf32>
    %c3_42 = arith.constant 3 : index
    %c1_43 = arith.constant 1 : index
    %c56 = arith.constant 56 : index
    %58 = vector.load %arg9[%c3_42, %c1_43, %c56] : memref<8x6x72xf32, #tpu.memory_space<vmem>>, vector<4x4x8xf32>
    %59 = arith.addf %57, %58 : vector<4x4x8xf32>
    %c3_44 = arith.constant 3 : index
    %c2_45 = arith.constant 2 : index
    %c64 = arith.constant 64 : index
    %60 = vector.load %arg9[%c3_44, %c2_45, %c64] : memref<8x6x72xf32, #tpu.memory_space<vmem>>, vector<4x4x8xf32>
    %61 = arith.addf %59, %60 : vector<4x4x8xf32>
    %62 = vector.shape_cast %61 : vector<4x4x8xf32> to vector<1x4x4x8xf32>
    %63 = arith.truncf %62 : vector<1x4x4x8xf32> to vector<1x4x4x8xbf16>
    %c0_46 = arith.constant 0 : index
    %c0_47 = arith.constant 0 : index
    %c0_48 = arith.constant 0 : index
    %c0_49 = arith.constant 0 : index
    %64 = vector.load %arg8[%c0_46, %c0_47, %c0_48, %c0_49] : memref<1x4x4x8xbf16, #tpu.memory_space<vmem>>, vector<1x4x4x8xbf16>
    tpu.vector_store %arg8[%c0_46, %c0_47, %c0_48, %c0_49], %63 {strides = array<i32>} : memref<1x4x4x8xbf16, #tpu.memory_space<vmem>>, vector<1x4x4x8xbf16>,
    return
  }
  func.func @transform_0(%arg0: i32, %arg1: i32) -> (i32, i32, i32, i32) {
    %c0_i32 = arith.constant 0 : i32
    %c0_i32_0 = arith.constant 0 : i32
    %c0_i32_1 = arith.constant 0 : i32
    %c0_i32_2 = arith.constant 0 : i32
    return %arg0, %c0_i32, %c0_i32_0, %c0_i32_1 : i32, i32, i32, i32
  }
  func.func @transform_1(%arg0: i32, %arg1: i32) -> (i32, i32) {
    %c0_i32 = arith.constant 0 : i32
    %c0_i32_0 = arith.constant 0 : i32
    %c0_i32_1 = arith.constant 0 : i32
    return %c0_i32, %c0_i32_0 : i32, i32
  }
  func.func @transform_2(%arg0: i32, %arg1: i32) -> (i32, i32) {
    %c0_i32 = arith.constant 0 : i32
    %c0_i32_0 = arith.constant 0 : i32
    %c0_i32_1 = arith.constant 0 : i32
    return %c0_i32, %c0_i32_0 : i32, i32
  }
  func.func @transform_3(%arg0: i32, %arg1: i32) -> (i32, i32) {
    %c0_i32 = arith.constant 0 : i32
    %c0_i32_0 = arith.constant 0 : i32
    %c0_i32_1 = arith.constant 0 : i32
    return %c0_i32, %c0_i32_0 : i32, i32
  }
  func.func @transform_4(%arg0: i32, %arg1: i32) -> (i32, i32) {
    %c0_i32 = arith.constant 0 : i32
    %c0_i32_0 = arith.constant 0 : i32
    %c0_i32_1 = arith.constant 0 : i32
    return %c0_i32, %c0_i32_0 : i32, i32
  }
  func.func @transform_5(%arg0: i32, %arg1: i32) -> (i32, i32) {
    %c0_i32 = arith.constant 0 : i32
    %c0_i32_0 = arith.constant 0 : i32
    %c0_i32_1 = arith.constant 0 : i32
    return %c0_i32, %c0_i32_0 : i32, i32
  }
  func.func @transform_6(%arg0: i32, %arg1: i32) -> (i32, i32, i32, i32) {
    %c0_i32 = arith.constant 0 : i32
    %c0_i32_0 = arith.constant 0 : i32
    %c0_i32_1 = arith.constant 0 : i32
    return %arg0, %arg1, %c0_i32, %c0_i32_0 : i32, i32, i32, i32
  }
}

module attributes {stable_mosaic.version = 11 : i64} {
  func.func @_head_kernel(%arg0: i32, %arg1: memref<1x4x4x32xbf16, #tpu.memory_space<vmem>>, %arg2: memref<1x1x32xf32, #tpu.memory_space<vmem>>) attributes {dimension_semantics = [#tpu.dimension_semantics<parallel>], iteration_bounds = array<i64: 2>, scalar_prefetch = 0 : i64, scratch_operands = 0 : i64, tpu.core_type = #tpu.core_type<tc>, window_params = [{transform_indices = @transform_0, window_bounds = array<i64: 1, 4, 4, 32>}, {transform_indices = @transform_1, window_bounds = array<i64: 1, 1, 32>}]} {
    %c0 = arith.constant 0 : index
    %c0_0 = arith.constant 0 : index
    %c0_1 = arith.constant 0 : index
    %c0_2 = arith.constant 0 : index
    %0 = vector.load %arg1[%c0, %c0_0, %c0_1, %c0_2] : memref<1x4x4x32xbf16, #tpu.memory_space<vmem>>, vector<1x4x4x32xbf16>
    %1 = vector.shape_cast %0 : vector<1x4x4x32xbf16> to vector<4x4x32xbf16>
    %2 = arith.extf %1 : vector<4x4x32xbf16> to vector<4x4x32xf32>
    %cst = arith.constant 0.000000e+00 : f32
    %3 = vector.broadcast %cst : f32 to vector<4x4x32xf32>
    %4 = arith.maximumf %2, %3 : vector<4x4x32xf32>
    %5 = vector.shape_cast %4 : vector<4x4x32xf32> to vector<16x32xf32>
    %cst_3 = arith.constant dense<0.000000e+00> : vector<32xf32>
    %6 = vector.multi_reduction <add>, %5, %cst_3 [0] : vector<16x32xf32> to vector<32xf32>
    %7 = vector.shape_cast %6 : vector<32xf32> to vector<1x32xf32>
    %cst_4 = arith.constant 6.250000e-02 : f32
    %8 = vector.broadcast %cst_4 : f32 to vector<1x32xf32>
    %9 = arith.mulf %7, %8 : vector<1x32xf32>
    %10 = vector.shape_cast %9 : vector<1x32xf32> to vector<1x1x32xf32>
    %c0_5 = arith.constant 0 : index
    %c0_6 = arith.constant 0 : index
    %c0_7 = arith.constant 0 : index
    %11 = vector.load %arg2[%c0_5, %c0_6, %c0_7] : memref<1x1x32xf32, #tpu.memory_space<vmem>>, vector<1x1x32xf32>
    tpu.vector_store %arg2[%c0_5, %c0_6, %c0_7], %10 {strides = array<i32>} : memref<1x1x32xf32, #tpu.memory_space<vmem>>, vector<1x1x32xf32>,
    return
  }
  func.func @transform_0(%arg0: i32) -> (i32, i32, i32, i32) {
    %c0_i32 = arith.constant 0 : i32
    %c0_i32_0 = arith.constant 0 : i32
    %c0_i32_1 = arith.constant 0 : i32
    %c0_i32_2 = arith.constant 0 : i32
    return %arg0, %c0_i32, %c0_i32_0, %c0_i32_1 : i32, i32, i32, i32
  }
  func.func @transform_1(%arg0: i32) -> (i32, i32, i32) {
    %c0_i32 = arith.constant 0 : i32
    %c0_i32_0 = arith.constant 0 : i32
    %c0_i32_1 = arith.constant 0 : i32
    return %arg0, %c0_i32, %c0_i32_0 : i32, i32, i32
  }
}

</mosaic_0001>

<bundles_post_ra>
// kernel: downsample_densenet_forward.10
= control target key start
LH: loop header
LB: loop body
LE: loop exit
PB: predicated region body
PF: predicated region fallthrough
CT: control target
= control target key end

     0   :  { %s856_s15 = smov 0   ;;  %s858_s16 = smov 0   ;;  %s917_s0 = inlined_call_operand.vmem [shape: bf16[2,8,8,32], index: 0, kind: input, shape index: {}]   ;;  %s918_s1 = inlined_call_operand.vmem [shape: f32[1,32], index: 1, kind: input, shape index: {}]   ;;  %s919_s2 = inlined_call_operand.vmem [shape: f32[1,32], index: 2, kind: input, shape index: {}]   ;;  %s920_s3 = inlined_call_operand.vmem [shape: bf16[32,16], index: 3, kind: input, shape index: {}]   ;;  %s921_s4 = inlined_call_operand.vmem [shape: bf16[2,4,4,16], index: 4, kind: output, shape index: {}]  }
   0x1   :  { %s860_s17 = smov 0  }
   0x2 LB: > { %s26_s18 = sadd.s32 1, %s822_s16  ;;  %p715_p0 = scmp.ge.s32.totalorder %s826_s17, 1  ;;  %s826_s17 = sphi %s860_s17, %s14_s17   ;;  %s822_s16 = sphi %s858_s16, %s923_s16   ;;  %s818_s15 = sphi %s856_s15, %s922_s15  }
   0x3   : > { %p28_p1 = scmp.ge.s32.totalorder %s26_s18, 2  ;;  %p183_p2 = scmp.lt.s32.totalorder %s826_s17, 3 }
   0x5   : > { %s925_s18 = smov (%p28_p1, %s26_s18), 0  ;;  %p184_p3 = pnand %p715_p0, %p183_p2 }
   0x6   : > { %v802_v0 = vld [vmem:[%s920_s3] sm:$0xff] (!%p184_p3)   ;;  %v304_v1 = vlaneseq (!%p184_p3)  ;;  %v828_v2 = vmov (!%p184_p3), 0.0   ;;  %v803_v3 = vld [vmem:[%s920_s3 + $0x8] sm:$0xff] (!%p184_p3)   ;;  %vm829_vm0 = vmmov (!%p184_p3), 0   ;;  %p218_p4 = scmp.lt.s32.totalorder (!%p184_p3), %s818_s15, 1  ;;  %vm517_vm1 = vcmask (!%p184_p3), 1041409  }
   0x7   : > { %187 = sbr.rel (%p184_p3) target bundleno = 284 (0x11c), region = 36  ;;  %767 = vmatprep.subr.bf16.mxu0 (!%p184_p3), %v828_v2  ;;  %771 = vmatprep.mubr.msk.bf16.mxu0 (!%p184_p3), %vm829_vm0, %v828_v2  ;;  %v830_v4 = vmov (!%p184_p3), 1983009808   ;;  %v720_v8 = vld [vmem:[%s918_s1] ss:$0 sm:$0xff] (!%p184_p3)  ;;  %vm520_vm2 = vcmask (!%p184_p3), 1042434  }
   0x8   : > { %768 = vmatpush3.bf16.msra.mxu0 (!%p184_p3), %v802_v0  ;;  %v302_v5 = vunpack.c.l.s4 (!%p184_p3), %v830_v4  ;;  %v305_v6 = vshrl.u32 (!%p184_p3), %v304_v1, 7  ;;  %v721_v22 = vld [vmem:[%s919_s2] ss:$0 sm:$0xff] (!%p184_p3)  ;;  %vm523_vm3 = vcmask (!%p184_p3), 1043459   ;;  %vm526_vm4 = vcmask (!%p184_p3), 1044484  }
   0x9   : > { %769 = vmatprep.subr.bf16.mxu0 (!%p184_p3), %v828_v2  ;;  %vm529_vm5 = vcmask (!%p184_p3), 1045509   ;;  %vm532_vm6 = vcmask (!%p184_p3), 1046534   ;;  %vm535_vm7 = vcmask (!%p184_p3), 1047559   ;;  %vm564_vm8 = vcmask (!%p184_p3), 261120  }
   0xa   : > { %v303_v7 = vunpack.c.0.s8 (!%p184_p3), %v302_v5  ;;  %vm619_vm9 = vcmask (!%p184_p3), 123904  }
   0xc   : > { %770 = vmatpush3.bf16.msra.mxu0 (!%p184_p3), %v803_v3  ;;  %v306_v12 = vsub.s32 (!%p184_p3), %v303_v7, %v305_v6 }
   0xe   : > { %s927_s15 = smov (!%p218_p4, %s818_s15), 1 }
   0xf   : > { %s743_s23 = sshll.u32 %s927_s15, 5  ;;  %s744_s5 = sshll.u32 %s927_s15, 3 }
  0x10   : > { %s225_s26 = scalar_lea.vmem %s917_s0, %s743_s23  ;;  %s235_s8 = scalar_lea.vmem %s921_s4, %s744_s5 }
  0x11   : > { %v746_v9 = vld [vmem:[%s225_s26] sm:$0xff]   ;;  %v761_v10 = vld [vmem:[%s225_s26 + $0x8] sm:$0xff]   ;;  %v762_v11 = vld [vmem:[%s225_s26 + $0x10] sm:$0xff]  }
  0x12   : > { %v747_v13 = vunpack.c.l.bf16 %v746_v9  ;;  %v748_v14 = vunpack.c.h.bf16 %v746_v9  ;;  %v751_v15 = vunpack.c.l.bf16 %v761_v10  ;;  %v752_v16 = vunpack.c.h.bf16 %v761_v10  ;;  %v763_v17 = vld [vmem:[%s225_s26 + $0x18] sm:$0xff]  }
  0x13   : > { %v755_v18 = vunpack.c.l.bf16 %v762_v11  ;;  %v756_v19 = vunpack.c.h.bf16 %v762_v11  ;;  %v759_v20 = vunpack.c.l.bf16 %v763_v17  ;;  %v760_v21 = vunpack.c.h.bf16 %v763_v17 }
  0x14   : > { %v261_v23 = vmul.f32 %v747_v13, %v720_v8  ;;  %v262_v24 = vmul.f32 %v748_v14, %v720_v8  ;;  %v263_v25 = vmul.f32 %v751_v15, %v720_v8  ;;  %v264_v26 = vmul.f32 %v752_v16, %v720_v8 }
  0x15   : > { %v265_v27 = vmul.f32 %v755_v18, %v720_v8  ;;  %v266_v28 = vmul.f32 %v756_v19, %v720_v8  ;;  %v267_v29 = vmul.f32 %v759_v20, %v720_v8  ;;  %v268_v30 = vmul.f32 %v760_v21, %v720_v8 }
  0x16   : > { %v276_v31 = vadd.f32 %v721_v22, %v261_v23  ;;  %v277_v32 = vadd.f32 %v721_v22, %v262_v24  ;;  %v278_v33 = vadd.f32 %v721_v22, %v263_v25  ;;  %v279_v34 = vadd.f32 %v721_v22, %v264_v26 }
  0x17   : > { %v280_v35 = vadd.f32 %v721_v22, %v265_v27  ;;  %v281_v36 = vadd.f32 %v721_v22, %v266_v28  ;;  %v282_v37 = vadd.f32 %v721_v22, %v267_v29  ;;  %v283_v38 = vadd.f32 %v721_v22, %v268_v30 }
  0x18   : > { %v284_v39 = vmax.f32 %v276_v31, 0.0  ;;  %v285_v40 = vmax.f32 %v277_v32, 0.0  ;;  %v286_v41 = vmax.f32 %v278_v33, 0.0  ;;  %v287_v42 = vmax.f32 %v279_v34, 0.0 }
  0x19   : > { %v288_v43 = vmax.f32 %v280_v35, 0.0  ;;  %v289_v44 = vmax.f32 %v281_v36, 0.0  ;;  %v290_v45 = vmax.f32 %v282_v37, 0.0  ;;  %v291_v46 = vmax.f32 %v283_v38, 0.0 }
  0x1a   : > { %v292_v47 = vadd.f32 %v285_v40, %v284_v39  ;;  %v293_v48 = vadd.f32 %v287_v42, %v286_v41 }
  0x1b   : > { %v294_v49 = vadd.f32 %v289_v44, %v288_v43  ;;  %v295_v50 = vadd.f32 %v291_v46, %v290_v45 }
  0x1c   : > { %v300_v51 = vcombine.high %v292_v47, %v292_v47  ;;  %v307_v52 = vrot.slane %v292_v47, %v306_v12  ;;  %v317_v53 = vcombine.high %v293_v48, %v293_v48  ;;  %v324_v54 = vrot.slane %v293_v48, %v306_v12 }
  0x1d   : > { %v334_v55 = vcombine.high %v294_v49, %v294_v49  ;;  %v341_v56 = vrot.slane %v294_v49, %v306_v12  ;;  %v351_v57 = vcombine.high %v295_v50, %v295_v50  ;;  %v358_v58 = vrot.slane %v295_v50, %v306_v12 }
  0x1e   : > { %v314_v59 = vrot.slane %v300_v51, %v306_v12  ;;  %v315_v60 = vcombine.high %v307_v52, %v307_v52  ;;  %v331_v61 = vrot.slane %v317_v53, %v306_v12  ;;  %v332_v62 = vcombine.high %v324_v54, %v324_v54 }
  0x1f   : > { %v348_v63 = vrot.slane %v334_v55, %v306_v12  ;;  %v349_v0 = vcombine.high %v341_v56, %v341_v56  ;;  %v365_v1 = vrot.slane %v351_v57, %v306_v12  ;;  %v366_v4 = vcombine.high %v358_v58, %v358_v58 }
  0x20   : > { %v316_v2 = vcombine.high %v314_v59, %v314_v59  ;;  %v333_v3 = vcombine.high %v331_v61, %v331_v61  ;;  %v722_v6 = vrot.slane %v307_v52, 9  ;;  %v723_v7 = vrot.slane %v315_v60, 9 }
  0x21   : > { %v350_v5 = vcombine.high %v348_v63, %v348_v63  ;;  %v724_v8 = vrot.slane %v314_v59, 9  ;;  %v367_v9 = vcombine.high %v365_v1, %v365_v1  ;;  %v726_v11 = vrot.slane %v324_v54, 9 }
  0x22   : > { %v725_v10 = vrot.slane %v316_v2, 9  ;;  %v727_v13 = vrot.slane %v332_v62, 9  ;;  %v728_v14 = vrot.slane %v331_v61, 9  ;;  %v731_v15 = vrot.slane %v349_v0, 9 }
  0x23   : > { %v732_v16 = vrot.slane %v348_v63, 9  ;;  %v733_v17 = vrot.slane %v350_v5, 9  ;;  %v729_v18 = vrot.slane %v333_v3, 9  ;;  %v730_v19 = vrot.slane %v341_v56, 9 }
  0x24   : > { %v734_v20 = vrot.slane %v358_v58, 9  ;;  %v735_v21 = vrot.slane %v366_v4, 9  ;;  %v736_v12 = vrot.slane %v365_v1, 9  ;;  %v433_v22 = vadd.f32 %v723_v7, %v315_v60 }
  0x25   : > { %v434_v23 = vadd.f32 %v724_v8, %v314_v59  ;;  %v435_v24 = vadd.f32 %v725_v10, %v316_v2  ;;  %v737_v25 = vrot.slane %v367_v9, 9  ;;  %v432_v26 = vadd.f32 %v722_v6, %v307_v52 }
  0x26   : > { %v436_v27 = vadd.f32 %v726_v11, %v324_v54  ;;  %v437_v28 = vadd.f32 %v727_v13, %v332_v62  ;;  %v438_v29 = vadd.f32 %v728_v14, %v331_v61  ;;  %v441_v30 = vadd.f32 %v731_v15, %v349_v0 }
  0x27   : > { %v442_v31 = vadd.f32 %v732_v16, %v348_v63  ;;  %v443_v32 = vadd.f32 %v733_v17, %v350_v5  ;;  %v439_v33 = vadd.f32 %v729_v18, %v333_v3  ;;  %v440_v34 = vadd.f32 %v730_v19, %v341_v56 }
  0x28   : > { %v444_v35 = vadd.f32 %v734_v20, %v358_v58  ;;  %v445_v36 = vadd.f32 %v735_v21, %v366_v4  ;;  %v446_v37 = vadd.f32 %v736_v12, %v365_v1  ;;  %v449_v38 = vmul.f32 0.25, %v433_v22 }
  0x29   : > { %v450_v39 = vmul.f32 0.25, %v434_v23  ;;  %v451_v40 = vmul.f32 0.25, %v435_v24  ;;  %v447_v41 = vadd.f32 %v737_v25, %v367_v9  ;;  %v448_v42 = vmul.f32 0.25, %v432_v26 }
  0x2a   : > { %v452_v43 = vmul.f32 0.25, %v436_v27  ;;  %v453_v44 = vmul.f32 0.25, %v437_v28  ;;  %v454_v45 = vmul.f32 0.25, %v438_v29  ;;  %v457_v46 = vmul.f32 0.25, %v441_v30 }
  0x2b   : > { %v458_v47 = vmul.f32 0.25, %v442_v31  ;;  %v459_v48 = vmul.f32 0.25, %v443_v32  ;;  %v455_v49 = vmul.f32 0.25, %v439_v33  ;;  %v456_v50 = vmul.f32 0.25, %v440_v34 }
  0x2c   : > { %v460_v51 = vmul.f32 0.25, %v444_v35  ;;  %v461_v52 = vmul.f32 0.25, %v445_v36  ;;  %v462_v53 = vmul.f32 0.25, %v446_v37  ;;  %v465_v54 = vpack.c.bf16 %v449_v38, %v449_v38 }
  0x2d   : > { %v466_v55 = vpack.c.bf16 %v450_v39, %v450_v39  ;;  %v467_v56 = vpack.c.bf16 %v451_v40, %v451_v40  ;;  %v463_v57 = vmul.f32 0.25, %v447_v41  ;;  %v464_v58 = vpack.c.bf16 %v448_v42, %v448_v42 }
  0x2e   : > { %v468_v59 = vpack.c.bf16 %v452_v43, %v452_v43  ;;  %v469_v60 = vpack.c.bf16 %v453_v44, %v453_v44  ;;  %v470_v61 = vpack.c.bf16 %v454_v45, %v454_v45  ;;  %v473_v62 = vpack.c.bf16 %v457_v46, %v457_v46 }
  0x2f   : > { %v474_v63 = vpack.c.bf16 %v458_v47, %v458_v47  ;;  %v475_v0 = vpack.c.bf16 %v459_v48, %v459_v48  ;;  %v471_v1 = vpack.c.bf16 %v455_v49, %v455_v49  ;;  %v472_v2 = vpack.c.bf16 %v456_v50, %v456_v50 }
  0x30   : > { %v476_v3 = vpack.c.bf16 %v460_v51, %v460_v51  ;;  %v477_v4 = vpack.c.bf16 %v461_v52, %v461_v52  ;;  %v478_v5 = vpack.c.bf16 %v462_v53, %v462_v53  ;;  %v501_v6 = vunpack.c.l.b16 %v465_v54 }
  0x31   : > { %v502_v7 = vunpack.c.l.b16 %v466_v55  ;;  %v503_v8 = vunpack.c.l.b16 %v467_v56  ;;  %v479_v9 = vpack.c.bf16 %v463_v57, %v463_v57  ;;  %v500_v10 = vunpack.c.l.b16 %v464_v58 }
  0x32   : > { %v504_v11 = vunpack.c.l.b16 %v468_v59  ;;  %v505_v13 = vunpack.c.l.b16 %v469_v60  ;;  %v506_v14 = vunpack.c.l.b16 %v470_v61  ;;  %v509_v15 = vunpack.c.l.b16 %v473_v62 }
  0x33   : > { %v510_v16 = vunpack.c.l.b16 %v474_v63  ;;  %v511_v17 = vunpack.c.l.b16 %v475_v0  ;;  %v507_v18 = vunpack.c.l.b16 %v471_v1  ;;  %v508_v19 = vunpack.c.l.b16 %v472_v2 }
  0x34   : > { %v512_v20 = vunpack.c.l.b16 %v476_v3  ;;  %v513_v21 = vunpack.c.l.b16 %v477_v4  ;;  %v514_v12 = vunpack.c.l.b16 %v478_v5  ;;  %v516_v22 = vrot.slane %v501_v6, 7 }
  0x35   : > { %v519_v23 = vrot.slane %v502_v7, 6  ;;  %v522_v24 = vrot.slane %v503_v8, 5  ;;  %v515_v25 = vunpack.c.l.b16 %v479_v9  ;;  %v525_v26 = vrot.slane %v504_v11, 4 }
  0x36   : > { %v528_v27 = vrot.slane %v505_v13, 3  ;;  %v537_v28 = vrot.slane %v509_v15, 7  ;;  %v518_v29 = vsel %vm517_vm1, %v516_v22, %v500_v10  ;;  %v539_v30 = vrot.slane %v510_v16, 6 }
  0x37   : > { %v541_v31 = vrot.slane %v511_v17, 5  ;;  %v543_v32 = vrot.slane %v512_v20, 4  ;;  %v521_v33 = vsel %vm520_vm2, %v519_v23, %v518_v29  ;;  %v531_v34 = vrot.slane %v506_v14, 2 }
  0x38   : > { %v538_v35 = vsel %vm517_vm1, %v537_v28, %v508_v19  ;;  %v545_v36 = vrot.slane %v513_v21, 3  ;;  %v524_v37 = vsel %vm523_vm3, %v522_v24, %v521_v33  ;;  %v534_v38 = vrot.slane %v507_v18, 1 }
  0x39   : > { %v540_v39 = vsel %vm520_vm2, %v539_v30, %v538_v35  ;;  %v547_v40 = vrot.slane %v514_v12, 2  ;;  %v527_v41 = vsel %vm526_vm4, %v525_v26, %v524_v37  ;;  %v549_v43 = vrot.slane %v515_v25, 1 }
  0x3a   : > { %v542_v42 = vsel %vm523_vm3, %v541_v31, %v540_v39  ;;  %v530_v44 = vsel %vm529_vm5, %v528_v27, %v527_v41 }
  0x3b   : > { %v544_v45 = vsel %vm526_vm4, %v543_v32, %v542_v42  ;;  %v533_v46 = vsel %vm532_vm6, %v531_v34, %v530_v44 }
  0x3c   : > { %v546_v47 = vsel %vm529_vm5, %v545_v36, %v544_v45  ;;  %v536_v48 = vsel %vm535_vm7, %v534_v38, %v533_v46 }
  0x3d   : > { %v548_v49 = vsel %vm532_vm6, %v547_v40, %v546_v47 }
  0x3e   : > { %v550_v50 = vsel %vm535_vm7, %v549_v43, %v548_v49 }
  0x3f   : > { %v551_v51 = vpack.c.b16 %v550_v50, %v536_v48 }
  0x41   : > { %772 = vmatmul.mubr.msk.bf16.vlgmr.msra.gmra.mrb[0].mxu0 %vm564_vm8, %v551_v51 }
 0x114   : > { %v602_v52 = vpop.f32.mrb[0].mxu0 }
 0x115   : > { %v611_v53 = vcombine.high %v602_v52, %v602_v52  ;;  %v615_v54 = vpack.c.bf16 %v602_v52, %v602_v52  ;;  %v773_v55 = vpop.f32.mrb[1].mxu0 }
 0x116   : > { %v605_v56 = vpop.f32.mrb[2].mxu0 }
 0x117   : > { %v616_v57 = vpack.c.bf16 %v611_v53, %v611_v53  ;;  %620 = vst.msk [vmem:[%s235_s8] sm:$0x3] %vm619_vm9, %v615_v54  ;;  %v612_v58 = vcombine.high %v605_v56, %v605_v56  ;;  %v617_v59 = vpack.c.bf16 %v605_v56, %v605_v56  ;;  %v774_v60 = vpop.f32.mrb[3].mxu0 }
 0x119   : > { %621 = vst.msk [vmem:[%s235_s8 + $0x2] sm:$0x3] %vm619_vm9, %v616_v57  ;;  %v618_v61 = vpack.c.bf16 %v612_v58, %v612_v58  ;;  %622 = vst.msk [vmem:[%s235_s8 + $0x4] sm:$0x3] %vm619_vm9, %v617_v59 }
 0x11b   : > { %623 = vst.msk [vmem:[%s235_s8 + $0x6] sm:$0x3] %vm619_vm9, %v618_v61 }
 0x11c PF: > { %s14_s17 = sadd.s32 1, %s826_s17   ;;  %s922_s15 = smov %s822_s16 }
 0x11d   : > { %p11_p5 = scmp.ge.s32.totalorder %s14_s17, 4   ;;  %s923_s16 = smov %s925_s18 }
 0x11f   :  { %13 = sbr.rel (!%p11_p5) target bundleno = 2 (0x2), region = 66 }

// kernel: downsample_densenet_forward.8
= control target key start
LH: loop header
LB: loop body
LE: loop exit
PB: predicated region body
PF: predicated region fallthrough
CT: control target
= control target key end

     0   :  { %s1287_s21 = smov 0   ;;  %s1289_s22 = smov 0   ;;  %s1513_s0 = inlined_call_operand.vmem [shape: bf16[2,8,8,32], index: 0, kind: input, shape index: {}]   ;;  %s1514_s1 = inlined_call_operand.vmem [shape: f32[1,32], index: 1, kind: input, shape index: {}]   ;;  %s1515_s2 = inlined_call_operand.vmem [shape: f32[1,32], index: 2, kind: input, shape index: {}]   ;;  %s1516_s3 = inlined_call_operand.vmem [shape: bf16[32,16], index: 3, kind: input, shape index: {}]   ;;  %s1517_s4 = inlined_call_operand.vmem [shape: f32[1,16], index: 4, kind: input, shape index: {}]   ;;  %s1518_s5 = inlined_call_operand.vmem [shape: bf16[16,72], index: 5, kind: input, shape index: {}]   ;;  %s1519_s6 = inlined_call_operand.vmem [shape: bf16[2,8,8,8], index: 6, kind: output, shape index: {}]  }
   0x1   :  { %s1291_s23 = smov 0  }
   0x2 LB: > { %s28_s24 = sadd.s32 1, %s1237_s22  ;;  %p1100_p0 = scmp.ge.s32.totalorder %s1241_s23, 1  ;;  %s1241_s23 = sphi %s1291_s23, %s16_s23   ;;  %s1237_s22 = sphi %s1289_s22, %s1521_s22   ;;  %s1233_s21 = sphi %s1287_s21, %s1520_s21  }
   0x3   : > { %p30_p1 = scmp.ge.s32.totalorder %s28_s24, 2  ;;  %p226_p2 = scmp.lt.s32.totalorder %s1241_s23, 3 }
   0x5   : > { %s1523_s24 = smov (%p30_p1, %s28_s24), 0  ;;  %p227_p3 = pnand %p1100_p0, %p226_p2 }
   0x6   : > { %v1216_v0 = vld [vmem:[%s1516_s3] sm:$0xff] (!%p227_p3)   ;;  %p260_p4 = scmp.lt.s32.totalorder (!%p227_p3), %s1233_s21, 1  ;;  %v1217_v1 = vld [vmem:[%s1516_s3 + $0x8] sm:$0xff] (!%p227_p3)   ;;  %vm367_vm0 = vcmask (!%p227_p3), 261120   ;;  %vm543_vm1 = vcmask (!%p227_p3), 581632   ;;  %vm570_vm2 = vcmask (!%p227_p3), 588800  }
   0x7   : > { %230 = sbr.rel (%p227_p3) target bundleno = 708 (0x2c4), region = 44  ;;  %1161 = vmatprep.subr.bf16.mxu0 (!%p227_p3), %v1216_v0  ;;  %v1105_v2 = vld [vmem:[%s1514_s1] ss:$0 sm:$0xff] (!%p227_p3)  ;;  %vm585_vm3 = vcmask (!%p227_p3), 582656   ;;  %v1243_v45 = vmov (!%p227_p3), 0.0   ;;  %s1244_s15 = smov (!%p227_p3), 120  }
   0x8   : > { %1162 = vmatpush3.bf16.msra.mxu0 (!%p227_p3), %v1216_v0  ;;  %v1106_v11 = vld [vmem:[%s1515_s2] ss:$0 sm:$0xff] (!%p227_p3)  ;;  %545 = vst.msk [vmem:[#allocation2 + $0x10] sm:$0x1] (!%p227_p3), %vm543_vm1, %v1243_v45  ;;  %557 = vst.msk [vmem:[#allocation2 + $0x19] sm:$0x1] (!%p227_p3), %vm543_vm1, %v1243_v45 }
   0x9   : > { %1163 = vmatprep.subr.bf16.mxu0 (!%p227_p3), %v1217_v1  ;;  %v1218_v44 = vld [vmem:[%s1518_s5] sm:$0xff] (!%p227_p3)   ;;  %546 = vst.msk [vmem:[#allocation2 + $0x20] sm:$0x1] (!%p227_p3), %vm543_vm1, %v1243_v45  ;;  %547 = vst.msk [vmem:[#allocation2 + $0x30] sm:$0x1] (!%p227_p3), %vm543_vm1, %v1243_v45  ;;  %vm465_vm4 = vcmask (!%p227_p3), 130048  }
   0xa   : > { %1173 = vmatprep.subr.bf16.mxu1 (!%p227_p3), %v1218_v44  ;;  %548 = vst.msk [vmem:[#allocation2 + $0x40] sm:$0x1] (!%p227_p3), %vm543_vm1, %v1243_v45  ;;  %549 = vst.msk [vmem:[#allocation2 + $0x50] sm:$0x1] (!%p227_p3), %vm543_vm1, %v1243_v45  ;;  %v1107_v47 = vld [vmem:[%s1517_s4] ss:$0 sm:$0xff] (!%p227_p3) }
   0xb   : > { %1174 = vmatpush3.bf16.msra.mxu1 (!%p227_p3), %v1218_v44  ;;  %550 = vst.msk [vmem:[#allocation2 + $0x60] sm:$0x1] (!%p227_p3), %vm543_vm1, %v1243_v45  ;;  %551 = vst.msk [vmem:[#allocation2 + $0x70] sm:$0x1] (!%p227_p3), %vm543_vm1, %v1243_v45  ;;  %s1245_s18 = smov (!%p227_p3), 80   ;;  %s1246_s19 = smov (!%p227_p3), 112  }
   0xc   : > { %1164 = vmatpush3.bf16.msra.mxu0 (!%p227_p3), %v1217_v1  ;;  %552 = vst.msk [vmem:[#allocation2 + $0x80] sm:$0x1] (!%p227_p3), %vm543_vm1, %v1243_v45  ;;  %553 = vst.msk [vmem:[#allocation2 + $0x90] sm:$0x1] (!%p227_p3), %vm543_vm1, %v1243_v45  ;;  %s1247_s20 = smov (!%p227_p3), 72   ;;  %s1248_s25 = smov (!%p227_p3), 104  }
   0xd   : > { %554 = vst.msk [vmem:[#allocation2 + $0xa0] sm:$0x1] (!%p227_p3), %vm543_vm1, %v1243_v45  ;;  %558 = vst.msk [vmem:[#allocation2 + $0x29] sm:$0x1] (!%p227_p3), %vm543_vm1, %v1243_v45  ;;  %s1249_s26 = smov (!%p227_p3), 96   ;;  %s1250_s27 = smov (!%p227_p3), 88  }
   0xe   : > { %s1525_s21 = smov (!%p260_p4, %s1233_s21), 1  ;;  %559 = vst.msk [vmem:[#allocation2 + $0x39] sm:$0x1] %vm543_vm1, %v1243_v45  ;;  %560 = vst.msk [vmem:[#allocation2 + $0x49] sm:$0x1] %vm543_vm1, %v1243_v45  ;;  %s1251_s28 = smov 64  }
   0xf   : > { %s1129_s29 = sshll.u32 %s1525_s21, 5  ;;  %561 = vst.msk [vmem:[#allocation2 + $0x59] sm:$0x1] %vm543_vm1, %v1243_v45  ;;  %562 = vst.msk [vmem:[#allocation2 + $0x69] sm:$0x1] %vm543_vm1, %v1243_v45  ;;  %vm1001_vm5 = vcmask 60416  }
  0x10   : > { %s264_s8 = scalar_lea.vmem %s1513_s0, %s1129_s29  ;;  %563 = vst.msk [vmem:[#allocation2 + $0x79] sm:$0x1] %vm543_vm1, %v1243_v45  ;;  %564 = vst.msk [vmem:[#allocation2 + $0x89] sm:$0x1] %vm543_vm1, %v1243_v45 }
  0x11   : > { %v1132_v3 = vld [vmem:[%s264_s8] sm:$0xff]   ;;  %v1147_v4 = vld [vmem:[%s264_s8 + $0x8] sm:$0xff]   ;;  %v1148_v5 = vld [vmem:[%s264_s8 + $0x10] sm:$0xff]   ;;  %565 = vst.msk [vmem:[#allocation2 + $0x99] sm:$0x1] %vm543_vm1, %v1243_v45 }
  0x12   : > { %v1133_v6 = vunpack.c.l.bf16 %v1132_v3  ;;  %v1134_v7 = vunpack.c.h.bf16 %v1132_v3  ;;  %v1137_v8 = vunpack.c.l.bf16 %v1147_v4  ;;  %v1138_v9 = vunpack.c.h.bf16 %v1147_v4  ;;  %v1149_v10 = vld [vmem:[%s264_s8 + $0x18] sm:$0xff]   ;;  %566 = vst.msk [vmem:[#allocation2 + $0xa9] sm:$0x1] %vm543_vm1, %v1243_v45  ;;  %s1479_s8 = scalar_lea.vmem %s1519_s6, %s1129_s29 }
  0x13   : > { %v1141_v12 = vunpack.c.l.bf16 %v1148_v5  ;;  %v1142_v13 = vunpack.c.h.bf16 %v1148_v5  ;;  %v1145_v14 = vunpack.c.l.bf16 %v1149_v10  ;;  %v1146_v15 = vunpack.c.h.bf16 %v1149_v10  ;;  %584 = vst.msk [vmem:[#allocation2 + $0x10] sm:$0xff] %vm570_vm2, %v1243_v45  ;;  %588 = vst.msk [vmem:[#allocation2 + $0xa0] sm:$0xff] %vm570_vm2, %v1243_v45 }
  0x14   : > { %v309_v16 = vmul.f32 %v1133_v6, %v1105_v2  ;;  %v310_v17 = vmul.f32 %v1134_v7, %v1105_v2  ;;  %v311_v18 = vmul.f32 %v1137_v8, %v1105_v2  ;;  %v312_v19 = vmul.f32 %v1138_v9, %v1105_v2  ;;  %586 = vst.msk [vmem:[#allocation2 + $0x18] sm:$0x3] %vm585_vm3, %v1243_v45 }
  0x15   : > { %v313_v20 = vmul.f32 %v1141_v12, %v1105_v2  ;;  %v314_v21 = vmul.f32 %v1142_v13, %v1105_v2  ;;  %v315_v22 = vmul.f32 %v1145_v14, %v1105_v2  ;;  %v316_v23 = vmul.f32 %v1146_v15, %v1105_v2  ;;  %589 = vst.msk [vmem:[#allocation2 + $0xa8] sm:$0x3] %vm585_vm3, %v1243_v45 }
  0x16   : > { %v324_v24 = vadd.f32 %v1106_v11, %v309_v16  ;;  %v325_v25 = vadd.f32 %v1106_v11, %v310_v17  ;;  %v326_v26 = vadd.f32 %v1106_v11, %v311_v18  ;;  %v327_v27 = vadd.f32 %v1106_v11, %v312_v19 }
  0x17   : > { %v328_v28 = vadd.f32 %v1106_v11, %v313_v20  ;;  %v329_v29 = vadd.f32 %v1106_v11, %v314_v21  ;;  %v330_v36 = vadd.f32 %v1106_v11, %v315_v22  ;;  %v331_v37 = vadd.f32 %v1106_v11, %v316_v23 }
  0x18   : > { %v332_v30 = vmax.f32 %v324_v24, 0.0  ;;  %v333_v31 = vmax.f32 %v325_v25, 0.0  ;;  %v334_v32 = vmax.f32 %v326_v26, 0.0  ;;  %v335_v33 = vmax.f32 %v327_v27, 0.0 }
  0x19   : > { %v336_v34 = vmax.f32 %v328_v28, 0.0  ;;  %v337_v35 = vmax.f32 %v329_v29, 0.0  ;;  %v338_v41 = vmax.f32 %v330_v36, 0.0  ;;  %v339_v42 = vmax.f32 %v331_v37, 0.0 }
  0x1a   : > { %v340_v38 = vpack.c.bf16 %v333_v31, %v332_v30  ;;  %v341_v39 = vpack.c.bf16 %v335_v33, %v334_v32  ;;  %v856_v12 = vld [vmem:[#allocation2 + $0xa0] sm:$0xff] }
  0x1b   : > { %v342_v40 = vpack.c.bf16 %v337_v35, %v336_v34  ;;  %v343_v43 = vpack.c.bf16 %v339_v42, %v338_v41  ;;  %v607_v46 = vld [vmem:[#allocation2 + $0x11] sm:$0xff]  ;;  %879 = vrot.lane.b32.xlu1 %v856_v12, %s1245_s18 }
  0x1c   : > { %1165 = vmatprep.mubr.msk.bf16.mxu0 %vm367_vm0, %v340_v38  ;;  %623 = vrot.lane.b32.xlu0 %v607_v46, %s1244_s15  ;;  %v655_v13 = vld [vmem:[#allocation2 + $0x12] sm:$0xff]  ;;  %v904_v14 = vld [vmem:[#allocation2 + $0xa1] sm:$0xff] }
  0x1d   : > { %1166 = vmatmul.mubr.msk.bf16.vlgmr.msra.gmra.mrb[0].mxu0 %vm367_vm0, %v341_v39 }
  0x1e   : > { %1169 = vmatprep.mubr.msk.bf16.mxu0 %vm367_vm0, %v342_v40 }
  0x1f   : > { %927 = vrot.lane.b32.xlu1 %v904_v14, %s1247_s20 }
  0x20   : > { %671 = vrot.lane.b32.xlu0 %v655_v13, %s1246_s19 }
  0x25   : > { %1170 = vmatmul.mubr.msk.bf16.gmra.mrb[4].mxu0 %vm367_vm0, %v343_v43 }
  0xf0   : > { %v1167_v48 = vpop.f32.mrb[0].mxu0 }
  0xf1   : > { %v423_v49 = vadd.f32 %v1167_v48, %v1107_v47  ;;  %v414_v50 = vpop.f32.mrb[1].mxu0  ;;  %v624_v48 = vpop.permute.xlu0 %623 }
  0xf2   : > { %v415_v51 = vadd.f32 %v1107_v47, %v414_v50  ;;  %v1168_v52 = vpop.f32.mrb[2].mxu0 }
  0xf3   : > { %v426_v53 = vadd.f32 %v1168_v52, %v1107_v47  ;;  %v417_v54 = vpop.f32.mrb[3].mxu0  ;;  %v447_v56 = vmax.f32 %v423_v49, 0.0 }
  0xf4   : > { %v418_v55 = vadd.f32 %v1107_v47, %v417_v54  ;;  %v445_v58 = vmax.f32 %v415_v51, 0.0  ;;  %v952_v51 = vld [vmem:[#allocation2 + $0xa2] sm:$0xff] }
  0xf5   : > { %v448_v57 = vmax.f32 %v426_v53, 0.0  ;;  %v672_v50 = vpop.permute.xlu0 %671 }
  0xf6   : > { %v446_v59 = vmax.f32 %v418_v55, 0.0 }
  0xf7   : > { %v454_v60 = vpack.c.bf16 %v448_v57, %v447_v56 }
  0xf8   : > { %v453_v61 = vpack.c.bf16 %v446_v59, %v445_v58  ;;  %v1171_v62 = vpop.f32.mrb[4].mxu0 }
  0xf9   : > { %v439_v63 = vadd.f32 %v1171_v62, %v1107_v47  ;;  %v430_v0 = vpop.f32.mrb[5].mxu0 }
  0xfa   : > { %1175 = vmatprep.mubr.msk.bf16.mxu1 %vm465_vm4, %v453_v61  ;;  %v431_v1 = vadd.f32 %v1107_v47, %v430_v0  ;;  %v1172_v2 = vpop.f32.mrb[6].mxu0 }
  0xfb   : > { %1176 = vmatmul.mubr.msk.bf16.vlgmr.msra.gmra.mrb[0].mxu1 %vm465_vm4, %v454_v60  ;;  %v451_v3 = vmax.f32 %v439_v63, 0.0  ;;  %v442_v4 = vadd.f32 %v1172_v2, %v1107_v47  ;;  %v433_v5 = vpop.f32.mrb[7].mxu0 }
  0xfc   : > { %v449_v6 = vmax.f32 %v431_v1, 0.0  ;;  %v434_v7 = vadd.f32 %v1107_v47, %v433_v5  ;;  %v1453_v47 = vpop.permute.xlu1 %879 }
  0xfd   : > { %v452_v8 = vmax.f32 %v442_v4, 0.0 }
  0xfe   : > { %v450_v9 = vmax.f32 %v434_v7, 0.0 }
  0xff   : > { %v456_v10 = vpack.c.bf16 %v452_v8, %v451_v3 }
 0x100   : > { %v455_v11 = vpack.c.bf16 %v450_v9, %v449_v6  ;;  %v1460_v49 = vpop.permute.xlu1 %927 }
 0x102   : > { %1179 = vmatprep.mubr.msk.bf16.mxu1 %vm465_vm4, %v455_v11 }
 0x103   : > { %1180 = vmatmul.mubr.msk.bf16.gmra.mrb[4].mxu1 %vm465_vm4, %v456_v10 }
 0x1ce   : > { %v1177_v15 = vpop.f32.mrb[0].mxu1 }
 0x1cf   : > { %1121 = vst.msk [vmem:[#allocation2 + $0x41] sm:$0xff] %vm570_vm2, %v1177_v15  ;;  %v512_v16 = vpop.f32.mrb[1].mxu1  ;;  %v591_v15 = vld [vmem:[#allocation2 + $0x10] sm:$0xff] }
 0x1d0   : > { %1119 = vst.msk [vmem:[#allocation2 + $0x21] sm:$0xff] %vm570_vm2, %v512_v16  ;;  %v1178_v17 = vpop.f32.mrb[2].mxu1 }
 0x1d1   : > { %1122 = vst.msk [vmem:[#allocation2 + $0x51] sm:$0xff] %vm570_vm2, %v1178_v17  ;;  %v515_v18 = vpop.f32.mrb[3].mxu1 }
 0x1d2   : > { %1120 = vst.msk [vmem:[#allocation2 + $0x31] sm:$0xff] %vm570_vm2, %v515_v18 }
 0x1d6   : > { %v1371_v19 = vld [vmem:[#allocation2 + $0x40] sm:$0xff]  ;;  %v1181_v21 = vpop.f32.mrb[4].mxu1 }
 0x1d7   : > { %v610_v20 = vld [vmem:[#allocation2 + $0x41] sm:$0xff]  ;;  %724 = vrot.lane.b32.xlu0 %v1371_v19, %s1248_s25  ;;  %1125 = vst.msk [vmem:[#allocation2 + $0x81] sm:$0xff] %vm570_vm2, %v1181_v21  ;;  %v528_v22 = vpop.f32.mrb[5].mxu1 }
 0x1d8   : > { %629 = vrot.lane.b32.xlu1 %v610_v20, %s1244_s15  ;;  %1123 = vst.msk [vmem:[#allocation2 + $0x61] sm:$0xff] %vm570_vm2, %v528_v22  ;;  %v1182_v23 = vpop.f32.mrb[6].mxu1  ;;  %v658_v25 = vld [vmem:[#allocation2 + $0x42] sm:$0xff]  ;;  %v1394_v29 = vld [vmem:[#allocation2 + $0x50] sm:$0xff] }
 0x1d9   : > { %1126 = vst.msk [vmem:[#allocation2 + $0x91] sm:$0xff] %vm570_vm2, %v1182_v23  ;;  %v531_v24 = vpop.f32.mrb[7].mxu1  ;;  %v608_v26 = vld [vmem:[#allocation2 + $0x21] sm:$0xff]  ;;  %v755_v30 = vld [vmem:[#allocation2 + $0x51] sm:$0xff] }
 0x1da   : > { %1124 = vst.msk [vmem:[#allocation2 + $0x71] sm:$0xff] %vm570_vm2, %v531_v24  ;;  %v1387_v27 = vld [vmem:[#allocation2 + $0x20] sm:$0xff]  ;;  %v803_v31 = vld [vmem:[#allocation2 + $0x52] sm:$0xff] }
 0x1db   : > { %772 = vrot.lane.b32.xlu0 %v610_v20, %s1249_s26  ;;  %v656_v28 = vld [vmem:[#allocation2 + $0x22] sm:$0xff]  ;;  %v609_v32 = vld [vmem:[#allocation2 + $0x31] sm:$0xff] }
 0x1dc   : > { %677 = vrot.lane.b32.xlu1 %v658_v25, %s1246_s19  ;;  %v1406_v33 = vld [vmem:[#allocation2 + $0x30] sm:$0xff] }
 0x1dd   : > { %v657_v34 = vld [vmem:[#allocation2 + $0x32] sm:$0xff] }
 0x1de   : > { %v614_v35 = vld [vmem:[#allocation2 + $0x81] sm:$0xff] }
 0x1df   : > { %820 = vrot.lane.b32.xlu0 %v658_v25, %s1250_s27  ;;  %v662_v36 = vld [vmem:[#allocation2 + $0x82] sm:$0xff] }
 0x1e0   : > { %867 = vrot.lane.b32.xlu1 %v1371_v19, %s1245_s18  ;;  %v1420_v37 = vld [vmem:[#allocation2 + $0x80] sm:$0xff]  ;;  %v855_v41 = vld [vmem:[#allocation2 + $0x90] sm:$0xff] }
 0x1e1   : > { %v612_v38 = vld [vmem:[#allocation2 + $0x61] sm:$0xff]  ;;  %v903_v42 = vld [vmem:[#allocation2 + $0x91] sm:$0xff] }
 0x1e2   : > { %v660_v39 = vld [vmem:[#allocation2 + $0x62] sm:$0xff]  ;;  %v807_v43 = vld [vmem:[#allocation2 + $0x92] sm:$0xff] }
 0x1e3   : > { %625 = vrot.lane.b32.xlu0 %v608_v26, %s1244_s15  ;;  %v1432_v40 = vld [vmem:[#allocation2 + $0x60] sm:$0xff]  ;;  %v613_v44 = vld [vmem:[#allocation2 + $0x71] sm:$0xff] }
 0x1e4   : > { %915 = vrot.lane.b32.xlu1 %v610_v20, %s1247_s20  ;;  %v1448_v45 = vld [vmem:[#allocation2 + $0x70] sm:$0xff] }
 0x1e5   : > { %v661_v46 = vld [vmem:[#allocation2 + $0x72] sm:$0xff] }
 0x1e7   : > { %720 = vrot.lane.b32.xlu0 %v1387_v27, %s1248_s25 }
 0x1e8   : > { %963 = vrot.lane.b32.xlu1 %v658_v25, %s1251_s28 }
 0x1eb   : > { %768 = vrot.lane.b32.xlu0 %v608_v26, %s1249_s26 }
 0x1ec   : > { %673 = vrot.lane.b32.xlu1 %v656_v28, %s1246_s19 }
 0x1ef   : > { %816 = vrot.lane.b32.xlu0 %v656_v28, %s1250_s27 }
 0x1f0   : > { %726 = vrot.lane.b32.xlu1 %v1394_v29, %s1248_s25 }
 0x1f3   : > { %631 = vrot.lane.b32.xlu0 %v755_v30, %s1244_s15 }
 0x1f4   : > { %774 = vrot.lane.b32.xlu1 %v755_v30, %s1249_s26 }
 0x1f7   : > { %679 = vrot.lane.b32.xlu0 %v803_v31, %s1246_s19 }
 0x1f8   : > { %822 = vrot.lane.b32.xlu1 %v803_v31, %s1250_s27 }
 0x1fb   : > { %869 = vrot.lane.b32.xlu0 %v1394_v29, %s1245_s18 }
 0x1fc   : > { %627 = vrot.lane.b32.xlu1 %v609_v32, %s1244_s15 }
 0x1ff   : > { %917 = vrot.lane.b32.xlu0 %v755_v30, %s1247_s20 }
 0x200   : > { %722 = vrot.lane.b32.xlu1 %v1406_v33, %s1248_s25 }
 0x203   : > { %965 = vrot.lane.b32.xlu0 %v803_v31, %s1251_s28 }
 0x204   : > { %770 = vrot.lane.b32.xlu1 %v609_v32, %s1249_s26 }
 0x207   : > { %675 = vrot.lane.b32.xlu0 %v657_v34, %s1246_s19 }
 0x208   : > { %818 = vrot.lane.b32.xlu1 %v657_v34, %s1250_s27 }
 0x20b   : > { %865 = vrot.lane.b32.xlu0 %v1406_v33, %s1245_s18 }
 0x20c   : > { %637 = vrot.lane.b32.xlu1 %v614_v35, %s1244_s15 }
 0x20f   : > { %913 = vrot.lane.b32.xlu0 %v609_v32, %s1247_s20 }
 0x210   : > { %685 = vrot.lane.b32.xlu1 %v662_v36, %s1246_s19 }
 0x213   : > { %961 = vrot.lane.b32.xlu0 %v657_v34, %s1251_s28 }
 0x214   : > { %875 = vrot.lane.b32.xlu1 %v1420_v37, %s1245_s18 }
 0x217   : > { %732 = vrot.lane.b32.xlu0 %v1420_v37, %s1248_s25 }
 0x218   : > { %923 = vrot.lane.b32.xlu1 %v614_v35, %s1247_s20 }
 0x21b   : > { %780 = vrot.lane.b32.xlu0 %v614_v35, %s1249_s26 }
 0x21c   : > { %633 = vrot.lane.b32.xlu1 %v612_v38, %s1244_s15 }
 0x21f   : > { %828 = vrot.lane.b32.xlu0 %v662_v36, %s1250_s27 }
 0x220   : > { %681 = vrot.lane.b32.xlu1 %v660_v39, %s1246_s19 }
 0x223   : > { %728 = vrot.lane.b32.xlu0 %v1432_v40, %s1248_s25 }
 0x224   : > { %871 = vrot.lane.b32.xlu1 %v1432_v40, %s1245_s18 }
 0x227   : > { %776 = vrot.lane.b32.xlu0 %v612_v38, %s1249_s26 }
 0x228   : > { %919 = vrot.lane.b32.xlu1 %v612_v38, %s1247_s20 }
 0x22b   : > { %824 = vrot.lane.b32.xlu0 %v660_v39, %s1250_s27 }
 0x22c   : > { %967 = vrot.lane.b32.xlu1 %v660_v39, %s1251_s28 }
 0x22f   : > { %877 = vrot.lane.b32.xlu0 %v855_v41, %s1245_s18 }
 0x230   : > { %734 = vrot.lane.b32.xlu1 %v855_v41, %s1248_s25 }
 0x233   : > { %925 = vrot.lane.b32.xlu0 %v903_v42, %s1247_s20 }
 0x234   : > { %782 = vrot.lane.b32.xlu1 %v903_v42, %s1249_s26 }
 0x237   : > { %635 = vrot.lane.b32.xlu0 %v613_v44, %s1244_s15 }
 0x238   : > { %830 = vrot.lane.b32.xlu1 %v807_v43, %s1250_s27 }
 0x23b   : > { %683 = vrot.lane.b32.xlu0 %v661_v46, %s1246_s19 }
 0x23c   : > { %730 = vrot.lane.b32.xlu1 %v1448_v45, %s1248_s25 }
 0x23f   : > { %873 = vrot.lane.b32.xlu0 %v1448_v45, %s1245_s18 }
 0x240   : > { %778 = vrot.lane.b32.xlu1 %v613_v44, %s1249_s26 }
 0x243   : > { %921 = vrot.lane.b32.xlu0 %v613_v44, %s1247_s20 }
 0x244   : > { %826 = vrot.lane.b32.xlu1 %v661_v46, %s1250_s27 }
 0x247   : > { %969 = vrot.lane.b32.xlu0 %v661_v46, %s1251_s28 }
 0x248   : > { %971 = vrot.lane.b32.xlu1 %v662_v36, %s1251_s28 }
 0x249   : > { %v725_v52 = vpop.permute.xlu0 %724 }
 0x24a   : > { %v630_v53 = vpop.permute.xlu1 %629 }
 0x24b   : > { %973 = vrot.lane.b32.xlu0 %v807_v43, %s1251_s28  ;;  %v650_v54 = vadd.f32 %v1371_v19, %v630_v53  ;;  %v647_v19 = vadd.f32 %v624_v48, %v591_v15 }
 0x24c   : > { %975 = vrot.lane.b32.xlu1 %v952_v51, %s1251_s28 }
 0x24d   : > { %v773_v55 = vpop.permute.xlu0 %772  ;;  %v695_v25 = vadd.f32 %v672_v50, %v647_v19 }
 0x24e   : > { %v678_v56 = vpop.permute.xlu1 %677 }
 0x24f   : > { %v1467_v57 = vadd.f32 %v678_v56, %v650_v54 }
 0x251   : > { %v821_v58 = vpop.permute.xlu0 %820 }
 0x252   : > { %v868_v59 = vpop.permute.xlu1 %867 }
 0x255   : > { %v626_v61 = vpop.permute.xlu0 %625 }
 0x256   : > { %v916_v60 = vpop.permute.xlu1 %915  ;;  %v648_v14 = vadd.f32 %v1387_v27, %v626_v61 }
 0x259   : > { %v721_v63 = vpop.permute.xlu0 %720 }
 0x25a   : > { %v964_v62 = vpop.permute.xlu1 %963 }
 0x25d   : > { %v769_v1 = vpop.permute.xlu0 %768 }
 0x25e   : > { %v674_v0 = vpop.permute.xlu1 %673 }
 0x25f   : > { %v696_v16 = vadd.f32 %v674_v0, %v648_v14 }
 0x261   : > { %v817_v2 = vpop.permute.xlu0 %816 }
 0x262   : > { %v727_v3 = vpop.permute.xlu1 %726 }
 0x263   : > { %v747_v0 = vadd.f32 %v727_v3, %v1467_v57 }
 0x265   : > { %v632_v5 = vpop.permute.xlu0 %631 }
 0x266   : > { %v775_v4 = vpop.permute.xlu1 %774  ;;  %v651_v6 = vadd.f32 %v1394_v29, %v632_v5  ;;  %v744_v29 = vadd.f32 %v721_v63, %v695_v25 }
 0x267   : > { %v795_v5 = vadd.f32 %v775_v4, %v747_v0 }
 0x268   : > { %v792_v34 = vadd.f32 %v769_v1, %v744_v29 }
 0x269   : > { %v680_v8 = vpop.permute.xlu0 %679 }
 0x26a   : > { %v823_v7 = vpop.permute.xlu1 %822  ;;  %v1470_v9 = vadd.f32 %v680_v8, %v651_v6  ;;  %v840_v38 = vadd.f32 %v817_v2, %v792_v34 }
 0x26b   : > { %v843_v6 = vadd.f32 %v823_v7, %v795_v5 }
 0x26d   : > { %v870_v10 = vpop.permute.xlu0 %869 }
 0x26e   : > { %v628_v11 = vpop.permute.xlu1 %627 }
 0x26f   : > { %v649_v21 = vadd.f32 %v1406_v33, %v628_v11 }
 0x271   : > { %v918_v12 = vpop.permute.xlu0 %917 }
 0x272   : > { %v723_v13 = vpop.permute.xlu1 %722 }
 0x273   : > { %v745_v20 = vadd.f32 %v723_v13, %v696_v16 }
 0x275   : > { %v966_v17 = vpop.permute.xlu0 %965 }
 0x276   : > { %v771_v18 = vpop.permute.xlu1 %770 }
 0x277   : > { %v793_v22 = vadd.f32 %v771_v18, %v745_v20 }
 0x279   : > { %v676_v23 = vpop.permute.xlu0 %675 }
 0x27a   : > { %v819_v24 = vpop.permute.xlu1 %818  ;;  %v697_v26 = vadd.f32 %v676_v23, %v649_v21 }
 0x27b   : > { %v841_v28 = vadd.f32 %v819_v24, %v793_v22 }
 0x27c   : > { %v746_v30 = vadd.f32 %v725_v52, %v697_v26 }
 0x27d   : > { %v890_v31 = vadd.f32 %v868_v59, %v841_v28  ;;  %v866_v32 = vpop.permute.xlu0 %865 }
 0x27e   : > { %v638_v27 = vpop.permute.xlu1 %637  ;;  %v794_v35 = vadd.f32 %v773_v55, %v746_v30  ;;  %v889_v46 = vadd.f32 %v866_v32, %v840_v38 }
 0x27f   : > { %v938_v36 = vadd.f32 %v916_v60, %v890_v31  ;;  %v654_v3 = vadd.f32 %v1420_v37, %v638_v27 }
 0x280   : > { %v842_v39 = vadd.f32 %v821_v58, %v794_v35 }
 0x281   : > { %v986_v41 = vadd.f32 %v964_v62, %v938_v36  ;;  %v914_v33 = vpop.permute.xlu0 %913 }
 0x282   : > { %v686_v42 = vpop.permute.xlu1 %685  ;;  %v891_v43 = vadd.f32 %v870_v10, %v842_v39  ;;  %v937_v50 = vadd.f32 %v914_v33, %v889_v46 }
 0x283   : > { %v994_v44 = vpack.c.bf16 %v986_v41, %v986_v41  ;;  %v702_v23 = vadd.f32 %v686_v42, %v654_v3 }
 0x284   : > { %v939_v48 = vadd.f32 %v918_v12, %v891_v43 }
 0x285   : > { %1003 = vst.msk [vmem:[%s1479_s8 + $0x4] sm:$0xf] %vm1001_vm5, %v994_v44  ;;  %v962_v51 = vpop.permute.xlu0 %961 }
 0x286   : > { %v876_v52 = vpop.permute.xlu1 %875  ;;  %v987_v53 = vadd.f32 %v966_v17, %v939_v48  ;;  %v985_v54 = vadd.f32 %v962_v51, %v937_v50 }
 0x288   : > { %v995_v55 = vpack.c.bf16 %v987_v53, %v987_v53  ;;  %v993_v56 = vpack.c.bf16 %v985_v54, %v985_v54 }
 0x289   : > { %v733_v58 = vpop.permute.xlu0 %732 }
 0x28a   : > { %v924_v59 = vpop.permute.xlu1 %923  ;;  %1004 = vst.msk [vmem:[%s1479_s8 + $0x8] sm:$0xf] %vm1001_vm5, %v995_v55  ;;  %1002 = vst.msk [vmem:[%s1479_s8] sm:$0xf] %vm1001_vm5, %v993_v56 }
 0x28d   : > { %v781_v60 = vpop.permute.xlu0 %780 }
 0x28e   : > { %v634_v61 = vpop.permute.xlu1 %633 }
 0x28f   : > { %v652_v24 = vadd.f32 %v1432_v40, %v634_v61 }
 0x291   : > { %v829_v62 = vpop.permute.xlu0 %828 }
 0x292   : > { %v682_v63 = vpop.permute.xlu1 %681 }
 0x293   : > { %v700_v26 = vadd.f32 %v682_v63, %v652_v24 }
 0x295   : > { %v729_v1 = vpop.permute.xlu0 %728 }
 0x296   : > { %v872_v2 = vpop.permute.xlu1 %871  ;;  %v748_v28 = vadd.f32 %v729_v1, %v1470_v9 }
 0x297   : > { %v892_v11 = vadd.f32 %v872_v2, %v843_v6 }
 0x299   : > { %v777_v8 = vpop.permute.xlu0 %776 }
 0x29a   : > { %v920_v10 = vpop.permute.xlu1 %919  ;;  %v796_v34 = vadd.f32 %v777_v8, %v748_v28 }
 0x29b   : > { %v940_v12 = vadd.f32 %v920_v10, %v892_v11 }
 0x29d   : > { %v825_v13 = vpop.permute.xlu0 %824 }
 0x29e   : > { %v968_v14 = vpop.permute.xlu1 %967  ;;  %v844_v37 = vadd.f32 %v825_v13, %v796_v34 }
 0x29f   : > { %v988_v15 = vadd.f32 %v968_v14, %v940_v12 }
 0x2a1   : > { %v996_v16 = vpack.c.bf16 %v988_v15, %v988_v15  ;;  %v878_v17 = vpop.permute.xlu0 %877 }
 0x2a2   : > { %v735_v18 = vpop.permute.xlu1 %734 }
 0x2a3   : > { %1005 = vst.msk [vmem:[%s1479_s8 + $0xc] sm:$0xf] %vm1001_vm5, %v996_v16  ;;  %v751_v29 = vadd.f32 %v735_v18, %v702_v23 }
 0x2a5   : > { %v926_v19 = vpop.permute.xlu0 %925 }
 0x2a6   : > { %v783_v20 = vpop.permute.xlu1 %782 }
 0x2a7   : > { %v799_v35 = vadd.f32 %v783_v20, %v751_v29 }
 0x2a9   : > { %v636_v57 = vpop.permute.xlu0 %635 }
 0x2aa   : > { %v831_v21 = vpop.permute.xlu1 %830  ;;  %v653_v4 = vadd.f32 %v1448_v45, %v636_v57 }
 0x2ab   : > { %v847_v27 = vadd.f32 %v831_v21, %v799_v35 }
 0x2ad   : > { %v684_v22 = vpop.permute.xlu0 %683  ;;  %v896_v43 = vadd.f32 %v1453_v47, %v847_v27 }
 0x2ae   : > { %v731_v7 = vpop.permute.xlu1 %730  ;;  %v701_v25 = vadd.f32 %v684_v22, %v653_v4 }
 0x2af   : > { %v749_v36 = vadd.f32 %v731_v7, %v700_v26  ;;  %v944_v56 = vadd.f32 %v1460_v49, %v896_v43 }
 0x2b0   : > { %v750_v30 = vadd.f32 %v733_v58, %v701_v25 }
 0x2b1   : > { %v874_v32 = vpop.permute.xlu0 %873 }
 0x2b2   : > { %v779_v31 = vpop.permute.xlu1 %778  ;;  %v798_v38 = vadd.f32 %v781_v60, %v750_v30  ;;  %v893_v42 = vadd.f32 %v874_v32, %v844_v37 }
 0x2b3   : > { %v797_v45 = vadd.f32 %v779_v31, %v749_v36 }
 0x2b4   : > { %v846_v39 = vadd.f32 %v829_v62, %v798_v38 }
 0x2b5   : > { %v922_v33 = vpop.permute.xlu0 %921 }
 0x2b6   : > { %v827_v41 = vpop.permute.xlu1 %826  ;;  %v941_v44 = vadd.f32 %v922_v33, %v893_v42  ;;  %v895_v46 = vadd.f32 %v878_v17, %v846_v39 }
 0x2b7   : > { %v845_v40 = vadd.f32 %v827_v41, %v797_v45 }
 0x2b8   : > { %v943_v58 = vadd.f32 %v926_v19, %v895_v46 }
 0x2b9   : > { %v894_v9 = vadd.f32 %v876_v52, %v845_v40  ;;  %v970_v50 = vpop.permute.xlu0 %969 }
 0x2ba   : > { %v972_v48 = vpop.permute.xlu1 %971  ;;  %v989_v53 = vadd.f32 %v970_v50, %v941_v44 }
 0x2bb   : > { %v942_v51 = vadd.f32 %v924_v59, %v894_v9 }
 0x2bc   : > { %v997_v55 = vpack.c.bf16 %v989_v53, %v989_v53 }
 0x2bd   : > { %v990_v54 = vadd.f32 %v972_v48, %v942_v51  ;;  %v974_v61 = vpop.permute.xlu0 %973 }
 0x2be   : > { %v976_v60 = vpop.permute.xlu1 %975  ;;  %1006 = vst.msk [vmem:[%s1479_s8 + $0x10] sm:$0xf] %vm1001_vm5, %v997_v55  ;;  %v991_v52 = vadd.f32 %v974_v61, %v943_v58 }
 0x2bf   : > { %v998_v62 = vpack.c.bf16 %v990_v54, %v990_v54  ;;  %v992_v47 = vadd.f32 %v976_v60, %v944_v56 }
 0x2c0   : > { %v999_v0 = vpack.c.bf16 %v991_v52, %v991_v52 }
 0x2c1   : > { %1007 = vst.msk [vmem:[%s1479_s8 + $0x14] sm:$0xf] %vm1001_vm5, %v998_v62  ;;  %v1000_v63 = vpack.c.bf16 %v992_v47, %v992_v47 }
 0x2c2   : > { %1008 = vst.msk [vmem:[%s1479_s8 + $0x18] sm:$0xf] %vm1001_vm5, %v999_v0 }
 0x2c3   : > { %1009 = vst.msk [vmem:[%s1479_s8 + $0x1c] sm:$0xf] %vm1001_vm5, %v1000_v63 }
 0x2c4 PF: > { %s16_s23 = sadd.s32 1, %s1241_s23   ;;  %s1520_s21 = smov %s1237_s22 }
 0x2c5   : > { %p13_p5 = scmp.ge.s32.totalorder %s16_s23, 4   ;;  %s1521_s22 = smov %s1523_s24 }
 0x2c7   :  { %15 = sbr.rel (!%p13_p5) target bundleno = 2 (0x2), region = 85 }

// kernel: downsample_densenet_forward.7
= control target key start
LH: loop header
LB: loop body
LE: loop exit
PB: predicated region body
PF: predicated region fallthrough
CT: control target
= control target key end

     0   :  { %s2508_s12 = smov 0   ;;  %s3066_s0 = inlined_call_operand.vmem [shape: bf16[2,16,16,147], index: 0, kind: input, shape index: {}]   ;;  %s3067_s1 = inlined_call_operand.vmem [shape: bf16[147,16], index: 1, kind: input, shape index: {}]   ;;  %s3068_s2 = inlined_call_operand.vmem [shape: f32[1,16], index: 2, kind: input, shape index: {}]   ;;  %s3069_s3 = inlined_call_operand.vmem [shape: bf16[2,8,8,16], index: 3, kind: output, shape index: {}]  }
   0x1 LB: > { %s2121_s13 = sadd.s32 4294967295, %s2482_s12   ;;  %p2125_p0 = scmp.ge.s32.totalorder %s2482_s12, 1  ;;  %s2482_s12 = sphi %s2508_s12, %s13_s12  }
   0x2   : > { %p137_p1 = scmp.lt.s32.totalorder %s2482_s12, 3 }
   0x4   : > { %p138_p2 = pnand %p2125_p0, %p137_p1 }
   0x5   : > { %v2417_v0 = vld [vmem:[%s3067_s1] sm:$0xff] (!%p138_p2)   ;;  %v2484_v1 = vmov (!%p138_p2), 0   ;;  %v2418_v2 = vld [vmem:[%s3067_s1 + $0x8] sm:$0xff] (!%p138_p2)   ;;  %v2419_v3 = vld [vmem:[%s3067_s1 + $0x10] sm:$0xff] (!%p138_p2)   ;;  %p161_p3 = scmp.lt.s32.totalorder (!%p138_p2), %s2121_s13, 1  ;;  %vm431_vm0 = vcmask (!%p138_p2), 154624  }
   0x6   : > { %141 = sbr.rel (%p138_p2) target bundleno = 450 (0x1c2), region = 32  ;;  %487 = vmatprep.subr.bf16.mxu0 (!%p138_p2), %v2484_v1  ;;  %2385 = vmatprep.subr.bf16.mxu1 (!%p138_p2), %v2484_v1  ;;  %v2420_v4 = vld [vmem:[%s3067_s1 + $0x18] sm:$0xff] (!%p138_p2)   ;;  %v2421_v6 = vld [vmem:[%s3067_s1 + $0x20] sm:$0xff] (!%p138_p2)   ;;  %v2422_v8 = vld [vmem:[%s3067_s1 + $0x28] sm:$0xff] (!%p138_p2)   ;;  %vm480_vm1 = vcmask (!%p138_p2), 1040384   ;;  %vm481_vm2 = vcmask (!%p138_p2), 1041408  }
   0x7   : > { %488 = vmatpush1.bf16.msra.mxu0 (!%p138_p2), %v2417_v0  ;;  %2395 = vmatpush1.bf16.msra.mxu1 (!%p138_p2), %v2417_v0  ;;  %v2423_v9 = vld [vmem:[%s3067_s1 + $0x30] sm:$0xff] (!%p138_p2)   ;;  %v2424_v10 = vld [vmem:[%s3067_s1 + $0x38] sm:$0xff] (!%p138_p2)   ;;  %v2485_v11 = vmov (!%p138_p2), 65535   ;;  %v2425_v13 = vld [vmem:[%s3067_s1 + $0x40] sm:$0xff] (!%p138_p2)   ;;  %vm681_vm3 = vcmask (!%p138_p2), 130048   ;;  %vm722_vm4 = vcmask (!%p138_p2), 122880  }
   0x8   : > { %489 = vmatprep.subr.bf16.mxu0 (!%p138_p2), %v2484_v1  ;;  %2386 = vmatprep.subr.bf16.mxu1 (!%p138_p2), %v2484_v1  ;;  %v482_v12 = vsel (!%p138_p2), %vm480_vm1, 4294967295, %v2485_v11  ;;  %v2426_v14 = vld [vmem:[%s3067_s1 + $0x48] ss:$0 sps:$4 sm:$0x33] (!%p138_p2)   ;;  %v2486_v47 = vmov (!%p138_p2), -1e+30  }
   0x9   : > { %v483_v15 = vsel (!%p138_p2), %vm481_vm2, %v482_v12, 0  ;;  %714 = vst.msk [vmem:[#allocation2] sm:$0xff] (!%p138_p2), %vm681_vm3, %v2486_v47  ;;  %715 = vst.msk [vmem:[#allocation2 + $0x8] sm:$0xff] (!%p138_p2), %vm681_vm3, %v2486_v47  ;;  %vm716_vm5 = vcmask (!%p138_p2), 123904   ;;  %v2641_v48 = vld [vmem:[%s3068_s2] ss:$0 sm:$0xff] (!%p138_p2) }
   0xa   : > { %v485_v16 = vand.u32 (!%p138_p2), %v2426_v14, %v483_v15  ;;  %723 = vst.msk [vmem:[#allocation2] sm:$0x1] (!%p138_p2), %vm722_vm4, %v2486_v47  ;;  %724 = vst.msk [vmem:[#allocation2 + $0x18] sm:$0x1] (!%p138_p2), %vm722_vm4, %v2486_v47  ;;  %vm1923_vm6 = vcmask (!%p138_p2), 1041409   ;;  %vm1926_vm7 = vcmask (!%p138_p2), 1042434  }
   0xb   : > { %490 = vmatpush1.bf16.msra.mxu0 (!%p138_p2), %v2418_v2  ;;  %2396 = vmatpush1.bf16.msra.mxu1 (!%p138_p2), %v2418_v2  ;;  %725 = vst.msk [vmem:[#allocation2 + $0x30] sm:$0x1] (!%p138_p2), %vm722_vm4, %v2486_v47  ;;  %726 = vst.msk [vmem:[#allocation2 + $0x48] sm:$0x1] (!%p138_p2), %vm722_vm4, %v2486_v47  ;;  %vm1929_vm8 = vcmask (!%p138_p2), 1043459   ;;  %vm1932_vm9 = vcmask (!%p138_p2), 1044484  }
   0xc   : > { %491 = vmatprep.subr.bf16.mxu0 (!%p138_p2), %v2484_v1  ;;  %2387 = vmatprep.subr.bf16.mxu1 (!%p138_p2), %v2484_v1  ;;  %727 = vst.msk [vmem:[#allocation2 + $0x60] sm:$0x1] (!%p138_p2), %vm722_vm4, %v2486_v47  ;;  %728 = vst.msk [vmem:[#allocation2 + $0x78] sm:$0x1] (!%p138_p2), %vm722_vm4, %v2486_v47  ;;  %vm1935_vm10 = vcmask (!%p138_p2), 1045509   ;;  %vm1938_vm11 = vcmask (!%p138_p2), 1046534  }
   0xd   : > { %s3071_s13 = smov (!%p161_p3, %s2121_s13), 1  ;;  %729 = vst.msk [vmem:[#allocation2 + $0x90] sm:$0x1] %vm722_vm4, %v2486_v47  ;;  %730 = vst.msk [vmem:[#allocation2 + $0xa8] sm:$0x1] %vm722_vm4, %v2486_v47  ;;  %vm1941_vm12 = vcmask 1047559  }
   0xe   : > { %s2319_s22 = sshll.u32 %s3071_s13, 8  ;;  %731 = vst.msk [vmem:[#allocation2 + $0xc0] sm:$0x1] %vm722_vm4, %v2486_v47  ;;  %732 = vst.msk [vmem:[#allocation2 + $0xd8] sm:$0x1] %vm722_vm4, %v2486_v47  ;;  %vm2057_vm13 = vcmask 125952  }
   0xf   : > { %492 = vmatpush1.bf16.msra.mxu0 %v2419_v3  ;;  %2397 = vmatpush1.bf16.msra.mxu1 %v2419_v3  ;;  %s2534_s25 = scalar_lea.vmem %s3066_s0, %s2319_s22  ;;  %733 = vst.msk [vmem:[#allocation2 + $0xf0] sm:$0x1] %vm722_vm4, %v2486_v47  ;;  %734 = vst.msk [vmem:[#allocation2 + $0x108] sm:$0x1] %vm722_vm4, %v2486_v47  ;;  %s2320_s15 = sshll.u32 %s3071_s13, 5 }
  0x10   : > { %493 = vmatprep.subr.bf16.mxu0 %v2484_v1  ;;  %2388 = vmatprep.subr.bf16.mxu1 %v2484_v1  ;;  %v2429_v5 = vld [vmem:[%s2534_s25 + $0x4] ss:$8 sps:$4 sm:$0xff]   ;;  %v2427_v17 = vld [vmem:[%s2534_s25] ss:$8 sps:$4 sm:$0xff]   ;;  %v2433_v19 = vld [vmem:[%s2534_s25 + $0x14] ss:$8 sps:$4 sm:$0xff]   ;;  %s2754_s17 = scalar_lea.vmem %s3069_s3, %s2320_s15 }
  0x11   : > { %v2432_v7 = vld [vmem:[%s2534_s25 + $0x84] ss:$8 sps:$4 sm:$0xff]   ;;  %2173 = vmatprep.mubr.msk.bf16.mxu0 %vm431_vm0, %v2429_v5  ;;  %v2430_v18 = vld [vmem:[%s2534_s25 + $0x80] ss:$8 sps:$4 sm:$0xff]   ;;  %v2435_v20 = vld [vmem:[%s2534_s25 + $0x94] ss:$8 sps:$4 sm:$0xff]  }
  0x12   : > { %2181 = vmatprep.mubr.msk.bf16.mxu1 %vm431_vm0, %v2432_v7  ;;  %v2437_v21 = vld [vmem:[%s2534_s25 + $0x10] ss:$8 sps:$4 sm:$0xff]   ;;  %v2439_v23 = vld [vmem:[%s2534_s25 + $0x24] ss:$8 sps:$4 sm:$0xff]   ;;  %v2443_v25 = vld [vmem:[%s2534_s25 + $0x20] ss:$8 sps:$4 sm:$0xff]  }
  0x13   : > { %494 = vmatpush1.bf16.msra.mxu0 %v2420_v4  ;;  %2398 = vmatpush1.bf16.msra.mxu1 %v2420_v4  ;;  %v2438_v22 = vld [vmem:[%s2534_s25 + $0x90] ss:$8 sps:$4 sm:$0xff]   ;;  %v2441_v24 = vld [vmem:[%s2534_s25 + $0xa4] ss:$8 sps:$4 sm:$0xff]   ;;  %v2444_v26 = vld [vmem:[%s2534_s25 + $0xa0] ss:$8 sps:$4 sm:$0xff]  }
  0x14   : > { %495 = vmatprep.subr.bf16.mxu0 %v2484_v1  ;;  %2389 = vmatprep.subr.bf16.mxu1 %v2484_v1  ;;  %v2445_v27 = vld [vmem:[%s2534_s25 + $0x34] ss:$8 sps:$4 sm:$0xff]   ;;  %v2449_v29 = vld [vmem:[%s2534_s25 + $0x30] ss:$8 sps:$4 sm:$0xff]   ;;  %v2451_v31 = vld [vmem:[%s2534_s25 + $0x44] ss:$8 sps:$4 sm:$0xff]  }
  0x15   : > { %v2447_v28 = vld [vmem:[%s2534_s25 + $0xb4] ss:$8 sps:$4 sm:$0xff]   ;;  %v2450_v30 = vld [vmem:[%s2534_s25 + $0xb0] ss:$8 sps:$4 sm:$0xff]   ;;  %v2453_v32 = vld [vmem:[%s2534_s25 + $0xc4] ss:$8 sps:$4 sm:$0xff]  }
  0x16   : > { %v2455_v33 = vld [vmem:[%s2534_s25 + $0x40] ss:$8 sps:$4 sm:$0xff]   ;;  %v2457_v35 = vld [vmem:[%s2534_s25 + $0x54] ss:$8 sps:$4 sm:$0xff]   ;;  %v2461_v37 = vld [vmem:[%s2534_s25 + $0x50] ss:$8 sps:$4 sm:$0xff]  }
  0x17   : > { %496 = vmatpush1.bf16.msra.mxu0 %v2421_v6  ;;  %2399 = vmatpush1.bf16.msra.mxu1 %v2421_v6  ;;  %v2456_v34 = vld [vmem:[%s2534_s25 + $0xc0] ss:$8 sps:$4 sm:$0xff]   ;;  %v2459_v36 = vld [vmem:[%s2534_s25 + $0xd4] ss:$8 sps:$4 sm:$0xff]   ;;  %v2462_v38 = vld [vmem:[%s2534_s25 + $0xd0] ss:$8 sps:$4 sm:$0xff]  }
  0x18   : > { %497 = vmatprep.subr.bf16.mxu0 %v2484_v1  ;;  %2390 = vmatprep.subr.bf16.mxu1 %v2484_v1  ;;  %v2463_v39 = vld [vmem:[%s2534_s25 + $0x64] ss:$8 sps:$4 sm:$0xff]   ;;  %v2467_v41 = vld [vmem:[%s2534_s25 + $0x60] ss:$8 sps:$4 sm:$0xff]   ;;  %v2469_v43 = vld [vmem:[%s2534_s25 + $0x74] ss:$8 sps:$4 sm:$0xff]  }
  0x19   : > { %v2465_v40 = vld [vmem:[%s2534_s25 + $0xe4] ss:$8 sps:$4 sm:$0xff]   ;;  %v2468_v42 = vld [vmem:[%s2534_s25 + $0xe0] ss:$8 sps:$4 sm:$0xff]   ;;  %v2471_v44 = vld [vmem:[%s2534_s25 + $0xf4] ss:$8 sps:$4 sm:$0xff]  }
  0x1a   : > { %v2473_v45 = vld [vmem:[%s2534_s25 + $0x70] ss:$8 sps:$4 sm:$0xff]   ;;  %735 = vst.msk [vmem:[#allocation2 + $0x120] sm:$0x1] %vm722_vm4, %v2486_v47  ;;  %736 = vst.msk [vmem:[#allocation2 + $0x138] sm:$0x1] %vm722_vm4, %v2486_v47 }
  0x1b   : > { %498 = vmatpush1.bf16.msra.mxu0 %v2422_v8  ;;  %2400 = vmatpush1.bf16.msra.mxu1 %v2422_v8  ;;  %v2474_v46 = vld [vmem:[%s2534_s25 + $0xf0] ss:$8 sps:$4 sm:$0xff]   ;;  %737 = vst.msk [vmem:[#allocation2 + $0x150] sm:$0x1] %vm722_vm4, %v2486_v47  ;;  %738 = vst.msk [vmem:[#allocation2 + $0x168] sm:$0x1] %vm722_vm4, %v2486_v47 }
  0x1c   : > { %499 = vmatprep.subr.bf16.mxu0 %v2484_v1  ;;  %2391 = vmatprep.subr.bf16.mxu1 %v2484_v1  ;;  %739 = vst.msk [vmem:[#allocation2 + $0x180] sm:$0x1] %vm722_vm4, %v2486_v47  ;;  %742 = vst.msk [vmem:[#allocation2 + $0x29] sm:$0x1] %vm722_vm4, %v2486_v47  ;;  %v2487_v7 = vmov 1983009808  }
  0x1d   : > { %743 = vst.msk [vmem:[#allocation2 + $0x41] sm:$0x1] %vm722_vm4, %v2486_v47  ;;  %744 = vst.msk [vmem:[#allocation2 + $0x59] sm:$0x1] %vm722_vm4, %v2486_v47  ;;  %v876_v8 = vunpack.c.l.s4 %v2487_v7 }
  0x1e   : > { %745 = vst.msk [vmem:[#allocation2 + $0x71] sm:$0x1] %vm722_vm4, %v2486_v47  ;;  %746 = vst.msk [vmem:[#allocation2 + $0x89] sm:$0x1] %vm722_vm4, %v2486_v47 }
  0x1f   : > { %500 = vmatpush1.bf16.msra.mxu0 %v2423_v9  ;;  %2401 = vmatpush1.bf16.msra.mxu1 %v2423_v9  ;;  %747 = vst.msk [vmem:[#allocation2 + $0xa1] sm:$0x1] %vm722_vm4, %v2486_v47  ;;  %748 = vst.msk [vmem:[#allocation2 + $0xb9] sm:$0x1] %vm722_vm4, %v2486_v47  ;;  %v878_v9 = vlaneseq }
  0x20   : > { %501 = vmatprep.subr.bf16.mxu0 %v2484_v1  ;;  %2392 = vmatprep.subr.bf16.mxu1 %v2484_v1  ;;  %749 = vst.msk [vmem:[#allocation2 + $0xd1] sm:$0x1] %vm722_vm4, %v2486_v47  ;;  %750 = vst.msk [vmem:[#allocation2 + $0xe9] sm:$0x1] %vm722_vm4, %v2486_v47 }
  0x21   : > { %751 = vst.msk [vmem:[#allocation2 + $0x101] sm:$0x1] %vm722_vm4, %v2486_v47  ;;  %752 = vst.msk [vmem:[#allocation2 + $0x119] sm:$0x1] %vm722_vm4, %v2486_v47 }
  0x22   : > { %753 = vst.msk [vmem:[#allocation2 + $0x131] sm:$0x1] %vm722_vm4, %v2486_v47  ;;  %754 = vst.msk [vmem:[#allocation2 + $0x149] sm:$0x1] %vm722_vm4, %v2486_v47 }
  0x23   : > { %502 = vmatpush1.bf16.msra.mxu0 %v2424_v10  ;;  %2402 = vmatpush1.bf16.msra.mxu1 %v2424_v10  ;;  %755 = vst.msk [vmem:[#allocation2 + $0x161] sm:$0x1] %vm722_vm4, %v2486_v47  ;;  %756 = vst.msk [vmem:[#allocation2 + $0x179] sm:$0x1] %vm722_vm4, %v2486_v47 }
  0x24   : > { %503 = vmatprep.subr.bf16.mxu0 %v2484_v1  ;;  %2393 = vmatprep.subr.bf16.mxu1 %v2484_v1  ;;  %757 = vst.msk [vmem:[#allocation2 + $0x191] sm:$0x1] %vm722_vm4, %v2486_v47 }
  0x25   : > { %717 = vst.msk [vmem:[#allocation2 + $0x10] sm:$0x3] %vm716_vm5, %v2486_v47 }
  0x26   : > { %741 = vst.msk [vmem:[#allocation2 + $0x11] sm:$0x1] %vm722_vm4, %v2486_v47 }
  0x27   : > { %504 = vmatpush1.bf16.msra.mxu0 %v2425_v13  ;;  %2403 = vmatpush1.bf16.msra.mxu1 %v2425_v13 }
  0x28   : > { %505 = vmatprep.subr.bf16.mxu0 %v2484_v1  ;;  %2394 = vmatprep.subr.bf16.mxu1 %v2484_v1 }
  0x2b   : > { %506 = vmatpush1.bf16.msra.mxu0 %v485_v16  ;;  %2404 = vmatpush1.bf16.msra.mxu1 %v485_v16 }
  0x2e   : > { %520 = vmatmul.mubr.bf16.vlgmr.msra.gmra.mrb[0].mxu0 %v2427_v17  ;;  %584 = vmatmul.mubr.bf16.vlgmr.msra.gmra.mrb[0].mxu1 %v2430_v18 }
  0x2f   : > { %2174 = vmatprep.mubr.msk.bf16.mxu0 %vm431_vm0, %v2433_v19  ;;  %2182 = vmatprep.mubr.msk.bf16.mxu1 %vm431_vm0, %v2435_v20  ;;  %v877_v20 = vunpack.c.0.s8 %v876_v8 }
  0x36   : > { %528 = vmatmul.mubr.bf16.gmra.mrb[4].mxu0 %v2437_v21  ;;  %592 = vmatmul.mubr.bf16.gmra.mrb[4].mxu1 %v2438_v22  ;;  %v879_v21 = vshrl.u32 %v878_v9, 7  ;;  %v759_v22 = vld [vmem:[#allocation2] sm:$0xff] }
  0x37   : > { %2175 = vmatprep.mubr.msk.bf16.mxu0 %vm431_vm0, %v2439_v23  ;;  %2183 = vmatprep.mubr.msk.bf16.mxu1 %vm431_vm0, %v2441_v24 }
  0x3e   : > { %536 = vmatmul.mubr.bf16.gmra.mrb[8].mxu0 %v2443_v25  ;;  %600 = vmatmul.mubr.bf16.gmra.mrb[8].mxu1 %v2444_v26  ;;  %v760_v26 = vld [vmem:[#allocation2 + $0x8] sm:$0xff] }
  0x3f   : > { %2176 = vmatprep.mubr.msk.bf16.mxu0 %vm431_vm0, %v2445_v27  ;;  %2184 = vmatprep.mubr.msk.bf16.mxu1 %vm431_vm0, %v2447_v28 }
  0x46   : > { %544 = vmatmul.mubr.bf16.gmra.mrb[12].mxu0 %v2449_v29  ;;  %608 = vmatmul.mubr.bf16.gmra.mrb[12].mxu1 %v2450_v30 }
  0x47   : > { %2177 = vmatprep.mubr.msk.bf16.mxu0 %vm431_vm0, %v2451_v31  ;;  %2185 = vmatprep.mubr.msk.bf16.mxu1 %vm431_vm0, %v2453_v32 }
  0x4e   : > { %552 = vmatmul.mubr.bf16.gmra.mrb[16].mxu0 %v2455_v33  ;;  %616 = vmatmul.mubr.bf16.gmra.mrb[16].mxu1 %v2456_v34  ;;  %v761_v33 = vld [vmem:[#allocation2 + $0x10] sm:$0x3] }
  0x4f   : > { %2178 = vmatprep.mubr.msk.bf16.mxu0 %vm431_vm0, %v2457_v35  ;;  %2186 = vmatprep.mubr.msk.bf16.mxu1 %vm431_vm0, %v2459_v36  ;;  %v2661_v35 = vsub.s32 %v877_v20, %v879_v21 }
  0x56   : > { %560 = vmatmul.mubr.bf16.gmra.mrb[20].mxu0 %v2461_v37  ;;  %624 = vmatmul.mubr.bf16.gmra.mrb[20].mxu1 %v2462_v38 }
  0x57   : > { %2179 = vmatprep.mubr.msk.bf16.mxu0 %vm431_vm0, %v2463_v39  ;;  %2187 = vmatprep.mubr.msk.bf16.mxu1 %vm431_vm0, %v2465_v40 }
  0x5e   : > { %568 = vmatmul.mubr.bf16.gmra.mrb[24].mxu0 %v2467_v41  ;;  %632 = vmatmul.mubr.bf16.gmra.mrb[24].mxu1 %v2468_v42 }
  0x5f   : > { %2180 = vmatprep.mubr.msk.bf16.mxu0 %vm431_vm0, %v2469_v43  ;;  %2188 = vmatprep.mubr.msk.bf16.mxu1 %vm431_vm0, %v2471_v44 }
  0x66   : > { %576 = vmatmul.mubr.bf16.gmra.mrb[28].mxu0 %v2473_v45  ;;  %640 = vmatmul.mubr.bf16.gmra.mrb[28].mxu1 %v2474_v46 }
 0x101   : > { %v521_v49 = vpop.f32.mrb[0].mxu0  ;;  %v585_v50 = vpop.f32.mrb[0].mxu1 }
 0x102   : > { %v522_v51 = vadd.f32 %v2641_v48, %v521_v49  ;;  %v586_v52 = vadd.f32 %v2641_v48, %v585_v50  ;;  %v523_v53 = vpop.f32.mrb[1].mxu0  ;;  %v587_v54 = vpop.f32.mrb[1].mxu1 }
 0x103   : > { %v524_v55 = vpop.f32.mrb[2].mxu0  ;;  %v588_v56 = vpop.f32.mrb[2].mxu1 }
 0x104   : > { %v648_v57 = vmax.f32 %v522_v51, 0.0  ;;  %v664_v58 = vmax.f32 %v586_v52, 0.0  ;;  %v525_v59 = vadd.f32 %v2641_v48, %v524_v55  ;;  %v589_v60 = vadd.f32 %v2641_v48, %v588_v56  ;;  %v526_v61 = vpop.f32.mrb[3].mxu0  ;;  %v590_v62 = vpop.f32.mrb[3].mxu1 }
 0x106   : > { %682 = vst.msk [vmem:[#allocation2 + $0x19] sm:$0xff] %vm681_vm3, %v648_v57  ;;  %698 = vst.msk [vmem:[#allocation2 + $0xd9] sm:$0xff] %vm681_vm3, %v664_v58  ;;  %v649_v63 = vmax.f32 %v525_v59, 0.0  ;;  %v665_v0 = vmax.f32 %v589_v60, 0.0 }
 0x108   : > { %683 = vst.msk [vmem:[#allocation2 + $0x21] sm:$0xff] %vm681_vm3, %v649_v63  ;;  %699 = vst.msk [vmem:[#allocation2 + $0xe1] sm:$0xff] %vm681_vm3, %v665_v0 }
 0x109   : > { %v529_v1 = vpop.f32.mrb[4].mxu0  ;;  %v593_v2 = vpop.f32.mrb[4].mxu1 }
 0x10a   : > { %v530_v3 = vadd.f32 %v2641_v48, %v529_v1  ;;  %v594_v4 = vadd.f32 %v2641_v48, %v593_v2  ;;  %v531_v5 = vpop.f32.mrb[5].mxu0  ;;  %v595_v6 = vpop.f32.mrb[5].mxu1 }
 0x10b   : > { %v532_v10 = vpop.f32.mrb[6].mxu0  ;;  %v596_v11 = vpop.f32.mrb[6].mxu1 }
 0x10c   : > { %v650_v12 = vmax.f32 %v530_v3, 0.0  ;;  %v666_v13 = vmax.f32 %v594_v4, 0.0  ;;  %v533_v14 = vadd.f32 %v2641_v48, %v532_v10  ;;  %v597_v15 = vadd.f32 %v2641_v48, %v596_v11  ;;  %v534_v16 = vpop.f32.mrb[7].mxu0  ;;  %v598_v17 = vpop.f32.mrb[7].mxu1 }
 0x10d   : > { %v762_v23 = vld [vmem:[#allocation2 + $0x18] sm:$0xff] }
 0x10e   : > { %684 = vst.msk [vmem:[#allocation2 + $0x31] sm:$0xff] %vm681_vm3, %v650_v12  ;;  %700 = vst.msk [vmem:[#allocation2 + $0xf1] sm:$0xff] %vm681_vm3, %v666_v13  ;;  %v651_v18 = vmax.f32 %v533_v14, 0.0  ;;  %v667_v19 = vmax.f32 %v597_v15, 0.0  ;;  %v810_v32 = vmax.f32 %v759_v22, %v762_v23 }
 0x10f   : > { %v763_v27 = vld [vmem:[#allocation2 + $0x20] sm:$0xff]  ;;  %v764_v34 = vld [vmem:[#allocation2 + $0x28] sm:$0x3] }
 0x110   : > { %685 = vst.msk [vmem:[#allocation2 + $0x39] sm:$0xff] %vm681_vm3, %v651_v18  ;;  %701 = vst.msk [vmem:[#allocation2 + $0xf9] sm:$0xff] %vm681_vm3, %v667_v19  ;;  %v811_v44 = vmax.f32 %v760_v26, %v763_v27  ;;  %v812_v46 = vmax.f32 %v761_v33, %v764_v34 }
 0x111   : > { %v537_v24 = vpop.f32.mrb[8].mxu0  ;;  %v601_v25 = vpop.f32.mrb[8].mxu1 }
 0x112   : > { %v538_v28 = vadd.f32 %v2641_v48, %v537_v24  ;;  %v602_v29 = vadd.f32 %v2641_v48, %v601_v25  ;;  %v539_v30 = vpop.f32.mrb[9].mxu0  ;;  %v603_v31 = vpop.f32.mrb[9].mxu1 }
 0x113   : > { %v540_v36 = vpop.f32.mrb[10].mxu0  ;;  %v604_v37 = vpop.f32.mrb[10].mxu1 }
 0x114   : > { %v652_v38 = vmax.f32 %v538_v28, 0.0  ;;  %v668_v39 = vmax.f32 %v602_v29, 0.0  ;;  %v541_v40 = vadd.f32 %v2641_v48, %v540_v36  ;;  %v605_v41 = vadd.f32 %v2641_v48, %v604_v37  ;;  %v542_v42 = vpop.f32.mrb[11].mxu0  ;;  %v606_v43 = vpop.f32.mrb[11].mxu1 }
 0x115   : > { %v2665_v45 = vld [vmem:[#allocation2 + $0x30] sm:$0xff] }
 0x116   : > { %v834_v47 = vmax.f32 %v810_v32, %v2665_v45  ;;  %686 = vst.msk [vmem:[#allocation2 + $0x49] sm:$0xff] %vm681_vm3, %v652_v38  ;;  %702 = vst.msk [vmem:[#allocation2 + $0x109] sm:$0xff] %vm681_vm3, %v668_v39  ;;  %v653_v49 = vmax.f32 %v541_v40, 0.0  ;;  %v669_v50 = vmax.f32 %v605_v41, 0.0 }
 0x117   : > { %v2670_v51 = vld [vmem:[#allocation2 + $0x38] sm:$0xff]  ;;  %v2672_v52 = vld [vmem:[#allocation2 + $0x40] sm:$0x3] }
 0x118   : > { %v874_v53 = vcombine.high %v834_v47, %v834_v47  ;;  %v881_v54 = vrot.slane %v834_v47, %v2661_v35  ;;  %v835_v55 = vmax.f32 %v811_v44, %v2670_v51  ;;  %v2677_v56 = vmax.f32 %v812_v46, %v2672_v52  ;;  %687 = vst.msk [vmem:[#allocation2 + $0x51] sm:$0xff] %vm681_vm3, %v653_v49 }
 0x119   : > { %703 = vst.msk [vmem:[#allocation2 + $0x111] sm:$0xff] %vm681_vm3, %v669_v50  ;;  %v545_v57 = vpop.f32.mrb[12].mxu0  ;;  %v609_v58 = vpop.f32.mrb[12].mxu1 }
 0x11a   : > { %v888_v59 = vrot.slane %v874_v53, %v2661_v35  ;;  %v889_v60 = vcombine.high %v881_v54, %v881_v54  ;;  %v2189_v61 = vrot.slane %v881_v54, 9  ;;  %v891_v62 = vcombine.high %v835_v55, %v835_v55  ;;  %v547_v63 = vpop.f32.mrb[13].mxu0  ;;  %v611_v0 = vpop.f32.mrb[13].mxu1 }
 0x11b   : > { %v898_v1 = vrot.slane %v835_v55, %v2661_v35  ;;  %v1224_v2 = vrot.slane %v2677_v56, %v2661_v35  ;;  %v546_v3 = vadd.f32 %v2641_v48, %v545_v57  ;;  %v2687_v4 = vadd.f32 %v2641_v48, %v609_v58  ;;  %v2689_v5 = vpop.f32.mrb[14].mxu0  ;;  %v2691_v6 = vpop.f32.mrb[14].mxu1 }
 0x11c   : > { %v890_v7 = vcombine.high %v888_v59, %v888_v59  ;;  %v2190_v8 = vrot.slane %v889_v60, 9  ;;  %v2191_v9 = vrot.slane %v888_v59, 9  ;;  %v1474_v10 = vmax.f32 %v881_v54, %v2189_v61  ;;  %v550_v11 = vpop.f32.mrb[15].mxu0  ;;  %v614_v12 = vpop.f32.mrb[15].mxu1 }
 0x11d   : > { %v905_v13 = vrot.slane %v891_v62, %v2661_v35  ;;  %v906_v14 = vcombine.high %v898_v1, %v898_v1  ;;  %v2193_v15 = vrot.slane %v898_v1, 9  ;;  %v654_v16 = vmax.f32 %v546_v3, 0.0  ;;  %v768_v33 = vld [vmem:[#allocation2 + $0x48] sm:$0xff] }
 0x11e   : > { %v1475_v17 = vmax.f32 %v889_v60, %v2190_v8  ;;  %v1476_v18 = vmax.f32 %v888_v59, %v2191_v9  ;;  %v1538_v19 = vmax.f32 %v1474_v10, %v889_v60  ;;  %v2192_v20 = vrot.slane %v890_v7, 9  ;;  %v2699_v49 = vld [vmem:[#allocation2 + $0x108] sm:$0xff]  ;;  %v2706_v60 = vld [vmem:[#allocation2 + $0xf0] sm:$0xff] }
 0x11f   : > { %v907_v21 = vcombine.high %v905_v13, %v905_v13  ;;  %v2194_v22 = vrot.slane %v906_v14, 9  ;;  %v2195_v23 = vrot.slane %v905_v13, 9  ;;  %v1478_v24 = vmax.f32 %v898_v1, %v2193_v15  ;;  %688 = vst.msk [vmem:[#allocation2 + $0x61] sm:$0xff] %vm681_vm3, %v654_v16  ;;  %v2710_v3 = vld [vmem:[#allocation2 + $0x58] sm:$0x3] }
 0x120   : > { %v1539_v25 = vmax.f32 %v1475_v17, %v888_v59  ;;  %v1540_v26 = vmax.f32 %v1476_v18, %v890_v7  ;;  %v2321_v27 = vpack.c.bf16 %v1538_v19, %v1538_v19  ;;  %v1477_v28 = vmax.f32 %v890_v7, %v2192_v20  ;;  %v2721_v18 = vld [vmem:[#allocation2 + $0xf8] sm:$0xff] }
 0x121   : > { %v2196_v29 = vrot.slane %v907_v21, 9  ;;  %v1479_v30 = vmax.f32 %v906_v14, %v2194_v22  ;;  %v1480_v31 = vmax.f32 %v905_v13, %v2195_v23  ;;  %v1542_v32 = vmax.f32 %v1478_v24, %v906_v14  ;;  %v2695_v34 = vpop.f32.mrb[16].mxu0  ;;  %v2697_v36 = vpop.f32.mrb[16].mxu1  ;;  %v2714_v14 = vld [vmem:[#allocation2 + $0x110] sm:$0xff] }
 0x122   : > { %v2322_v37 = vpack.c.bf16 %v1539_v25, %v1539_v25  ;;  %v2323_v38 = vpack.c.bf16 %v1540_v26, %v1540_v26  ;;  %v1858_v39 = vunpack.c.l.b16 %v2321_v27  ;;  %v1541_v40 = vmax.f32 %v1477_v28, %v898_v1  ;;  %v555_v41 = vpop.f32.mrb[17].mxu0  ;;  %v619_v42 = vpop.f32.mrb[17].mxu1  ;;  %v2708_v1 = vld [vmem:[#allocation2 + $0x50] sm:$0xff]  ;;  %v2728_v25 = vld [vmem:[#allocation2 + $0x100] sm:$0x3] }
 0x123   : > { %v1481_v43 = vmax.f32 %v907_v21, %v2196_v29  ;;  %v1543_v44 = vmax.f32 %v1479_v30, %v905_v13  ;;  %v1544_v46 = vmax.f32 %v1480_v31, %v907_v21  ;;  %v2325_v47 = vpack.c.bf16 %v1542_v32, %v1542_v32  ;;  %v2701_v50 = vpop.f32.mrb[18].mxu0  ;;  %v2703_v53 = vpop.f32.mrb[18].mxu1 }
 0x124   : > { %v1859_v54 = vunpack.c.l.b16 %v2322_v37  ;;  %v1860_v55 = vunpack.c.l.b16 %v2323_v38  ;;  %v2324_v56 = vpack.c.bf16 %v1541_v40, %v1541_v40  ;;  %v813_v57 = vmax.f32 %v2665_v45, %v768_v33  ;;  %v558_v58 = vpop.f32.mrb[19].mxu0  ;;  %v622_v59 = vpop.f32.mrb[19].mxu1 }
 0x125   : > { %v1545_v61 = vmax.f32 %v1481_v43, %v1224_v2  ;;  %v2326_v62 = vpack.c.bf16 %v1543_v44, %v1543_v44  ;;  %v2327_v63 = vpack.c.bf16 %v1544_v46, %v1544_v46  ;;  %v1862_v0 = vunpack.c.l.b16 %v2325_v47  ;;  %v2716_v2 = vld [vmem:[#allocation2 + $0x118] sm:$0x3] }
 0x126   : > { %v1922_v7 = vrot.slane %v1859_v54, 7  ;;  %v1925_v8 = vrot.slane %v1860_v55, 6  ;;  %v1861_v9 = vunpack.c.l.b16 %v2324_v56  ;;  %v825_v10 = vmax.f32 %v2706_v60, %v2699_v49  ;;  %v2718_v15 = vld [vmem:[#allocation2 + $0x60] sm:$0xff] }
 0x127   : > { %v2328_v45 = vpack.c.bf16 %v1545_v61, %v1545_v61  ;;  %v1863_v11 = vunpack.c.l.b16 %v2326_v62  ;;  %v1864_v12 = vunpack.c.l.b16 %v2327_v63  ;;  %v1931_v13 = vrot.slane %v1862_v0, 4 }
 0x128   : > { %v1924_v16 = vsel %vm1923_vm6, %v1922_v7, %v1858_v39  ;;  %v1928_v17 = vrot.slane %v1861_v9, 5  ;;  %v814_v19 = vmax.f32 %v2670_v51, %v2708_v1  ;;  %v815_v20 = vmax.f32 %v2672_v52, %v2710_v3 }
 0x129   : > { %v1927_v21 = vsel %vm1926_vm7, %v1925_v8, %v1924_v16  ;;  %v1865_v22 = vunpack.c.l.b16 %v2328_v45  ;;  %v1934_v23 = vrot.slane %v1863_v11, 3  ;;  %v1937_v24 = vrot.slane %v1864_v12, 2  ;;  %v561_v26 = vpop.f32.mrb[20].mxu0  ;;  %v625_v27 = vpop.f32.mrb[20].mxu1 }
 0x12a   : > { %v1930_v28 = vsel %vm1929_vm8, %v1928_v17, %v1927_v21  ;;  %v826_v29 = vmax.f32 %v2721_v18, %v2714_v14  ;;  %v827_v30 = vmax.f32 %v2728_v25, %v2716_v2  ;;  %v837_v31 = vmax.f32 %v813_v57, %v2718_v15  ;;  %v563_v32 = vpop.f32.mrb[21].mxu0  ;;  %v627_v33 = vpop.f32.mrb[21].mxu1 }
 0x12b   : > { %v1933_v37 = vsel %vm1932_vm9, %v1931_v13, %v1930_v28  ;;  %v1940_v38 = vrot.slane %v1865_v22, 1  ;;  %v670_v39 = vmax.f32 %v2687_v4, 0.0  ;;  %v549_v40 = vadd.f32 %v2641_v48, %v2689_v5  ;;  %v564_v41 = vpop.f32.mrb[22].mxu0  ;;  %v628_v42 = vpop.f32.mrb[22].mxu1 }
 0x12c   : > { %v1936_v43 = vsel %vm1935_vm10, %v1934_v23, %v1933_v37  ;;  %v908_v44 = vcombine.high %v837_v31, %v837_v31  ;;  %v915_v46 = vrot.slane %v837_v31, %v2661_v35  ;;  %v613_v47 = vadd.f32 %v2641_v48, %v2691_v6  ;;  %v566_v54 = vpop.f32.mrb[23].mxu0  ;;  %v630_v55 = vpop.f32.mrb[23].mxu1 }
 0x12d   : > { %v1939_v56 = vsel %vm1938_vm11, %v1937_v24, %v1936_v43  ;;  %704 = vst.msk [vmem:[#allocation2 + $0x121] sm:$0xff] %vm681_vm3, %v670_v39  ;;  %v655_v4 = vmax.f32 %v549_v40, 0.0  ;;  %v554_v5 = vadd.f32 %v2641_v48, %v2695_v34  ;;  %v618_v57 = vadd.f32 %v2641_v48, %v2697_v36 }
 0x12e   : > { %v1942_v6 = vsel %vm1941_vm12, %v1940_v38, %v1939_v56  ;;  %v922_v58 = vrot.slane %v908_v44, %v2661_v35  ;;  %v923_v59 = vcombine.high %v915_v46, %v915_v46  ;;  %v2197_v61 = vrot.slane %v915_v46, 9 }
 0x12f   : > { %v2041_v62 = vpack.c.b16 %v1942_v6, %v1942_v6  ;;  %689 = vst.msk [vmem:[#allocation2 + $0x69] sm:$0xff] %vm681_vm3, %v655_v4  ;;  %v671_v63 = vmax.f32 %v613_v47, 0.0  ;;  %v656_v34 = vmax.f32 %v554_v5, 0.0  ;;  %v672_v0 = vmax.f32 %v618_v57, 0.0 }
 0x130   : > { %v924_v7 = vcombine.high %v922_v58, %v922_v58  ;;  %v2198_v36 = vrot.slane %v923_v59, 9  ;;  %v2199_v8 = vrot.slane %v922_v58, 9  ;;  %v1482_v9 = vmax.f32 %v915_v46, %v2197_v61 }
 0x131   : > { %2058 = vst.msk [vmem:[%s2754_s17] sm:$0xf] %vm2057_vm13, %v2041_v62  ;;  %v557_v45 = vadd.f32 %v2641_v48, %v2701_v50  ;;  %v621_v11 = vadd.f32 %v2641_v48, %v2703_v53  ;;  %v562_v12 = vadd.f32 %v2641_v48, %v561_v26  ;;  %v626_v13 = vadd.f32 %v2641_v48, %v625_v27  ;;  %v569_v16 = vpop.f32.mrb[24].mxu0  ;;  %v633_v17 = vpop.f32.mrb[24].mxu1 }
 0x132   : > { %705 = vst.msk [vmem:[#allocation2 + $0x129] sm:$0xff] %vm681_vm3, %v671_v63  ;;  %690 = vst.msk [vmem:[#allocation2 + $0x79] sm:$0xff] %vm681_vm3, %v656_v34  ;;  %v1483_v21 = vmax.f32 %v923_v59, %v2198_v36  ;;  %v1484_v22 = vmax.f32 %v922_v58, %v2199_v8  ;;  %v1546_v23 = vmax.f32 %v1482_v9, %v923_v59  ;;  %v2200_v24 = vrot.slane %v924_v7, 9  ;;  %v571_v28 = vpop.f32.mrb[25].mxu0  ;;  %v635_v31 = vpop.f32.mrb[25].mxu1 }
 0x133   : > { %706 = vst.msk [vmem:[#allocation2 + $0x139] sm:$0xff] %vm681_vm3, %v672_v0  ;;  %v657_v32 = vmax.f32 %v557_v45, 0.0  ;;  %v673_v33 = vmax.f32 %v621_v11, 0.0  ;;  %v658_v37 = vmax.f32 %v562_v12, 0.0  ;;  %v674_v38 = vmax.f32 %v626_v13, 0.0  ;;  %v2770_v50 = vpop.f32.mrb[26].mxu0 }
 0x134   : > { %v2772_v39 = vpop.f32.mrb[26].mxu1  ;;  %v1547_v53 = vmax.f32 %v1483_v21, %v922_v58  ;;  %v1548_v26 = vmax.f32 %v1484_v22, %v924_v7  ;;  %v2329_v40 = vpack.c.bf16 %v1546_v23, %v1546_v23  ;;  %v2774_v27 = vld [vmem:[#allocation2 + $0x120] sm:$0xff]  ;;  %v1485_v43 = vmax.f32 %v924_v7, %v2200_v24  ;;  %v574_v44 = vpop.f32.mrb[27].mxu0 }
 0x135   : > { %v638_v46 = vpop.f32.mrb[27].mxu1  ;;  %v849_v47 = vmax.f32 %v825_v10, %v2774_v27  ;;  %691 = vst.msk [vmem:[#allocation2 + $0x81] sm:$0xff] %vm681_vm3, %v657_v32  ;;  %707 = vst.msk [vmem:[#allocation2 + $0x141] sm:$0xff] %vm681_vm3, %v673_v33  ;;  %v565_v54 = vadd.f32 %v2641_v48, %v564_v41  ;;  %v629_v55 = vadd.f32 %v2641_v48, %v628_v42 }
 0x136   : > { %692 = vst.msk [vmem:[#allocation2 + $0x91] sm:$0xff] %vm681_vm3, %v658_v37  ;;  %708 = vst.msk [vmem:[#allocation2 + $0x151] sm:$0xff] %vm681_vm3, %v674_v38  ;;  %v2787_v56 = vadd.f32 %v2641_v48, %v569_v16  ;;  %v2330_v4 = vpack.c.bf16 %v1547_v53, %v1547_v53  ;;  %v2331_v5 = vpack.c.bf16 %v1548_v26, %v1548_v26  ;;  %v1866_v57 = vunpack.c.l.b16 %v2329_v40  ;;  %v2789_v49 = vld [vmem:[#allocation2 + $0x68] sm:$0xff]  ;;  %v2791_v10 = vld [vmem:[#allocation2 + $0x70] sm:$0x3] }
 0x137   : > { %v2794_v6 = vadd.f32 %v2641_v48, %v633_v17  ;;  %v1044_v58 = vcombine.high %v849_v47, %v849_v47  ;;  %v1051_v59 = vrot.slane %v849_v47, %v2661_v35  ;;  %v838_v41 = vmax.f32 %v814_v19, %v2789_v49 }
 0x138   : > { %v839_v42 = vmax.f32 %v815_v20, %v2791_v10  ;;  %v1867_v61 = vunpack.c.l.b16 %v2330_v4  ;;  %v1868_v62 = vunpack.c.l.b16 %v2331_v5  ;;  %v659_v63 = vmax.f32 %v565_v54, 0.0 }
 0x139   : > { %v675_v34 = vmax.f32 %v629_v55, 0.0  ;;  %v1058_v48 = vrot.slane %v1044_v58, %v2661_v35  ;;  %v1059_v0 = vcombine.high %v1051_v59, %v1051_v59  ;;  %v2229_v7 = vrot.slane %v1051_v59, 9  ;;  %v2806_v8 = vpop.f32.mrb[28].mxu0  ;;  %v2808_v9 = vpop.f32.mrb[28].mxu1 }
 0x13a   : > { %v925_v36 = vcombine.high %v838_v41, %v838_v41  ;;  %v1943_v51 = vrot.slane %v1867_v61, 7  ;;  %v1945_v1 = vrot.slane %v1868_v62, 6  ;;  %v932_v19 = vrot.slane %v838_v41, %v2661_v35  ;;  %693 = vst.msk [vmem:[#allocation2 + $0x99] sm:$0xff] %vm681_vm3, %v659_v63  ;;  %v579_v3 = vpop.f32.mrb[29].mxu0  ;;  %v643_v20 = vpop.f32.mrb[29].mxu1 }
 0x13b   : > { %v1231_v52 = vrot.slane %v839_v42, %v2661_v35  ;;  %709 = vst.msk [vmem:[#allocation2 + $0x159] sm:$0xff] %vm681_vm3, %v675_v34  ;;  %v2814_v45 = vcombine.high %v1058_v48, %v1058_v48  ;;  %v2230_v11 = vrot.slane %v1059_v0, 9  ;;  %v2231_v12 = vrot.slane %v1058_v48, 9  ;;  %v2816_v16 = vpop.f32.mrb[30].mxu0  ;;  %v2818_v17 = vpop.f32.mrb[30].mxu1 }
 0x13c   : > { %v1514_v13 = vmax.f32 %v1051_v59, %v2229_v7  ;;  %v1944_v21 = vsel %vm1923_vm6, %v1943_v51, %v1866_v57  ;;  %v939_v22 = vrot.slane %v925_v36, %v2661_v35  ;;  %v940_v23 = vcombine.high %v932_v19, %v932_v19  ;;  %v582_v28 = vpop.f32.mrb[31].mxu0  ;;  %v646_v38 = vpop.f32.mrb[31].mxu1  ;;  %v2824_v59 = vld [vmem:[#allocation2 + $0x128] sm:$0xff]  ;;  %v2826_v36 = vld [vmem:[#allocation2 + $0x130] sm:$0x3] }
 0x13d   : > { %v2201_v24 = vrot.slane %v932_v19, 9  ;;  %v1946_v31 = vsel %vm1926_vm7, %v1945_v1, %v1944_v21  ;;  %v1515_v32 = vmax.f32 %v1059_v0, %v2230_v11  ;;  %v1516_v33 = vmax.f32 %v1058_v48, %v2231_v12 }
 0x13e   : > { %v1578_v37 = vmax.f32 %v1514_v13, %v1059_v0  ;;  %v941_v53 = vcombine.high %v939_v22, %v939_v22  ;;  %v2202_v26 = vrot.slane %v940_v23, 9  ;;  %v2203_v40 = vrot.slane %v939_v22, 9 }
 0x13f   : > { %v1486_v44 = vmax.f32 %v932_v19, %v2201_v24  ;;  %v1579_v46 = vmax.f32 %v1515_v32, %v1058_v48  ;;  %v1580_v47 = vmax.f32 %v1516_v33, %v2814_v45  ;;  %v1549_v55 = vmax.f32 %v1485_v43, %v932_v19 }
 0x140   : > { %v2361_v54 = vpack.c.bf16 %v1578_v37, %v1578_v37  ;;  %v2204_v4 = vrot.slane %v941_v53, 9  ;;  %v1487_v5 = vmax.f32 %v940_v23, %v2202_v26  ;;  %v1488_v57 = vmax.f32 %v939_v22, %v2203_v40 }
 0x141   : > { %v1550_v58 = vmax.f32 %v1486_v44, %v940_v23  ;;  %v2362_v41 = vpack.c.bf16 %v1579_v46, %v1579_v46  ;;  %v2363_v42 = vpack.c.bf16 %v1580_v47, %v1580_v47  ;;  %v2332_v62 = vpack.c.bf16 %v1549_v55, %v1549_v55  ;;  %v774_v46 = vld [vmem:[#allocation2 + $0x78] sm:$0xff] }
 0x142   : > { %v1898_v61 = vunpack.c.l.b16 %v2361_v54  ;;  %v1489_v63 = vmax.f32 %v941_v53, %v2204_v4  ;;  %v1551_v34 = vmax.f32 %v1487_v5, %v939_v22  ;;  %v1552_v0 = vmax.f32 %v1488_v57, %v941_v53 }
 0x143   : > { %v2333_v7 = vpack.c.bf16 %v1550_v58, %v1550_v58  ;;  %v1899_v48 = vunpack.c.l.b16 %v2362_v41  ;;  %v1900_v51 = vunpack.c.l.b16 %v2363_v42  ;;  %v1869_v1 = vunpack.c.l.b16 %v2332_v62  ;;  %v798_v41 = vld [vmem:[#allocation2 + $0x138] sm:$0xff]  ;;  %v775_v42 = vld [vmem:[#allocation2 + $0x80] sm:$0xff] }
 0x144   : > { %v850_v43 = vmax.f32 %v826_v29, %v2824_v59  ;;  %v1553_v19 = vmax.f32 %v1489_v63, %v1231_v52  ;;  %v2334_v3 = vpack.c.bf16 %v1551_v34, %v1551_v34  ;;  %v2335_v20 = vpack.c.bf16 %v1552_v0, %v1552_v0  ;;  %v2851_v0 = vld [vmem:[#allocation2 + $0x88] sm:$0x3] }
 0x145   : > { %v1870_v11 = vunpack.c.l.b16 %v2333_v7  ;;  %v1999_v12 = vrot.slane %v1899_v48, 7  ;;  %v2001_v13 = vrot.slane %v1900_v51, 6  ;;  %v1947_v21 = vrot.slane %v1869_v1, 5 }
 0x146   : > { %v851_v22 = vmax.f32 %v827_v30, %v2826_v36  ;;  %v2336_v23 = vpack.c.bf16 %v1553_v19, %v1553_v19  ;;  %v1871_v24 = vunpack.c.l.b16 %v2334_v3  ;;  %v1872_v28 = vunpack.c.l.b16 %v2335_v20  ;;  %v2855_v19 = vld [vmem:[#allocation2 + $0x148] sm:$0x3] }
 0x147   : > { %v1949_v32 = vrot.slane %v1870_v11, 4  ;;  %v2000_v33 = vsel %vm1923_vm6, %v1999_v12, %v1898_v61  ;;  %v1948_v14 = vsel %vm1929_vm8, %v1947_v21, %v1946_v31  ;;  %v1061_v29 = vcombine.high %v850_v43, %v850_v43 }
 0x148   : > { %v1068_v52 = vrot.slane %v850_v43, %v2661_v35  ;;  %v2840_v37 = vsel %vm1926_vm7, %v2001_v13, %v2000_v33  ;;  %v1873_v38 = vunpack.c.l.b16 %v2336_v23  ;;  %v1951_v26 = vrot.slane %v1871_v24, 3  ;;  %v2853_v43 = vld [vmem:[#allocation2 + $0x140] sm:$0xff]  ;;  %v2865_v23 = vld [vmem:[#allocation2 + $0x150] sm:$0xff]  ;;  %v2867_v24 = vld [vmem:[#allocation2 + $0x98] sm:$0xff] }
 0x149   : > { %v1950_v53 = vsel %vm1932_vm9, %v1949_v32, %v1948_v14  ;;  %v1953_v2 = vrot.slane %v1872_v28, 2  ;;  %v1075_v30 = vrot.slane %v1061_v29, %v2661_v35  ;;  %v1259_v44 = vrot.slane %v851_v22, %v2661_v35 }
 0x14a   : > { %v1076_v40 = vcombine.high %v1068_v52, %v1068_v52  ;;  %v1952_v47 = vsel %vm1935_vm10, %v1951_v26, %v1950_v53  ;;  %v1955_v31 = vrot.slane %v1873_v38, 1  ;;  %v2232_v54 = vrot.slane %v2814_v45, 9 }
 0x14b   : > { %v2233_v55 = vrot.slane %v1068_v52, 9  ;;  %v1954_v4 = vsel %vm1938_vm11, %v1953_v2, %v1952_v47  ;;  %v1077_v5 = vcombine.high %v1075_v30, %v1075_v30  ;;  %v2235_v58 = vrot.slane %v1075_v30, 9 }
 0x14c   : > { %v2234_v57 = vrot.slane %v1076_v40, 9  ;;  %v1956_v61 = vsel %vm1941_vm12, %v1955_v31, %v1954_v4  ;;  %v1517_v62 = vmax.f32 %v2814_v45, %v2232_v54  ;;  %v816_v34 = vmax.f32 %v2718_v15, %v774_v46  ;;  %v2859_v45 = vld [vmem:[#allocation2 + $0x90] sm:$0xff] }
 0x14d   : > { %v1518_v63 = vmax.f32 %v1068_v52, %v2233_v55  ;;  %v2042_v7 = vpack.c.b16 %v1956_v61, %v1956_v61  ;;  %v2236_v48 = vrot.slane %v1077_v5, 9  ;;  %v1520_v1 = vmax.f32 %v1075_v30, %v2235_v58 }
 0x14e   : > { %v1519_v51 = vmax.f32 %v1076_v40, %v2234_v57  ;;  %v1581_v3 = vmax.f32 %v1517_v62, %v1068_v52  ;;  %v828_v11 = vmax.f32 %v2774_v27, %v798_v41  ;;  %v817_v12 = vmax.f32 %v2789_v49, %v775_v42 }
 0x14f   : > { %v1582_v20 = vmax.f32 %v1518_v63, %v1076_v40  ;;  %2059 = vst.msk [vmem:[%s2754_s17 + $0x4] sm:$0xf] %vm2057_vm13, %v2042_v7  ;;  %v1521_v15 = vmax.f32 %v1077_v5, %v2236_v48  ;;  %v1584_v21 = vmax.f32 %v1520_v1, %v1077_v5  ;;  %v818_v22 = vmax.f32 %v2791_v10, %v2851_v0 }
 0x150   : > { %v1583_v13 = vmax.f32 %v1519_v51, %v1075_v30  ;;  %v2364_v28 = vpack.c.bf16 %v1581_v3, %v1581_v3  ;;  %v829_v27 = vmax.f32 %v2824_v59, %v2853_v43  ;;  %v830_v49 = vmax.f32 %v2826_v36, %v2855_v19 }
 0x151   : > { %v2365_v32 = vpack.c.bf16 %v1582_v20, %v1582_v20  ;;  %v1585_v33 = vmax.f32 %v1521_v15, %v1259_v44  ;;  %v2367_v29 = vpack.c.bf16 %v1584_v21, %v1584_v21  ;;  %v840_v52 = vmax.f32 %v816_v34, %v2859_v45 }
 0x152   : > { %v2366_v14 = vpack.c.bf16 %v1583_v13, %v1583_v13  ;;  %v1901_v38 = vunpack.c.l.b16 %v2364_v28  ;;  %v852_v10 = vmax.f32 %v828_v11, %v2865_v23  ;;  %v841_v26 = vmax.f32 %v817_v12, %v2867_v24  ;;  %v2885_v12 = vld [vmem:[#allocation2 + $0xa0] sm:$0x3] }
 0x153   : > { %v1902_v53 = vunpack.c.l.b16 %v2365_v32  ;;  %v2368_v2 = vpack.c.bf16 %v1585_v33, %v1585_v33  ;;  %v1904_v40 = vunpack.c.l.b16 %v2367_v29  ;;  %v942_v46 = vcombine.high %v840_v52, %v840_v52 }
 0x154   : > { %v1903_v30 = vunpack.c.l.b16 %v2366_v14  ;;  %v2003_v47 = vrot.slane %v1901_v38, 5  ;;  %v949_v54 = vrot.slane %v840_v52, %v2661_v35  ;;  %v1078_v55 = vcombine.high %v852_v10, %v852_v10 }
 0x155   : > { %v2005_v31 = vrot.slane %v1902_v53, 4  ;;  %v1905_v44 = vunpack.c.l.b16 %v2368_v2  ;;  %v2009_v5 = vrot.slane %v1904_v40, 2  ;;  %v956_v57 = vrot.slane %v942_v46, %v2661_v35 }
 0x156   : > { %v2007_v4 = vrot.slane %v1903_v30, 3  ;;  %v2004_v58 = vsel %vm1929_vm8, %v2003_v47, %v2840_v37  ;;  %v957_v41 = vcombine.high %v949_v54, %v949_v54  ;;  %v2205_v42 = vrot.slane %v949_v54, 9 }
 0x157   : > { %v1085_v61 = vrot.slane %v852_v10, %v2661_v35  ;;  %v2006_v62 = vsel %vm1932_vm9, %v2005_v31, %v2004_v58  ;;  %v2011_v63 = vrot.slane %v1905_v44, 1  ;;  %v958_v34 = vcombine.high %v956_v57, %v956_v57 }
 0x158   : > { %v2207_v0 = vrot.slane %v956_v57, 9  ;;  %v2008_v7 = vsel %vm1935_vm10, %v2007_v4, %v2006_v62  ;;  %v2206_v48 = vrot.slane %v957_v41, 9  ;;  %v1490_v51 = vmax.f32 %v949_v54, %v2205_v42 }
 0x159   : > { %v1092_v1 = vrot.slane %v1078_v55, %v2661_v35  ;;  %v2010_v3 = vsel %vm1938_vm11, %v2009_v5, %v2008_v7  ;;  %v1093_v37 = vcombine.high %v1085_v61, %v1085_v61  ;;  %v2237_v11 = vrot.slane %v1085_v61, 9 }
 0x15a   : > { %v1492_v20 = vmax.f32 %v956_v57, %v2207_v0  ;;  %v2012_v15 = vsel %vm1941_vm12, %v2011_v63, %v2010_v3  ;;  %v1491_v13 = vmax.f32 %v957_v41, %v2206_v48  ;;  %v1554_v21 = vmax.f32 %v1490_v51, %v957_v41 }
 0x15b   : > { %v2888_v28 = vcombine.high %v1092_v1, %v1092_v1  ;;  %v2046_v32 = vpack.c.b16 %v2012_v15, %v2012_v15  ;;  %v2238_v14 = vrot.slane %v1093_v37, 9  ;;  %v2239_v29 = vrot.slane %v1092_v1, 9 }
 0x15c   : > { %v1556_v33 = vmax.f32 %v1492_v20, %v958_v34  ;;  %v1555_v52 = vmax.f32 %v1491_v13, %v956_v57  ;;  %v2337_v38 = vpack.c.bf16 %v1554_v21, %v1554_v21  ;;  %v1522_v53 = vmax.f32 %v1085_v61, %v2237_v11 }
 0x15d   : > { %v842_v10 = vmax.f32 %v818_v22, %v2885_v12  ;;  %2063 = vst.msk [vmem:[%s2754_s17 + $0x14] sm:$0xf] %vm2057_vm13, %v2046_v32  ;;  %v1523_v30 = vmax.f32 %v1093_v37, %v2238_v14  ;;  %v1524_v40 = vmax.f32 %v1092_v1, %v2239_v29  ;;  %v959_v46 = vcombine.high %v841_v26, %v841_v26  ;;  %v2898_v32 = vld [vmem:[#allocation2 + $0x158] sm:$0xff] }
 0x15e   : > { %v2339_v2 = vpack.c.bf16 %v1556_v33, %v1556_v33  ;;  %v2338_v47 = vpack.c.bf16 %v1555_v52, %v1555_v52  ;;  %v1874_v31 = vunpack.c.l.b16 %v2337_v38  ;;  %v1586_v54 = vmax.f32 %v1522_v53, %v1093_v37  ;;  %v2900_v33 = vld [vmem:[#allocation2 + $0x160] sm:$0x3] }
 0x15f   : > { %v966_v55 = vrot.slane %v841_v26, %v2661_v35  ;;  %v1587_v4 = vmax.f32 %v1523_v30, %v1092_v1  ;;  %v1588_v5 = vmax.f32 %v1524_v40, %v2888_v28  ;;  %v973_v57 = vrot.slane %v959_v46, %v2661_v35 }
 0x160   : > { %v1876_v44 = vunpack.c.l.b16 %v2339_v2  ;;  %v1875_v58 = vunpack.c.l.b16 %v2338_v47  ;;  %v2369_v41 = vpack.c.bf16 %v1586_v54, %v1586_v54  ;;  %v1238_v42 = vrot.slane %v842_v10, %v2661_v35 }
 0x161   : > { %v974_v22 = vcombine.high %v966_v55, %v966_v55  ;;  %v2370_v62 = vpack.c.bf16 %v1587_v4, %v1587_v4  ;;  %v2371_v63 = vpack.c.bf16 %v1588_v5, %v1588_v5  ;;  %v975_v0 = vcombine.high %v973_v57, %v973_v57 }
 0x162   : > { %v1959_v61 = vrot.slane %v1876_v44, 6  ;;  %v1957_v7 = vrot.slane %v1875_v58, 7  ;;  %v1906_v48 = vunpack.c.l.b16 %v2369_v41  ;;  %v2208_v51 = vrot.slane %v958_v34, 9 }
 0x163   : > { %v2209_v3 = vrot.slane %v966_v55, 9  ;;  %v1907_v26 = vunpack.c.l.b16 %v2370_v62  ;;  %v1908_v20 = vunpack.c.l.b16 %v2371_v63  ;;  %v2210_v1 = vrot.slane %v974_v22, 9 }
 0x164   : > { %v2211_v37 = vrot.slane %v973_v57, 9  ;;  %v1958_v11 = vsel %vm1923_vm6, %v1957_v7, %v1874_v31  ;;  %v2212_v15 = vrot.slane %v975_v0, 9  ;;  %v1493_v13 = vmax.f32 %v958_v34, %v2208_v51 }
 0x165   : > { %v1494_v21 = vmax.f32 %v966_v55, %v2209_v3  ;;  %v1960_v14 = vsel %vm1926_vm7, %v1959_v61, %v1958_v11  ;;  %v2013_v29 = vrot.slane %v1907_v26, 7  ;;  %v2015_v52 = vrot.slane %v1908_v20, 6 }
 0x166   : > { %v1495_v38 = vmax.f32 %v974_v22, %v2210_v1  ;;  %v1496_v53 = vmax.f32 %v973_v57, %v2211_v37  ;;  %v1497_v10 = vmax.f32 %v975_v0, %v2212_v15  ;;  %v1557_v2 = vmax.f32 %v1493_v13, %v966_v55 }
 0x167   : > { %v1558_v30 = vmax.f32 %v1494_v21, %v974_v22  ;;  %v2014_v40 = vsel %vm1923_vm6, %v2013_v29, %v1906_v48  ;;  %v853_v34 = vmax.f32 %v829_v27, %v2898_v32  ;;  %v854_v47 = vmax.f32 %v830_v49, %v2900_v33 }
 0x168   : > { %v1559_v46 = vmax.f32 %v1495_v38, %v973_v57  ;;  %v2913_v31 = vsel %vm1926_vm7, %v2015_v52, %v2014_v40  ;;  %v1560_v54 = vmax.f32 %v1496_v53, %v975_v0  ;;  %v1561_v44 = vmax.f32 %v1497_v10, %v1238_v42 }
 0x169   : > { %v2340_v55 = vpack.c.bf16 %v1557_v2, %v1557_v2  ;;  %v2341_v4 = vpack.c.bf16 %v1558_v30, %v1558_v30  ;;  %v1095_v58 = vcombine.high %v853_v34, %v853_v34  ;;  %v1102_v57 = vrot.slane %v853_v34, %v2661_v35 }
 0x16a   : > { %v2342_v5 = vpack.c.bf16 %v1559_v46, %v1559_v46  ;;  %v2343_v41 = vpack.c.bf16 %v1560_v54, %v1560_v54  ;;  %v2344_v22 = vpack.c.bf16 %v1561_v44, %v1561_v44  ;;  %v1266_v43 = vrot.slane %v854_v47, %v2661_v35 }
 0x16b   : > { %v1877_v59 = vunpack.c.l.b16 %v2340_v55  ;;  %v1878_v27 = vunpack.c.l.b16 %v2341_v4  ;;  %v1109_v36 = vrot.slane %v1095_v58, %v2661_v35  ;;  %v1110_v19 = vcombine.high %v1102_v57, %v1102_v57  ;;  %v2475_v4 = vld [vmem:[%s3068_s2] ss:$0 sm:$0xff] }
 0x16c   : > { %v1879_v61 = vunpack.c.l.b16 %v2342_v5  ;;  %v1880_v49 = vunpack.c.l.b16 %v2343_v41  ;;  %v1881_v62 = vunpack.c.l.b16 %v2344_v22  ;;  %v2240_v42 = vrot.slane %v2888_v28, 9 }
 0x16d   : > { %v1961_v63 = vrot.slane %v1877_v59, 5  ;;  %v1963_v0 = vrot.slane %v1878_v27, 4  ;;  %v1111_v48 = vcombine.high %v1109_v36, %v1109_v36  ;;  %v2241_v51 = vrot.slane %v1102_v57, 9 }
 0x16e   : > { %v1965_v7 = vrot.slane %v1879_v61, 3  ;;  %v1967_v26 = vrot.slane %v1880_v49, 2  ;;  %v1969_v20 = vrot.slane %v1881_v62, 1  ;;  %v2242_v1 = vrot.slane %v1110_v19, 9 }
 0x16f   : > { %v1962_v3 = vsel %vm1929_vm8, %v1961_v63, %v1960_v14  ;;  %v2243_v11 = vrot.slane %v1109_v36, 9  ;;  %v2244_v15 = vrot.slane %v1111_v48, 9  ;;  %v1525_v13 = vmax.f32 %v2888_v28, %v2240_v42 }
 0x170   : > { %v1964_v37 = vsel %vm1932_vm9, %v1963_v0, %v1962_v3  ;;  %v1526_v29 = vmax.f32 %v1102_v57, %v2241_v51  ;;  %v1527_v52 = vmax.f32 %v1110_v19, %v2242_v1  ;;  %v660_v38 = vmax.f32 %v2787_v56, 0.0 }
 0x171   : > { %v1966_v21 = vsel %vm1935_vm10, %v1965_v7, %v1964_v37  ;;  %v1528_v10 = vmax.f32 %v1109_v36, %v2243_v11  ;;  %v1529_v2 = vmax.f32 %v1111_v48, %v2244_v15  ;;  %v1589_v14 = vmax.f32 %v1525_v13, %v1102_v57  ;;  %v786_v15 = vld [vmem:[#allocation2 + $0xd8] sm:$0xff] }
 0x172   : > { %v1968_v53 = vsel %vm1938_vm11, %v1967_v26, %v1966_v21  ;;  %v1590_v40 = vmax.f32 %v1526_v29, %v1110_v19  ;;  %v1591_v46 = vmax.f32 %v1527_v52, %v1109_v36  ;;  %694 = vst.msk [vmem:[#allocation2 + $0xa9] sm:$0xff] %vm681_vm3, %v660_v38  ;;  %v676_v28 = vmax.f32 %v2794_v6, 0.0 }
 0x173   : > { %v1970_v30 = vsel %vm1941_vm12, %v1969_v20, %v1968_v53  ;;  %v1592_v47 = vmax.f32 %v1528_v10, %v1111_v48  ;;  %v1593_v54 = vmax.f32 %v1529_v2, %v1266_v43  ;;  %v2372_v44 = vpack.c.bf16 %v1589_v14, %v1589_v14 }
 0x174   : > { %v2043_v34 = vpack.c.b16 %v1970_v30, %v1970_v30  ;;  %v2373_v55 = vpack.c.bf16 %v1590_v40, %v1590_v40  ;;  %v2374_v56 = vpack.c.bf16 %v1591_v46, %v1591_v46  ;;  %710 = vst.msk [vmem:[#allocation2 + $0x169] sm:$0xff] %vm681_vm3, %v676_v28  ;;  %v573_v5 = vadd.f32 %v2475_v4, %v2770_v50 }
 0x175   : > { %v637_v58 = vadd.f32 %v2475_v4, %v2772_v39  ;;  %v2375_v57 = vpack.c.bf16 %v1592_v47, %v1592_v47  ;;  %v2376_v6 = vpack.c.bf16 %v1593_v54, %v1593_v54  ;;  %v1909_v41 = vunpack.c.l.b16 %v2372_v44 }
 0x176   : > { %2060 = vst.msk [vmem:[%s2754_s17 + $0x8] sm:$0xf] %vm2057_vm13, %v2043_v34  ;;  %v578_v22 = vadd.f32 %v2475_v4, %v2806_v8  ;;  %v1910_v59 = vunpack.c.l.b16 %v2373_v55  ;;  %v1911_v43 = vunpack.c.l.b16 %v2374_v56  ;;  %v661_v27 = vmax.f32 %v573_v5, 0.0  ;;  %v787_v34 = vld [vmem:[#allocation2 + $0xe0] sm:$0xff] }
 0x177   : > { %v677_v61 = vmax.f32 %v637_v58, 0.0  ;;  %v1912_v36 = vunpack.c.l.b16 %v2375_v57  ;;  %v1913_v19 = vunpack.c.l.b16 %v2376_v6  ;;  %v2017_v49 = vrot.slane %v1909_v41, 5 }
 0x178   : > { %v662_v62 = vmax.f32 %v578_v22, 0.0  ;;  %v2019_v63 = vrot.slane %v1910_v59, 4  ;;  %695 = vst.msk [vmem:[#allocation2 + $0xb1] sm:$0xff] %vm681_vm3, %v661_v27  ;;  %v642_v50 = vadd.f32 %v2475_v4, %v2808_v9  ;;  %v581_v39 = vadd.f32 %v2475_v4, %v2816_v16 }
 0x179   : > { %711 = vst.msk [vmem:[#allocation2 + $0x171] sm:$0xff] %vm681_vm3, %v677_v61  ;;  %v2018_v8 = vsel %vm1929_vm8, %v2017_v49, %v2913_v31  ;;  %v2021_v42 = vrot.slane %v1911_v43, 3  ;;  %v645_v0 = vadd.f32 %v2475_v4, %v2818_v17  ;;  %v2023_v48 = vrot.slane %v1912_v36, 2  ;;  %v780_v1 = vld [vmem:[#allocation2 + $0xa8] sm:$0xff] }
 0x17a   : > { %696 = vst.msk [vmem:[#allocation2 + $0xc1] sm:$0xff] %vm681_vm3, %v662_v62  ;;  %v2020_v7 = vsel %vm1932_vm9, %v2019_v63, %v2018_v8  ;;  %v678_v51 = vmax.f32 %v642_v50, 0.0  ;;  %v663_v3 = vmax.f32 %v581_v39, 0.0  ;;  %v2025_v20 = vrot.slane %v1913_v19, 1 }
 0x17b   : > { %v2022_v26 = vsel %vm1935_vm10, %v2021_v42, %v2020_v7  ;;  %v679_v9 = vmax.f32 %v645_v0, 0.0  ;;  %v819_v37 = vmax.f32 %v2859_v45, %v780_v1  ;;  %v804_v11 = vld [vmem:[#allocation2 + $0x168] sm:$0xff] }
 0x17c   : > { %v2024_v16 = vsel %vm1938_vm11, %v2023_v48, %v2022_v26  ;;  %712 = vst.msk [vmem:[#allocation2 + $0x181] sm:$0xff] %vm681_vm3, %v678_v51  ;;  %697 = vst.msk [vmem:[#allocation2 + $0xc9] sm:$0xff] %vm681_vm3, %v663_v3  ;;  %v831_v53 = vmax.f32 %v2865_v23, %v804_v11 }
 0x17d   : > { %v2026_v31 = vsel %vm1941_vm12, %v2025_v20, %v2024_v16  ;;  %713 = vst.msk [vmem:[#allocation2 + $0x189] sm:$0xff] %vm681_vm3, %v679_v9 }
 0x17e   : > { %v2047_v17 = vpack.c.b16 %v2026_v31, %v2026_v31 }
 0x17f   : > { %v781_v21 = vld [vmem:[#allocation2 + $0xb0] sm:$0xff]  ;;  %v2955_v29 = vld [vmem:[#allocation2 + $0xb8] sm:$0x3] }
 0x180   : > { %2064 = vst.msk [vmem:[%s2754_s17 + $0x18] sm:$0xf] %vm2057_vm13, %v2047_v17  ;;  %v820_v45 = vmax.f32 %v2867_v24, %v781_v21  ;;  %v821_v46 = vmax.f32 %v2885_v12, %v2955_v29 }
 0x181   : > { %v783_v13 = vld [vmem:[#allocation2 + $0xc0] sm:$0xff] }
 0x182   : > { %v822_v52 = vmax.f32 %v783_v13, %v786_v15  ;;  %v843_v38 = vmax.f32 %v819_v37, %v783_v13 }
 0x183   : > { %v807_v30 = vld [vmem:[#allocation2 + $0x180] sm:$0xff]  ;;  %v2960_v40 = vld [vmem:[#allocation2 + $0xc8] sm:$0xff] }
 0x184   : > { %v846_v10 = vmax.f32 %v822_v52, %v2706_v60  ;;  %v976_v2 = vcombine.high %v843_v38, %v843_v38  ;;  %v983_v14 = vrot.slane %v843_v38, %v2661_v35  ;;  %v855_v28 = vmax.f32 %v831_v53, %v807_v30 }
 0x185   : > { %v823_v4 = vmax.f32 %v2960_v40, %v787_v34  ;;  %v2971_v57 = vmax.f32 %v820_v45, %v2960_v40  ;;  %v2984_v34 = vld [vmem:[#allocation2 + $0x178] sm:$0x3] }
 0x186   : > { %v990_v47 = vrot.slane %v976_v2, %v2661_v35  ;;  %v991_v54 = vcombine.high %v983_v14, %v983_v14  ;;  %v1010_v44 = vcombine.high %v846_v10, %v846_v10  ;;  %v1017_v23 = vrot.slane %v846_v10, %v2661_v35  ;;  %v785_v10 = vld [vmem:[#allocation2 + $0xd0] sm:$0x3] }
 0x187   : > { %v2213_v60 = vrot.slane %v983_v14, 9  ;;  %v1112_v55 = vcombine.high %v855_v28, %v855_v28  ;;  %v1119_v56 = vrot.slane %v855_v28, %v2661_v35  ;;  %v2982_v2 = vld [vmem:[#allocation2 + $0x170] sm:$0xff]  ;;  %v788_v28 = vld [vmem:[#allocation2 + $0xe8] sm:$0x3] }
 0x188   : > { %v1024_v5 = vrot.slane %v1010_v44, %v2661_v35  ;;  %v1025_v24 = vcombine.high %v1017_v23, %v1017_v23  ;;  %v2214_v58 = vrot.slane %v991_v54, 9  ;;  %v2973_v6 = vcombine.high %v990_v47, %v990_v47 }
 0x189   : > { %v2215_v41 = vrot.slane %v990_v47, 9  ;;  %v2221_v22 = vrot.slane %v1017_v23, 9  ;;  %v1498_v59 = vmax.f32 %v983_v14, %v2213_v60  ;;  %v1126_v36 = vrot.slane %v1112_v55, %v2661_v35 }
 0x18a   : > { %v2222_v43 = vrot.slane %v1025_v24, 9  ;;  %v2223_v27 = vrot.slane %v1024_v5, 9  ;;  %v1499_v61 = vmax.f32 %v991_v54, %v2214_v58  ;;  %v1127_v63 = vcombine.high %v1119_v56, %v1119_v56 }
 0x18b   : > { %v1500_v19 = vmax.f32 %v990_v47, %v2215_v41  ;;  %v1506_v49 = vmax.f32 %v1017_v23, %v2221_v22  ;;  %v1562_v62 = vmax.f32 %v1498_v59, %v991_v54  ;;  %v2976_v50 = vcombine.high %v1024_v5, %v1024_v5 }
 0x18c   : > { %v1507_v39 = vmax.f32 %v1025_v24, %v2222_v43  ;;  %v1508_v8 = vmax.f32 %v1024_v5, %v2223_v27  ;;  %v1563_v42 = vmax.f32 %v1499_v61, %v990_v47  ;;  %v2245_v51 = vrot.slane %v1119_v56, 9 }
 0x18d   : > { %v1564_v0 = vmax.f32 %v1500_v19, %v2973_v6  ;;  %v1570_v7 = vmax.f32 %v1506_v49, %v1025_v24  ;;  %v2345_v48 = vpack.c.bf16 %v1562_v62, %v1562_v62  ;;  %v2246_v9 = vrot.slane %v1127_v63, 9 }
 0x18e   : > { %v1571_v3 = vmax.f32 %v1507_v39, %v1024_v5  ;;  %v1572_v26 = vmax.f32 %v1508_v8, %v2976_v50  ;;  %v2346_v20 = vpack.c.bf16 %v1563_v42, %v1563_v42  ;;  %v2980_v31 = vcombine.high %v1126_v36, %v1126_v36 }
 0x18f   : > { %v2347_v16 = vpack.c.bf16 %v1564_v0, %v1564_v0  ;;  %v2353_v1 = vpack.c.bf16 %v1570_v7, %v1570_v7  ;;  %v2247_v17 = vrot.slane %v1126_v36, 9  ;;  %v1530_v13 = vmax.f32 %v1119_v56, %v2245_v51 }
 0x190   : > { %v2354_v37 = vpack.c.bf16 %v1571_v3, %v1571_v3  ;;  %v2355_v11 = vpack.c.bf16 %v1572_v26, %v1572_v26  ;;  %v1883_v15 = vunpack.c.l.b16 %v2346_v20  ;;  %v1882_v21 = vunpack.c.l.b16 %v2345_v48 }
 0x191   : > { %v1884_v52 = vunpack.c.l.b16 %v2347_v16  ;;  %v1531_v38 = vmax.f32 %v1127_v63, %v2246_v9  ;;  %v1532_v53 = vmax.f32 %v1126_v36, %v2247_v17  ;;  %v1594_v45 = vmax.f32 %v1530_v13, %v1127_v63 }
 0x192   : > { %v1891_v14 = vunpack.c.l.b16 %v2354_v37  ;;  %v1892_v30 = vunpack.c.l.b16 %v2355_v11  ;;  %v1971_v40 = vrot.slane %v1883_v15, 7  ;;  %v847_v23 = vmax.f32 %v823_v4, %v2721_v18 }
 0x193   : > { %v1973_v47 = vrot.slane %v1884_v52, 6  ;;  %v1595_v54 = vmax.f32 %v1531_v38, %v1126_v36  ;;  %v2987_v44 = vmax.f32 %v1532_v53, %v2980_v31  ;;  %v1890_v60 = vunpack.c.l.b16 %v2353_v1 }
 0x194   : > { %v1972_v55 = vsel %vm1923_vm6, %v1971_v40, %v1882_v21  ;;  %v1985_v56 = vrot.slane %v1891_v14, 7  ;;  %v824_v5 = vmax.f32 %v785_v10, %v788_v28  ;;  %v832_v24 = vmax.f32 %v2898_v32, %v2982_v2 }
 0x195   : > { %v1987_v58 = vrot.slane %v1892_v30, 6  ;;  %v2377_v41 = vpack.c.bf16 %v1594_v45, %v1594_v45  ;;  %v2378_v22 = vpack.c.bf16 %v1595_v54, %v1595_v54  ;;  %v833_v59 = vmax.f32 %v2900_v33, %v2984_v34 }
 0x196   : > { %v1986_v43 = vsel %vm1923_vm6, %v1985_v56, %v1890_v60  ;;  %v993_v27 = vcombine.high %v2971_v57, %v2971_v57  ;;  %v1000_v18 = vrot.slane %v2971_v57, %v2661_v35  ;;  %v3001_v4 = vsel %vm1926_vm7, %v1973_v47, %v1972_v55 }
 0x197   : > { %v2379_v61 = vpack.c.bf16 %v2987_v44, %v2987_v44  ;;  %v845_v36 = vmax.f32 %v821_v46, %v785_v10  ;;  %v1027_v19 = vcombine.high %v847_v23, %v847_v23  ;;  %v848_v49 = vmax.f32 %v824_v5, %v2728_v25 }
 0x198   : > { %v1007_v62 = vrot.slane %v993_v27, %v2661_v35  ;;  %v1008_v63 = vcombine.high %v1000_v18, %v1000_v18  ;;  %v1034_v39 = vrot.slane %v847_v23, %v2661_v35  ;;  %v3012_v57 = vsel %vm1926_vm7, %v1987_v58, %v1986_v43 }
 0x199   : > { %v3014_v8 = vunpack.c.l.b16 %v2377_v41  ;;  %v3016_v42 = vunpack.c.l.b16 %v2378_v22  ;;  %v1041_v0 = vrot.slane %v1027_v19, %v2661_v35  ;;  %v2216_v29 = vrot.slane %v2973_v6, 9 }
 0x19a   : > { %v1009_v7 = vcombine.high %v1007_v62, %v1007_v62  ;;  %v1042_v12 = vcombine.high %v1034_v39, %v1034_v39  ;;  %v2217_v46 = vrot.slane %v1000_v18, 9  ;;  %v1245_v48 = vrot.slane %v845_v36, %v2661_v35 }
 0x19b   : > { %v1043_v25 = vcombine.high %v1041_v0, %v1041_v0  ;;  %v2218_v51 = vrot.slane %v1008_v63, 9  ;;  %v2219_v3 = vrot.slane %v1007_v62, 9  ;;  %v1252_v26 = vrot.slane %v848_v49, %v2661_v35 }
 0x19c   : > { %v2220_v20 = vrot.slane %v1009_v7, 9  ;;  %v2224_v9 = vrot.slane %v2976_v50, 9  ;;  %v2225_v16 = vrot.slane %v1034_v39, 9  ;;  %v2226_v1 = vrot.slane %v1042_v12, 9 }
 0x19d   : > { %v2227_v17 = vrot.slane %v1041_v0, 9  ;;  %v2228_v37 = vrot.slane %v1043_v25, 9  ;;  %v1501_v11 = vmax.f32 %v2973_v6, %v2216_v29  ;;  %v1502_v15 = vmax.f32 %v1000_v18, %v2217_v46 }
 0x19e   : > { %v1503_v13 = vmax.f32 %v1008_v63, %v2218_v51  ;;  %v1504_v21 = vmax.f32 %v1007_v62, %v2219_v3  ;;  %v1505_v52 = vmax.f32 %v1009_v7, %v2220_v20  ;;  %v1509_v38 = vmax.f32 %v2976_v50, %v2224_v9 }
 0x19f   : > { %v1510_v53 = vmax.f32 %v1034_v39, %v2225_v16  ;;  %v1511_v10 = vmax.f32 %v1042_v12, %v2226_v1  ;;  %v1512_v14 = vmax.f32 %v1041_v0, %v2227_v17  ;;  %v1513_v30 = vmax.f32 %v1043_v25, %v2228_v37 }
 0x1a0   : > { %v1565_v40 = vmax.f32 %v1501_v11, %v1000_v18  ;;  %v1566_v45 = vmax.f32 %v1502_v15, %v1008_v63  ;;  %v1567_v28 = vmax.f32 %v1503_v13, %v1007_v62  ;;  %v1568_v47 = vmax.f32 %v1504_v21, %v1009_v7 }
 0x1a1   : > { %v1569_v54 = vmax.f32 %v1505_v52, %v1245_v48  ;;  %v1573_v44 = vmax.f32 %v1509_v38, %v1034_v39  ;;  %v1574_v23 = vmax.f32 %v1510_v53, %v1042_v12  ;;  %v1575_v60 = vmax.f32 %v1511_v10, %v1041_v0  ;;  %v808_v48 = vld [vmem:[#allocation2 + $0x188] sm:$0xff]  ;;  %v809_v53 = vld [vmem:[#allocation2 + $0x190] sm:$0x3] }
 0x1a2   : > { %v1576_v55 = vmax.f32 %v1512_v14, %v1043_v25  ;;  %v1577_v6 = vmax.f32 %v1513_v30, %v1252_v26  ;;  %v2348_v56 = vpack.c.bf16 %v1565_v40, %v1565_v40  ;;  %v2349_v5 = vpack.c.bf16 %v1566_v45, %v1566_v45 }
 0x1a3   : > { %v2350_v58 = vpack.c.bf16 %v1567_v28, %v1567_v28  ;;  %v2351_v41 = vpack.c.bf16 %v1568_v47, %v1568_v47  ;;  %v2352_v22 = vpack.c.bf16 %v1569_v54, %v1569_v54  ;;  %v2356_v50 = vpack.c.bf16 %v1573_v44, %v1573_v44 }
 0x1a4   : > { %v2357_v43 = vpack.c.bf16 %v1574_v23, %v1574_v23  ;;  %v2358_v27 = vpack.c.bf16 %v1575_v60, %v1575_v60  ;;  %v2359_v36 = vpack.c.bf16 %v1576_v55, %v1576_v55  ;;  %v2360_v19 = vpack.c.bf16 %v1577_v6, %v1577_v6 }
 0x1a5   : > { %v1885_v18 = vunpack.c.l.b16 %v2348_v56  ;;  %v1886_v49 = vunpack.c.l.b16 %v2349_v5  ;;  %v1887_v62 = vunpack.c.l.b16 %v2350_v58  ;;  %v1888_v63 = vunpack.c.l.b16 %v2351_v41 }
 0x1a6   : > { %v1889_v7 = vunpack.c.l.b16 %v2352_v22  ;;  %v1893_v39 = vunpack.c.l.b16 %v2356_v50  ;;  %v1894_v12 = vunpack.c.l.b16 %v2357_v43  ;;  %v1916_v0 = vunpack.c.l.b16 %v2379_v61 }
 0x1a7   : > { %v1895_v29 = vunpack.c.l.b16 %v2358_v27  ;;  %v1896_v46 = vunpack.c.l.b16 %v2359_v36  ;;  %v1975_v25 = vrot.slane %v1885_v18, 5  ;;  %v2027_v51 = vrot.slane %v3016_v42, 7 }
 0x1a8   : > { %v1897_v3 = vunpack.c.l.b16 %v2360_v19  ;;  %v1977_v26 = vrot.slane %v1886_v49, 4  ;;  %v1979_v20 = vrot.slane %v1887_v62, 3  ;;  %v1981_v16 = vrot.slane %v1888_v63, 2 }
 0x1a9   : > { %v1976_v9 = vsel %vm1929_vm8, %v1975_v25, %v3001_v4  ;;  %v1983_v1 = vrot.slane %v1889_v7, 1  ;;  %v1989_v17 = vrot.slane %v1893_v39, 5  ;;  %v1991_v11 = vrot.slane %v1894_v12, 4 }
 0x1aa   : > { %v1978_v37 = vsel %vm1932_vm9, %v1977_v26, %v1976_v9  ;;  %v1993_v15 = vrot.slane %v1895_v29, 3  ;;  %v856_v61 = vmax.f32 %v832_v24, %v808_v48  ;;  %v1995_v21 = vrot.slane %v1896_v46, 2 }
 0x1ab   : > { %v1980_v13 = vsel %vm1935_vm10, %v1979_v20, %v1978_v37  ;;  %v1990_v42 = vsel %vm1929_vm8, %v1989_v17, %v3012_v57  ;;  %v2248_v52 = vrot.slane %v2980_v31, 9  ;;  %v1997_v24 = vrot.slane %v1897_v3, 1 }
 0x1ac   : > { %v1982_v4 = vsel %vm1938_vm11, %v1981_v16, %v1980_v13  ;;  %v1992_v38 = vsel %vm1932_vm9, %v1991_v11, %v1990_v42  ;;  %v1129_v10 = vcombine.high %v856_v61, %v856_v61  ;;  %v1136_v14 = vrot.slane %v856_v61, %v2661_v35 }
 0x1ad   : > { %v1984_v32 = vsel %vm1941_vm12, %v1983_v1, %v1982_v4  ;;  %v1994_v2 = vsel %vm1935_vm10, %v1993_v15, %v1992_v38  ;;  %v1533_v30 = vmax.f32 %v2980_v31, %v2248_v52  ;;  %v857_v54 = vmax.f32 %v833_v59, %v809_v53 }
 0x1ae   : > { %v1996_v57 = vsel %vm1938_vm11, %v1995_v21, %v1994_v2  ;;  %v2044_v40 = vpack.c.b16 %v1984_v32, %v1984_v32  ;;  %v1143_v45 = vrot.slane %v1129_v10, %v2661_v35  ;;  %v1144_v28 = vcombine.high %v1136_v14, %v1136_v14 }
 0x1af   : > { %v1998_v47 = vsel %vm1941_vm12, %v1997_v24, %v1996_v57  ;;  %v2249_v44 = vrot.slane %v1136_v14, 9  ;;  %v1597_v23 = vmax.f32 %v1533_v30, %v1136_v14  ;;  %v2029_v56 = vrot.slane %v1916_v0, 6 }
 0x1b0   : > { %v2045_v60 = vpack.c.b16 %v1998_v47, %v1998_v47  ;;  %2061 = vst.msk [vmem:[%s2754_s17 + $0xc] sm:$0xf] %vm2057_vm13, %v2044_v40  ;;  %v1145_v55 = vcombine.high %v1143_v45, %v1143_v45  ;;  %v2250_v31 = vrot.slane %v1144_v28, 9  ;;  %v2251_v6 = vrot.slane %v1143_v45, 9 }
 0x1b1   : > { %v1534_v5 = vmax.f32 %v1136_v14, %v2249_v44  ;;  %v2380_v58 = vpack.c.bf16 %v1597_v23, %v1597_v23  ;;  %v2028_v41 = vsel %vm1923_vm6, %v2027_v51, %v3014_v8  ;;  %v1273_v43 = vrot.slane %v857_v54, %v2661_v35 }
 0x1b2   : > { %2062 = vst.msk [vmem:[%s2754_s17 + $0x10] sm:$0xf] %vm2057_vm13, %v2045_v60  ;;  %v2252_v22 = vrot.slane %v1145_v55, 9  ;;  %v1535_v50 = vmax.f32 %v1144_v28, %v2250_v31  ;;  %v1536_v33 = vmax.f32 %v1143_v45, %v2251_v6  ;;  %v2030_v18 = vsel %vm1926_vm7, %v2029_v56, %v2028_v41 }
 0x1b3   : > { %v1598_v34 = vmax.f32 %v1534_v5, %v1144_v28  ;;  %v1917_v59 = vunpack.c.l.b16 %v2380_v58 }
 0x1b4   : > { %v1537_v27 = vmax.f32 %v1145_v55, %v2252_v22  ;;  %v1599_v36 = vmax.f32 %v1535_v50, %v1143_v45  ;;  %v1600_v19 = vmax.f32 %v1536_v33, %v1145_v55 }
 0x1b5   : > { %v2381_v49 = vpack.c.bf16 %v1598_v34, %v1598_v34  ;;  %v2031_v62 = vrot.slane %v1917_v59, 5 }
 0x1b6   : > { %v1601_v63 = vmax.f32 %v1537_v27, %v1273_v43  ;;  %v2382_v7 = vpack.c.bf16 %v1599_v36, %v1599_v36  ;;  %v2383_v39 = vpack.c.bf16 %v1600_v19, %v1600_v19 }
 0x1b7   : > { %v1918_v8 = vunpack.c.l.b16 %v2381_v49  ;;  %v2032_v46 = vsel %vm1929_vm8, %v2031_v62, %v2030_v18 }
 0x1b8   : > { %v2384_v12 = vpack.c.bf16 %v1601_v63, %v1601_v63  ;;  %v1919_v0 = vunpack.c.l.b16 %v2382_v7  ;;  %v1920_v29 = vunpack.c.l.b16 %v2383_v39 }
 0x1b9   : > { %v2033_v25 = vrot.slane %v1918_v8, 4 }
 0x1ba   : > { %v1921_v48 = vunpack.c.l.b16 %v2384_v12  ;;  %v2035_v35 = vrot.slane %v1919_v0, 3  ;;  %v2037_v3 = vrot.slane %v1920_v29, 2 }
 0x1bb   : > { %v2034_v51 = vsel %vm1932_vm9, %v2033_v25, %v2032_v46 }
 0x1bc   : > { %v2036_v26 = vsel %vm1935_vm10, %v2035_v35, %v2034_v51  ;;  %v2039_v20 = vrot.slane %v1921_v48, 1 }
 0x1bd   : > { %v2038_v9 = vsel %vm1938_vm11, %v2037_v3, %v2036_v26 }
 0x1be   : > { %v2040_v16 = vsel %vm1941_vm12, %v2039_v20, %v2038_v9 }
 0x1bf   : > { %v2048_v1 = vpack.c.b16 %v2040_v16, %v2040_v16 }
 0x1c1   : > { %2065 = vst.msk [vmem:[%s2754_s17 + $0x1c] sm:$0xf] %vm2057_vm13, %v2048_v1 }
 0x1c2 PF: > { %s13_s12 = sadd.s32 1, %s2482_s12  }
 0x1c3   : > { %p10_p4 = scmp.ge.s32.totalorder %s13_s12, 4  }
 0x1c5   :  { %12 = sbr.rel (!%p10_p4) target bundleno = 1 (0x1), region = 64 }

// kernel: downsample_densenet_forward.11
= control target key start
LH: loop header
LB: loop body
LE: loop exit
PB: predicated region body
PF: predicated region fallthrough
CT: control target
= control target key end

     0   :  { %s944_s21 = smov 0   ;;  %s946_s22 = smov 0   ;;  %s1037_s0 = inlined_call_operand.vmem [shape: bf16[2,4,4,32], index: 0, kind: input, shape index: {}]   ;;  %s1038_s1 = inlined_call_operand.vmem [shape: f32[1,32], index: 1, kind: input, shape index: {}]   ;;  %s1039_s2 = inlined_call_operand.vmem [shape: f32[1,32], index: 2, kind: input, shape index: {}]   ;;  %s1040_s3 = inlined_call_operand.vmem [shape: bf16[32,16], index: 3, kind: input, shape index: {}]   ;;  %s1041_s4 = inlined_call_operand.vmem [shape: f32[1,16], index: 4, kind: input, shape index: {}]   ;;  %s1042_s5 = inlined_call_operand.vmem [shape: bf16[16,72], index: 5, kind: input, shape index: {}]   ;;  %s1043_s6 = inlined_call_operand.vmem [shape: bf16[2,4,4,8], index: 6, kind: output, shape index: {}]  }
   0x1   :  { %s948_s23 = smov 0  }
   0x2 LB: > { %s28_s24 = sadd.s32 1, %s893_s22  ;;  %p798_p0 = scmp.ge.s32.totalorder %s897_s23, 1  ;;  %s897_s23 = sphi %s948_s23, %s16_s23   ;;  %s893_s22 = sphi %s946_s22, %s1045_s22   ;;  %s889_s21 = sphi %s944_s21, %s1044_s21  }
   0x3   : > { %p30_p1 = scmp.ge.s32.totalorder %s28_s24, 2  ;;  %p226_p2 = scmp.lt.s32.totalorder %s897_s23, 3 }
   0x5   : > { %s1047_s24 = smov (%p30_p1, %s28_s24), 0  ;;  %p227_p3 = pnand %p798_p0, %p226_p2 }
   0x6   : > { %v872_v0 = vld [vmem:[%s1040_s3] sm:$0xff] (!%p227_p3)   ;;  %v899_v1 = vmov (!%p227_p3), 0.0   ;;  %v873_v2 = vld [vmem:[%s1040_s3 + $0x8] sm:$0xff] (!%p227_p3)   ;;  %vm900_vm0 = vmmov (!%p227_p3), 0   ;;  %p260_p4 = scmp.lt.s32.totalorder (!%p227_p3), %s889_s21, 1  ;;  %vm356_vm1 = vcmask (!%p227_p3), 261120  }
   0x7   : > { %230 = sbr.rel (%p227_p3) target bundleno = 644 (0x284), region = 44  ;;  %824 = vmatprep.subr.bf16.mxu0 (!%p227_p3), %v899_v1  ;;  %832 = vmatprep.subr.bf16.mxu1 (!%p227_p3), %v899_v1  ;;  %v803_v3 = vld [vmem:[%s1038_s1] ss:$0 sm:$0xff] (!%p227_p3)  ;;  %vm457_vm2 = vcmask (!%p227_p3), 581632   ;;  %vm492_vm3 = vcmask (!%p227_p3), 586752   ;;  %s901_s15 = smov (!%p227_p3), 120  }
   0x8   : > { %825 = vmatpush3.bf16.msra.mxu0 (!%p227_p3), %v872_v0  ;;  %828 = vmatprep.mubr.msk.bf16.mxu0 (!%p227_p3), %vm900_vm0, %v899_v1  ;;  %v804_v4 = vld [vmem:[%s1039_s2] ss:$0 sm:$0xff] (!%p227_p3)  ;;  %v301_v5 = vcombine.high (!%p227_p3), %v803_v3, %v803_v3  ;;  %459 = vst.msk [vmem:[#allocation2 + $0x8] sm:$0x1] (!%p227_p3), %vm457_vm2, %v899_v1  ;;  %467 = vst.msk [vmem:[#allocation2 + $0xd] sm:$0x1] (!%p227_p3), %vm457_vm2, %v899_v1 }
   0x9   : > { %826 = vmatprep.subr.bf16.mxu0 (!%p227_p3), %v899_v1  ;;  %834 = vmatprep.mubr.msk.bf16.mxu1 (!%p227_p3), %vm900_vm0, %v899_v1  ;;  %v314_v13 = vcombine.high (!%p227_p3), %v804_v4, %v804_v4  ;;  %v874_v30 = vld [vmem:[%s1042_s5] sm:$0xff] (!%p227_p3)   ;;  %460 = vst.msk [vmem:[#allocation2 + $0x10] sm:$0x1] (!%p227_p3), %vm457_vm2, %v899_v1  ;;  %461 = vst.msk [vmem:[#allocation2 + $0x18] sm:$0x1] (!%p227_p3), %vm457_vm2, %v899_v1  ;;  %vm412_vm4 = vcmask (!%p227_p3), 130048  }
   0xa   : > { %833 = vmatpush3.bf16.msra.mxu1 (!%p227_p3), %v874_v30  ;;  %462 = vst.msk [vmem:[#allocation2 + $0x20] sm:$0x1] (!%p227_p3), %vm457_vm2, %v899_v1  ;;  %463 = vst.msk [vmem:[#allocation2 + $0x28] sm:$0x1] (!%p227_p3), %vm457_vm2, %v899_v1  ;;  %v805_v32 = vld [vmem:[%s1041_s4] ss:$0 sm:$0xff] (!%p227_p3) }
   0xb   : > { %464 = vst.msk [vmem:[#allocation2 + $0x30] sm:$0x1] (!%p227_p3), %vm457_vm2, %v899_v1  ;;  %468 = vst.msk [vmem:[#allocation2 + $0x15] sm:$0x1] (!%p227_p3), %vm457_vm2, %v899_v1  ;;  %s902_s18 = smov (!%p227_p3), 80   ;;  %s903_s19 = smov (!%p227_p3), 112  }
   0xc   : > { %827 = vmatpush3.bf16.msra.mxu0 (!%p227_p3), %v873_v2  ;;  %469 = vst.msk [vmem:[#allocation2 + $0x1d] sm:$0x1] (!%p227_p3), %vm457_vm2, %v899_v1  ;;  %470 = vst.msk [vmem:[#allocation2 + $0x25] sm:$0x1] (!%p227_p3), %vm457_vm2, %v899_v1  ;;  %s904_s20 = smov (!%p227_p3), 72   ;;  %vm482_vm5 = vcmask (!%p227_p3), 584704  }
   0xd   : > { %471 = vst.msk [vmem:[#allocation2 + $0x2d] sm:$0x1] (!%p227_p3), %vm457_vm2, %v899_v1  ;;  %472 = vst.msk [vmem:[#allocation2 + $0x35] sm:$0x1] (!%p227_p3), %vm457_vm2, %v899_v1  ;;  %s905_s25 = smov (!%p227_p3), 104   ;;  %s906_s26 = smov (!%p227_p3), 96  }
   0xe   : > { %s1049_s21 = smov (!%p260_p4, %s889_s21), 1  ;;  %493 = vst.msk [vmem:[#allocation2 + $0x8] sm:$0x3f] %vm492_vm3, %v899_v1  ;;  %495 = vst.msk [vmem:[#allocation2 + $0x30] sm:$0x3f] %vm492_vm3, %v899_v1  ;;  %s907_s27 = smov 88  }
   0xf   : > { %s817_s7 = sshll.u32 %s1049_s21, 3  ;;  %s908_s28 = smov 64   ;;  %vm703_vm6 = vcmask 58368  }
  0x10   : > { %s264_s12 = scalar_lea.vmem %s1037_s0, %s817_s7  ;;  %s273_s8 = scalar_lea.vmem %s1043_s6, %s817_s7 }
  0x11   : > { %v286_v6 = vld [vmem:[%s264_s12] sm:$0x3]  ;;  %v287_v7 = vld [vmem:[%s264_s12 + $0x2] sm:$0x3]  ;;  %v288_v8 = vld [vmem:[%s264_s12 + $0x4] sm:$0x3] }
  0x12   : > { %v289_v9 = vld [vmem:[%s264_s12 + $0x6] sm:$0x3]  ;;  %v290_v10 = vunpack.c.l.bf16 %v286_v6  ;;  %v291_v11 = vunpack.c.l.bf16 %v287_v7  ;;  %v292_v12 = vunpack.c.l.bf16 %v288_v8 }
  0x13   : > { %v293_v14 = vunpack.c.l.bf16 %v289_v9 }
  0x14   : > { %v303_v15 = vmul.f32 %v803_v3, %v290_v10  ;;  %v304_v16 = vmul.f32 %v301_v5, %v291_v11  ;;  %v305_v17 = vmul.f32 %v803_v3, %v292_v12 }
  0x15   : > { %v306_v18 = vmul.f32 %v301_v5, %v293_v14  ;;  %v505_v31 = vld [vmem:[#allocation2 + $0x9] sm:$0xf]  ;;  %v630_v42 = vld [vmem:[#allocation2 + $0x30] sm:$0xf] }
  0x16   : > { %v316_v19 = vadd.f32 %v804_v4, %v303_v15  ;;  %v317_v20 = vadd.f32 %v314_v13, %v304_v16  ;;  %v318_v21 = vadd.f32 %v804_v4, %v305_v17  ;;  %513 = vrot.lane.b32.xlu0 %v505_v31, %s901_s15  ;;  %641 = vrot.lane.b32.xlu1 %v630_v42, %s902_s18  ;;  %v529_v43 = vld [vmem:[#allocation2 + $0xa] sm:$0xf]  ;;  %v654_v44 = vld [vmem:[#allocation2 + $0x31] sm:$0xf] }
  0x17   : > { %v319_v22 = vadd.f32 %v314_v13, %v306_v18  ;;  %v678_v13 = vld [vmem:[#allocation2 + $0x32] sm:$0xf]  ;;  %v497_v31 = vld [vmem:[#allocation2 + $0x8] sm:$0xf] }
  0x18   : > { %v320_v23 = vmax.f32 %v316_v19, 0.0  ;;  %v321_v24 = vmax.f32 %v317_v20, 0.0  ;;  %v322_v25 = vmax.f32 %v318_v21, 0.0 }
  0x19   : > { %v323_v26 = vmax.f32 %v319_v22, 0.0 }
  0x1a   : > { %v328_v27 = vcombine.low %v320_v23, %v321_v24  ;;  %537 = vrot.lane.b32.xlu0 %v529_v43, %s903_s19  ;;  %665 = vrot.lane.b32.xlu1 %v654_v44, %s904_s20 }
  0x1b   : > { %v329_v28 = vcombine.low %v322_v25, %v323_v26 }
  0x1d   : > { %v332_v29 = vpack.c.bf16 %v329_v28, %v328_v27 }
  0x1f   : > { %829 = vmatmul.mubr.msk.bf16.vlgmr.msra.gmra.mrb[0].mxu0 %vm356_vm1, %v332_v29 }
  0x88   : > { %v642_v15 = vpop.permute.xlu1 %641  ;;  %v514_v16 = vpop.permute.xlu0 %513 }
  0x8c   : > { %v1016_v17 = vpop.permute.xlu1 %665  ;;  %v538_v18 = vpop.permute.xlu0 %537 }
  0xf2   : > { %v394_v33 = vpop.f32.mrb[0].mxu0 }
  0xf3   : > { %v395_v34 = vadd.f32 %v805_v32, %v394_v33  ;;  %v830_v35 = vpop.f32.mrb[1].mxu0 }
  0xf4   : > { %v397_v36 = vpop.f32.mrb[2].mxu0 }
  0xf5   : > { %v398_v37 = vadd.f32 %v805_v32, %v397_v36  ;;  %v831_v38 = vpop.f32.mrb[3].mxu0  ;;  %v401_v39 = vmax.f32 %v395_v34, 0.0  ;;  %v525_v34 = vadd.f32 %v514_v16, %v497_v31 }
  0xf7   : > { %v402_v40 = vmax.f32 %v398_v37, 0.0  ;;  %v549_v37 = vadd.f32 %v538_v18, %v525_v34 }
  0xf9   : > { %v403_v41 = vpack.c.bf16 %v402_v40, %v401_v39 }
  0xfb   : > { %835 = vmatmul.mubr.msk.bf16.vlgmr.msra.gmra.mrb[0].mxu1 %vm412_vm4, %v403_v41 }
 0x1ce   : > { %v450_v45 = vpop.f32.mrb[0].mxu1 }
 0x1cf   : > { %v476_v46 = vcombine.high %v450_v45, %v450_v45  ;;  %811 = vst.msk [vmem:[#allocation2 + $0x11] sm:$0xf] %vm482_vm5, %v450_v45  ;;  %v836_v47 = vpop.f32.mrb[1].mxu1 }
 0x1d0   : > { %v453_v48 = vpop.f32.mrb[2].mxu1 }
 0x1d1   : > { %812 = vst.msk [vmem:[#allocation2 + $0x19] sm:$0xf] %vm482_vm5, %v476_v46  ;;  %v477_v49 = vcombine.high %v453_v48, %v453_v48  ;;  %813 = vst.msk [vmem:[#allocation2 + $0x21] sm:$0xf] %vm482_vm5, %v453_v48  ;;  %v837_v50 = vpop.f32.mrb[3].mxu1 }
 0x1d3   : > { %814 = vst.msk [vmem:[#allocation2 + $0x29] sm:$0xf] %vm482_vm5, %v477_v49 }
 0x1d6   : > { %v530_v51 = vld [vmem:[#allocation2 + $0x12] sm:$0xf] }
 0x1d7   : > { %v506_v52 = vld [vmem:[#allocation2 + $0x11] sm:$0xf]  ;;  %539 = vrot.lane.b32.xlu1 %v530_v51, %s903_s19 }
 0x1d8   : > { %515 = vrot.lane.b32.xlu0 %v506_v52, %s901_s15  ;;  %v554_v53 = vld [vmem:[#allocation2 + $0x10] sm:$0xf]  ;;  %v507_v54 = vld [vmem:[#allocation2 + $0x19] sm:$0xf]  ;;  %v508_v56 = vld [vmem:[#allocation2 + $0x21] sm:$0xf] }
 0x1d9   : > { %v578_v55 = vld [vmem:[#allocation2 + $0x11] sm:$0xf]  ;;  %v532_v58 = vld [vmem:[#allocation2 + $0x22] sm:$0xf]  ;;  %v531_v59 = vld [vmem:[#allocation2 + $0x1a] sm:$0xf] }
 0x1da   : > { %v602_v57 = vld [vmem:[#allocation2 + $0x12] sm:$0xf]  ;;  %v555_v60 = vld [vmem:[#allocation2 + $0x18] sm:$0xf]  ;;  %v556_v61 = vld [vmem:[#allocation2 + $0x20] sm:$0xf] }
 0x1db   : > { %517 = vrot.lane.b32.xlu1 %v507_v54, %s901_s15  ;;  %v579_v62 = vld [vmem:[#allocation2 + $0x19] sm:$0xf]  ;;  %v580_v63 = vld [vmem:[#allocation2 + $0x21] sm:$0xf]  ;;  %v557_v6 = vld [vmem:[#allocation2 + $0x28] sm:$0xf] }
 0x1dc   : > { %562 = vrot.lane.b32.xlu0 %v554_v53, %s905_s25  ;;  %v603_v0 = vld [vmem:[#allocation2 + $0x1a] sm:$0xf]  ;;  %v604_v1 = vld [vmem:[#allocation2 + $0x22] sm:$0xf]  ;;  %v581_v8 = vld [vmem:[#allocation2 + $0x29] sm:$0xf] }
 0x1dd   : > { %v628_v2 = vld [vmem:[#allocation2 + $0x20] sm:$0xf]  ;;  %v627_v3 = vld [vmem:[#allocation2 + $0x18] sm:$0xf]  ;;  %v629_v9 = vld [vmem:[#allocation2 + $0x28] sm:$0xf] }
 0x1de   : > { %v652_v4 = vld [vmem:[#allocation2 + $0x21] sm:$0xf]  ;;  %v651_v5 = vld [vmem:[#allocation2 + $0x19] sm:$0xf]  ;;  %v605_v10 = vld [vmem:[#allocation2 + $0x2a] sm:$0xf] }
 0x1df   : > { %519 = vrot.lane.b32.xlu1 %v508_v56, %s901_s15  ;;  %v675_v7 = vld [vmem:[#allocation2 + $0x1a] sm:$0xf]  ;;  %v653_v11 = vld [vmem:[#allocation2 + $0x29] sm:$0xf]  ;;  %v676_v12 = vld [vmem:[#allocation2 + $0x22] sm:$0xf] }
 0x1e0   : > { %586 = vrot.lane.b32.xlu0 %v578_v55, %s906_s26  ;;  %v677_v14 = vld [vmem:[#allocation2 + $0x2a] sm:$0xf]  ;;  %v498_v39 = vld [vmem:[#allocation2 + $0x10] sm:$0xf]  ;;  %v500_v45 = vld [vmem:[#allocation2 + $0x20] sm:$0xf] }
 0x1e1   : > { %v499_v51 = vld [vmem:[#allocation2 + $0x18] sm:$0xf] }
 0x1e3   : > { %543 = vrot.lane.b32.xlu1 %v532_v58, %s903_s19 }
 0x1e4   : > { %610 = vrot.lane.b32.xlu0 %v602_v57, %s907_s27 }
 0x1e7   : > { %564 = vrot.lane.b32.xlu1 %v555_v60, %s905_s25 }
 0x1e8   : > { %541 = vrot.lane.b32.xlu0 %v531_v59, %s903_s19 }
 0x1eb   : > { %588 = vrot.lane.b32.xlu1 %v579_v62, %s906_s26 }
 0x1ec   : > { %566 = vrot.lane.b32.xlu0 %v556_v61, %s905_s25 }
 0x1ef   : > { %612 = vrot.lane.b32.xlu1 %v603_v0, %s907_s27 }
 0x1f0   : > { %590 = vrot.lane.b32.xlu0 %v580_v63, %s906_s26 }
 0x1f3   : > { %637 = vrot.lane.b32.xlu1 %v628_v2, %s902_s18 }
 0x1f4   : > { %614 = vrot.lane.b32.xlu0 %v604_v1, %s907_s27 }
 0x1f7   : > { %661 = vrot.lane.b32.xlu1 %v652_v4, %s904_s20 }
 0x1f8   : > { %635 = vrot.lane.b32.xlu0 %v627_v3, %s902_s18 }
 0x1fb   : > { %568 = vrot.lane.b32.xlu1 %v557_v6, %s905_s25 }
 0x1fc   : > { %659 = vrot.lane.b32.xlu0 %v651_v5, %s904_s20 }
 0x1ff   : > { %592 = vrot.lane.b32.xlu1 %v581_v8, %s906_s26 }
 0x200   : > { %683 = vrot.lane.b32.xlu0 %v675_v7, %s908_s28 }
 0x203   : > { %616 = vrot.lane.b32.xlu1 %v605_v10, %s907_s27 }
 0x204   : > { %639 = vrot.lane.b32.xlu0 %v629_v9, %s902_s18 }
 0x207   : > { %685 = vrot.lane.b32.xlu1 %v676_v12, %s908_s28 }
 0x208   : > { %663 = vrot.lane.b32.xlu0 %v653_v11, %s904_s20 }
 0x20b   : > { %689 = vrot.lane.b32.xlu1 %v678_v13, %s908_s28 }
 0x20c   : > { %687 = vrot.lane.b32.xlu0 %v677_v14, %s908_s28 }
 0x249   : > { %v540_v19 = vpop.permute.xlu1 %539 }
 0x24a   : > { %v516_v20 = vpop.permute.xlu0 %515 }
 0x24b   : > { %v526_v42 = vadd.f32 %v516_v20, %v498_v39 }
 0x24d   : > { %v518_v22 = vpop.permute.xlu1 %517  ;;  %v550_v49 = vadd.f32 %v540_v19, %v526_v42 }
 0x24e   : > { %v563_v21 = vpop.permute.xlu0 %562  ;;  %v527_v52 = vadd.f32 %v518_v22, %v499_v51 }
 0x24f   : > { %v574_v38 = vadd.f32 %v563_v21, %v549_v37 }
 0x251   : > { %v520_v24 = vpop.permute.xlu1 %519 }
 0x252   : > { %v587_v23 = vpop.permute.xlu0 %586  ;;  %v528_v48 = vadd.f32 %v520_v24, %v500_v45 }
 0x253   : > { %v598_v43 = vadd.f32 %v587_v23, %v574_v38 }
 0x255   : > { %v544_v26 = vpop.permute.xlu1 %543 }
 0x256   : > { %v611_v25 = vpop.permute.xlu0 %610  ;;  %v552_v53 = vadd.f32 %v544_v26, %v528_v48 }
 0x257   : > { %v622_v44 = vadd.f32 %v611_v25, %v598_v43 }
 0x259   : > { %v565_v28 = vpop.permute.xlu1 %564 }
 0x25a   : > { %v542_v27 = vpop.permute.xlu0 %541  ;;  %v575_v54 = vadd.f32 %v565_v28, %v550_v49 }
 0x25b   : > { %v551_v58 = vadd.f32 %v542_v27, %v527_v52 }
 0x25d   : > { %v589_v30 = vpop.permute.xlu1 %588 }
 0x25e   : > { %v567_v29 = vpop.permute.xlu0 %566  ;;  %v599_v59 = vadd.f32 %v589_v30, %v575_v54 }
 0x25f   : > { %v576_v62 = vadd.f32 %v567_v29, %v551_v58 }
 0x261   : > { %v613_v33 = vpop.permute.xlu1 %612 }
 0x262   : > { %v591_v32 = vpop.permute.xlu0 %590  ;;  %v623_v63 = vadd.f32 %v613_v33, %v599_v59 }
 0x263   : > { %v600_v4 = vadd.f32 %v591_v32, %v576_v62 }
 0x265   : > { %v638_v36 = vpop.permute.xlu1 %637 }
 0x266   : > { %v615_v35 = vpop.permute.xlu0 %614  ;;  %v648_v5 = vadd.f32 %v638_v36, %v623_v63 }
 0x267   : > { %v624_v7 = vadd.f32 %v615_v35, %v600_v4 }
 0x269   : > { %v662_v41 = vpop.permute.xlu1 %661 }
 0x26a   : > { %v636_v40 = vpop.permute.xlu0 %635  ;;  %v672_v8 = vadd.f32 %v662_v41, %v648_v5 }
 0x26b   : > { %v647_v50 = vadd.f32 %v636_v40, %v622_v44 }
 0x26d   : > { %v569_v47 = vpop.permute.xlu1 %568 }
 0x26e   : > { %v660_v46 = vpop.permute.xlu0 %659  ;;  %v577_v60 = vadd.f32 %v569_v47, %v552_v53 }
 0x26f   : > { %v671_v55 = vadd.f32 %v660_v46, %v647_v50 }
 0x271   : > { %v593_v57 = vpop.permute.xlu1 %592 }
 0x272   : > { %v684_v56 = vpop.permute.xlu0 %683  ;;  %v601_v1 = vadd.f32 %v593_v57, %v577_v60 }
 0x273   : > { %v695_v61 = vadd.f32 %v684_v56, %v671_v55 }
 0x275   : > { %v699_v0 = vpack.c.bf16 %v695_v61, %v695_v61  ;;  %v617_v3 = vpop.permute.xlu1 %616 }
 0x276   : > { %v640_v2 = vpop.permute.xlu0 %639  ;;  %v625_v6 = vadd.f32 %v617_v3, %v601_v1 }
 0x277   : > { %704 = vst.msk [vmem:[%s273_s8] sm:$0x3] %vm703_vm6, %v699_v0  ;;  %v649_v12 = vadd.f32 %v640_v2, %v624_v7 }
 0x278   : > { %v650_v9 = vadd.f32 %v642_v15, %v625_v6 }
 0x279   : > { %v686_v11 = vpop.permute.xlu1 %685 }
 0x27a   : > { %v664_v10 = vpop.permute.xlu0 %663  ;;  %v696_v13 = vadd.f32 %v686_v11, %v672_v8  ;;  %v674_v18 = vadd.f32 %v1016_v17, %v650_v9 }
 0x27b   : > { %v673_v14 = vadd.f32 %v664_v10, %v649_v12 }
 0x27c   : > { %v700_v16 = vpack.c.bf16 %v696_v13, %v696_v13 }
 0x27d   : > { %v690_v20 = vpop.permute.xlu1 %689 }
 0x27e   : > { %v688_v19 = vpop.permute.xlu0 %687  ;;  %705 = vst.msk [vmem:[%s273_s8 + $0x2] sm:$0x3] %vm703_vm6, %v700_v16  ;;  %v698_v22 = vadd.f32 %v690_v20, %v674_v18 }
 0x27f   : > { %v697_v21 = vadd.f32 %v688_v19, %v673_v14 }
 0x280   : > { %v702_v24 = vpack.c.bf16 %v698_v22, %v698_v22 }
 0x281   : > { %v701_v23 = vpack.c.bf16 %v697_v21, %v697_v21 }
 0x282   : > { %707 = vst.msk [vmem:[%s273_s8 + $0x6] sm:$0x3] %vm703_vm6, %v702_v24 }
 0x283   : > { %706 = vst.msk [vmem:[%s273_s8 + $0x4] sm:$0x3] %vm703_vm6, %v701_v23 }
 0x284 PF: > { %s16_s23 = sadd.s32 1, %s897_s23   ;;  %s1044_s21 = smov %s893_s22 }
 0x285   : > { %p13_p5 = scmp.ge.s32.totalorder %s16_s23, 4   ;;  %s1045_s22 = smov %s1047_s24 }
 0x287   :  { %15 = sbr.rel (!%p13_p5) target bundleno = 2 (0x2), region = 85 }

// kernel: downsample_densenet_forward.13
= control target key start
LH: loop header
LB: loop body
LE: loop exit
PB: predicated region body
PF: predicated region fallthrough
CT: control target
= control target key end

     0   :  { %s229_s6 = smov 0   ;;  %s250_s0 = inlined_call_operand.vmem [shape: bf16[2,4,4,32], index: 0, kind: input, shape index: {}]   ;;  %s251_s1 = inlined_call_operand.vmem [shape: f32[2,1,32], index: 1, kind: output, shape index: {}]  }
   0x1 LB: > { %s193_s7 = sadd.s32 4294967295, %s217_s6   ;;  %p197_p0 = scmp.ge.s32.totalorder %s217_s6, 1  ;;  %s217_s6 = sphi %s229_s6, %s11_s6  }
   0x2   : > { %p87_p1 = scmp.lt.s32.totalorder %s217_s6, 3 }
   0x4   : > { %p88_p2 = pnand %p197_p0, %p87_p1 }
   0x5   : > { %p105_p3 = scmp.lt.s32.totalorder (!%p88_p2), %s193_s7, 1  ;;  %vm133_vm0 = vcmask (!%p88_p2), 261120   ;;  %vm144_vm1 = vcmask (!%p88_p2), 253952  }
   0x6   : > { %91 = sbr.rel (%p88_p2) target bundleno = 42 (0x2a), region = 24 }
   0xd   : > { %s253_s7 = smov (!%p105_p3, %s193_s7), 1 }
   0xe   : > { %s202_s8 = sshll.u32 %s253_s7, 3  ;;  %s112_s14 = scalar_lea.vmem %s251_s1, %s253_s7 }
   0xf   : > { %s109_s11 = scalar_lea.vmem %s250_s0, %s202_s8 }
  0x10   : > { %v113_v0 = vld [vmem:[%s109_s11] sm:$0x3]  ;;  %v114_v1 = vld [vmem:[%s109_s11 + $0x2] sm:$0x3]  ;;  %v115_v2 = vld [vmem:[%s109_s11 + $0x4] sm:$0x3] }
  0x11   : > { %v116_v3 = vld [vmem:[%s109_s11 + $0x6] sm:$0x3]  ;;  %v117_v4 = vunpack.c.l.bf16 %v113_v0  ;;  %v118_v5 = vunpack.c.l.bf16 %v114_v1  ;;  %v119_v6 = vunpack.c.l.bf16 %v115_v2 }
  0x12   : > { %v120_v7 = vunpack.c.l.bf16 %v116_v3 }
  0x13   : > { %v121_v8 = vmax.f32 %v117_v4, 0.0  ;;  %v122_v9 = vmax.f32 %v118_v5, 0.0  ;;  %v123_v10 = vmax.f32 %v119_v6, 0.0 }
  0x14   : > { %v124_v11 = vmax.f32 %v120_v7, 0.0 }
  0x15   : > { %v129_v12 = vcombine.low %v121_v8, %v122_v9 }
  0x16   : > { %v130_v13 = vcombine.low %v123_v10, %v124_v11 }
  0x17   : > { %v134_v14 = vsel %vm133_vm0, %v129_v12, 0.0 }
  0x18   : > { %v135_v15 = vsel %vm133_vm0, %v130_v13, 0.0 }
  0x19   : > { %v136_v16 = vadd.f32 %v135_v15, %v134_v14 }
  0x1b   : > { %v137_v17 = vrot.slane %v136_v16, 4 }
  0x1d   : > { %v138_v18 = vadd.f32 %v137_v17, %v136_v16 }
  0x1f   : > { %v139_v19 = vrot.slane %v138_v18, 2 }
  0x21   : > { %v140_v20 = vadd.f32 %v139_v19, %v138_v18 }
  0x23   : > { %v141_v21 = vrot.slane %v140_v20, 1 }
  0x25   : > { %v142_v22 = vadd.f32 %v141_v21, %v140_v20 }
  0x27   : > { %v143_v23 = vmul.f32 0.0625, %v142_v22 }
  0x29   : > { %145 = vst.msk [vmem:[%s112_s14] sm:$0x1] %vm144_vm1, %v143_v23 }
  0x2a PF: > { %s11_s6 = sadd.s32 1, %s217_s6  }
  0x2b   : > { %p8_p4 = scmp.ge.s32.totalorder %s11_s6, 4  }
  0x2d   :  { %10 = sbr.rel (!%p8_p4) target bundleno = 1 (0x1), region = 54 }

</bundles_post_ra>
